<compile_context>
chip_gen: v7x
topology: tpu7x:2x2x1
jax: 0.10.0
libtpu: 0.0.40
codegen_flags: <defaults>
</compile_context>

<pallas_src>
import jax
import jax.numpy as jnp
from jax.experimental import pallas as pl
from jax.experimental.pallas import tpu as pltpu


CP = 128                         # lane-dense padded channel width everywhere
VMEM_LIMIT = 32 * 1024 * 1024    # safe on v5e/v6e (128 MiB) and v7x (64 MiB/TC)


# ----------------------------------------------------------------------------
# Fused forward kernel (one batch element per grid step)
# ----------------------------------------------------------------------------

def _fused_forward_kernel(
        xs_ref,
        c1w_ref, c1sb_ref, c2w_ref, c2sb_ref,
        d1w_ref, d1sb_ref, p1w_ref, p1sb_ref,
        d2w_ref, d2sb_ref, p2w_ref, p2sb_ref,
        actr_ref, aoff6_ref, aimg_ref, abn_ref, aimgsb_ref,
        aprs_ref, apri_ref, aprj_ref,
        o_low_ref, o_high_ref,
        a1_ref, a2_ref, low_ref, high_ref):
    f32 = jnp.float32
    bf16 = jnp.bfloat16
    H = W = 8
    M = H * W

    # Zero the padded activation buffers (only the halo borders matter -- the 8x8
    # centres are fully overwritten below -- but zeroing everything is a handful of
    # vector stores and keeps every grid step / every core self-contained).
    a1_ref[...] = jnp.zeros_like(a1_ref)
    a2_ref[...] = jnp.zeros_like(a2_ref)
    low_ref[...] = jnp.zeros_like(low_ref)
    high_ref[...] = jnp.zeros_like(high_ref)

    def bn_act(acc, sb_ref, relu=True):
        sb = sb_ref[...]
        y = acc * sb[0:1, :] + sb[1:2, :]
        return jnp.maximum(y, 0.0) if relu else y

    # ---- conv1: 3x3 stride-2 + folded-BN + ReLU -------------------------------
    # Stride-2 sampling happens here, on the 2x2 space-to-depth parity planes
    # (plane k = 2*p + q, plane shape 9x9, rows [9k, 9k+9) of xs_ref).
    par = ((0, 0), (1, 0), (0, 1))           # kernel tap index -> (parity, offset)
    acc = jnp.zeros((M, CP), f32)
    for i in range(3):
        pi, ra = par[i]
        for j in range(3):
            qj, cb = par[j]
            r0 = 9 * (2 * pi + qj) + ra
            win = xs_ref[0, r0:r0 + 8, cb:cb + 8, :].reshape(M, CP)
            acc = acc + jnp.dot(win, c1w_ref[3 * i + j],
                                preferred_element_type=f32)
    a1 = bn_act(acc, c1sb_ref)
    a1_ref[1:9, 1:9, :] = a1.reshape(H, W, CP).astype(bf16)

    # ---- conv2: 3x3 + BN + ReLU ------------------------------------------------
    acc = jnp.zeros((M, CP), f32)
    for i in range(3):
        for j in range(3):
            win = a1_ref[i:i + 8, j:j + 8, :].reshape(M, CP)
            acc = acc + jnp.dot(win, c2w_ref[3 * i + j],
                                preferred_element_type=f32)
    a2 = bn_act(acc, c2sb_ref)
    a2_ref[1:9, 1:9, :] = a2.reshape(H, W, CP)        # f32 scratch: depthwise input

    # ---- block1: fused separable conv (depthwise 3x3 on VPU in f32, then
    # pointwise 1x1 on MXU).  Depthwise intermediate never leaves registers. ------
    acc = jnp.zeros((M, CP), f32)
    for t in range(9):
        i, j = t // 3, t % 3
        win = a2_ref[i:i + 8, j:j + 8, :].reshape(M, CP)
        acc = acc + win * d1w_ref[t:t + 1, :]
    hd = bn_act(acc, d1sb_ref, relu=False)
    low = bn_act(jnp.dot(hd.astype(bf16), p1w_ref[...],
                         preferred_element_type=f32), p1sb_ref)
    low_ref[2:10, 2:10, :] = low.reshape(H, W, CP)    # halo 2 for the dilated dw below
    o_low_ref[...] = low.reshape(1, H, W, CP).astype(o_low_ref.dtype)

    # ---- block2: separable conv, depthwise dilation 2 --------------------------
    acc = jnp.zeros((M, CP), f32)
    for t in range(9):
        i, j = t // 3, t % 3
        win = low_ref[2 * i:2 * i + 8, 2 * j:2 * j + 8, :].reshape(M, CP)
        acc = acc + win * d2w_ref[t:t + 1, :]
    hd = bn_act(acc, d2sb_ref, relu=False)
    high = bn_act(jnp.dot(hd.astype(bf16), p2w_ref[...],
                          preferred_element_type=f32), p2sb_ref)
    high_bf = high.astype(bf16)
    high_ref[6:14, 6:14, :] = high_bf.reshape(H, W, CP)   # halo 6 for ASPP rate 6

    # ---- ASPP_plus (lane-packed) ------------------------------------------------
    # branch lanes: [0:32)=1x1, [32:64)=rate6, [64:96)=rate12, [96:128)=rate18.
    # rates 12/18 are center-tap only on this 8x8 map (other taps read zero pad).
    bacc = jnp.dot(high_bf, actr_ref[...], preferred_element_type=f32)
    off_taps = [t for t in range(9) if t != 4]
    for n, t in enumerate(off_taps):
        di, dj = (t // 3 - 1) * 6, (t % 3 - 1) * 6
        win = high_ref[6 + di:14 + di, 6 + dj:14 + dj, :].reshape(M, CP)
        bacc = bacc + jnp.dot(win, aoff6_ref[n], preferred_element_type=f32)
    branches = bn_act(bacc, abn_ref)                       # packed BN + ReLU

    # image-level branch: GAP -> 1x1 + BN + ReLU.  Spatially constant, so its
    # projection contribution is a per-batch additive row (no broadcast map).
    gap = jnp.mean(high, axis=0, keepdims=True)            # (1, 128) f32
    b_img = bn_act(jnp.dot(gap.astype(bf16), aimg_ref[...],
                           preferred_element_type=f32), aimgsb_ref)

    proj = jnp.dot(branches.astype(bf16), aprs_ref[...], preferred_element_type=f32)
    proj = proj + jnp.dot(b_img.astype(bf16), apri_ref[...],
                          preferred_element_type=f32)      # broadcast over rows
    out = bn_act(proj, aprj_ref)
    o_high_ref[...] = out.reshape(1, H, W, CP).astype(o_high_ref.dtype)


# ----------------------------------------------------------------------------
# Deterministic parameters (synthetic; BN folded; pre-padded / lane-packed once)
# ----------------------------------------------------------------------------

class _ParamGen:
    def __init__(self, seed):
        self.key = jax.random.PRNGKey(seed)

    def next(self, shape, scale=0.1):
        self.key, sub = jax.random.split(self.key)
        return jax.random.normal(sub, shape, jnp.float32) * scale


def _bn_fold(gen, c, eps=1e-5):
    gamma = 1.0 + gen.next((c,), 0.05)
    beta = gen.next((c,), 0.05)
    mean = gen.next((c,), 0.05)
    var = 1.0 + jnp.abs(gen.next((c,), 0.05))
    scale = gamma / jnp.sqrt(var + eps)
    bias = beta - mean * scale
    return scale, bias


def _sb_pack(s, b, c):
    sb = jnp.zeros((2, CP), jnp.float32)
    return sb.at[0, :c].set(s).at[1, :c].set(b)


def init_params(seed=42, in_ch=3):
    gen = _ParamGen(seed)
    p = {}

    def conv3(name, cin, cout):
        w = gen.next((3, 3, cin, cout)).reshape(9, cin, cout)
        s, b = _bn_fold(gen, cout)
        wp = jnp.zeros((9, CP, CP), jnp.float32).at[:, :cin, :cout].set(w)
        p[name + "_w"] = wp.astype(jnp.bfloat16)
        p[name + "_sb"] = _sb_pack(s, b, cout)

    def dwpw(name, c, cout):
        wd = gen.next((3, 3, c)).reshape(9, c)
        sd, bd = _bn_fold(gen, c)
        p[name + "_dw_w"] = jnp.zeros((9, CP), jnp.float32).at[:, :c].set(wd)
        p[name + "_dw_sb"] = _sb_pack(sd, bd, c)
        wp = gen.next((c, cout))
        sp_, bp_ = _bn_fold(gen, cout)
        p[name + "_pw_w"] = (jnp.zeros((CP, CP), jnp.float32)
                             .at[:c, :cout].set(wp)).astype(jnp.bfloat16)
        p[name + "_pw_sb"] = _sb_pack(sp_, bp_, cout)

    # --- miniature Xception65 (entry stack + two separable blocks) ---
    conv3("conv1", in_ch, 16)                    # 3x3 stride 2
    conv3("conv2", 16, 32)
    dwpw("b1", 32, 48)                           # low-level feature (48 ch)
    dwpw("b2", 48, 64)                           # high-level feature (64 ch), dw dil 2

    # --- ASPP_plus, lane-packed for a 128-wide branch accumulator ---
    CB, CIN = 32, 64
    w_c1 = gen.next((CIN, CB));                       s0, b0 = _bn_fold(gen, CB)
    w_r6 = gen.next((3, 3, CIN, CB)).reshape(9, CIN, CB);  s1, b1 = _bn_fold(gen, CB)
    w_r12 = gen.next((3, 3, CIN, CB)).reshape(9, CIN, CB); s2, b2 = _bn_fold(gen, CB)
    w_r18 = gen.next((3, 3, CIN, CB)).reshape(9, CIN, CB); s3, b3 = _bn_fold(gen, CB)
    w_img = gen.next((CIN, CB));                      s4, b4 = _bn_fold(gen, CB)

    ctr = jnp.zeros((CP, CP), jnp.float32)
    ctr = ctr.at[:CIN, 0 * CB:1 * CB].set(w_c1)        # 1x1 branch
    ctr = ctr.at[:CIN, 1 * CB:2 * CB].set(w_r6[4])     # rate-6 center tap
    ctr = ctr.at[:CIN, 2 * CB:3 * CB].set(w_r12[4])    # rate-12 (center only on 8x8)
    ctr = ctr.at[:CIN, 3 * CB:4 * CB].set(w_r18[4])    # rate-18 (center only on 8x8)
    p["aspp_ctr_w"] = ctr.astype(jnp.bfloat16)

    off6 = jnp.zeros((8, CP, CP), jnp.float32)
    for n, tap in enumerate([k for k in range(9) if k != 4]):
        off6 = off6.at[n, :CIN, CB:2 * CB].set(w_r6[tap])
    p["aspp_off6_w"] = off6.astype(jnp.bfloat16)

    p["aspp_img_w"] = (jnp.zeros((CP, CP), jnp.float32)
                       .at[:CIN, :CB].set(w_img)).astype(jnp.bfloat16)

    p["aspp_bn_sb"] = jnp.stack([jnp.concatenate([s0, s1, s2, s3]),
                                 jnp.concatenate([b0, b1, b2, b3])])   # (2, 128)
    p["aspp_img_sb"] = _sb_pack(s4, b4, CB)

    # projection over concat([b0..b4]) split into packed-spatial + image parts
    w_proj = gen.next((5 * CB, CB))
    sp5, bp5 = _bn_fold(gen, CB)
    p["aspp_prs_w"] = (jnp.zeros((CP, CP), jnp.float32)
                       .at[:4 * CB, :CB].set(w_proj[:4 * CB])).astype(jnp.bfloat16)
    p["aspp_pri_w"] = (jnp.zeros((CP, CP), jnp.float32)
                       .at[:CB, :CB].set(w_proj[4 * CB:])).astype(jnp.bfloat16)
    p["aspp_proj_sb"] = _sb_pack(sp5, bp5, CB)
    return p


# ----------------------------------------------------------------------------
# Forward pass (single fused pallas_call)
# ----------------------------------------------------------------------------

_WEIGHT_NAMES = [
    "conv1_w", "conv1_sb", "conv2_w", "conv2_sb",
    "b1_dw_w", "b1_dw_sb", "b1_pw_w", "b1_pw_sb",
    "b2_dw_w", "b2_dw_sb", "b2_pw_w", "b2_pw_sb",
    "aspp_ctr_w", "aspp_off6_w", "aspp_img_w", "aspp_bn_sb", "aspp_img_sb",
    "aspp_prs_w", "aspp_pri_w", "aspp_proj_sb",
]


def deeplabv3_plus_forward(params, x_nchw):
    """Mirrors DeepLabv3_plus.forward: logits = dcnn(x); logits[-1] = aspp(logits[-1])."""
    B, cin, H, W = x_nchw.shape
    # The fused kernel (incl. the rate-12/18 center-tap reduction) is specialized
    # to 16x16 inputs -> 8x8 feature maps.
    assert (H, W) == (16, 16), "fused DeepLabv3+ kernel is specialized to 16x16 inputs"

    x = jnp.transpose(x_nchw, (0, 2, 3, 1)).astype(jnp.bfloat16)       # NCHW -> NHWC
    # One XLA layout op on the network input only: lane-pad channels, halo-1 pad and
    # 2x2 space-to-depth so conv1's stride-2 taps are plain window reads in-kernel.
    xp = jnp.pad(x, ((0, 0), (1, 1), (1, 1), (0, CP - cin)))           # (B,18,18,128)
    xs = (xp.reshape(B, 9, 2, 9, 2, CP)
            .transpose(0, 2, 4, 1, 3, 5)
            .reshape(B, 36, 9, CP))                                    # plane rows

    weights = [params[n] for n in _WEIGHT_NAMES]

    def whole(arr):
        nd = arr.ndim
        return pl.BlockSpec(arr.shape, lambda b, _nd=nd: (0,) * _nd)

    in_specs = [pl.BlockSpec((1, 36, 9, CP), lambda b: (b, 0, 0, 0))]
    in_specs += [whole(w) for w in weights]

    out_shape = (jax.ShapeDtypeStruct((B, 8, 8, CP), jnp.bfloat16),
                 jax.ShapeDtypeStruct((B, 8, 8, CP), jnp.bfloat16))
    out_specs = [pl.BlockSpec((1, 8, 8, CP), lambda b: (b, 0, 0, 0)),
                 pl.BlockSpec((1, 8, 8, CP), lambda b: (b, 0, 0, 0))]

    n_dense_dots = 9 + 9 + 1 + 1 + 1 + 8 + 1            # (64,128)@(128,128) GEMMs
    flops = int(B * (2 * 64 * CP * CP * n_dense_dots    # MXU
                     + 2 * 2 * CP * CP                  # GAP / img-proj rows
                     + 2 * 9 * 64 * CP * 2))            # depthwise VPU
    bytes_accessed = int(xs.size * 2
                         + sum(w.size * w.dtype.itemsize for w in weights)
                         + 2 * B * 8 * 8 * CP * 2)

    low_p, high_p = pl.pallas_call(
        _fused_forward_kernel,
        out_shape=out_shape,
        grid_spec=pltpu.PrefetchScalarGridSpec(
            num_scalar_prefetch=0,
            grid=(B,),
            in_specs=in_specs,
            out_specs=out_specs,
            scratch_shapes=[
                pltpu.VMEM((10, 10, CP), jnp.bfloat16),   # conv1 out + halo 1
                pltpu.VMEM((10, 10, CP), jnp.float32),    # conv2 out + halo 1 (f32 dw in)
                pltpu.VMEM((12, 12, CP), jnp.float32),    # b1 out + halo 2 (f32 dw in)
                pltpu.VMEM((20, 20, CP), jnp.bfloat16),   # b2 out + halo 6 (ASPP rate 6)
            ]),
        compiler_params=pltpu.CompilerParams(
            dimension_semantics=("parallel",),            # v7x: one batch elem per TC
            vmem_limit_bytes=VMEM_LIMIT),
        cost_estimate=pl.CostEstimate(flops=flops, transcendentals=0,
                                      bytes_accessed=bytes_accessed),
    )(xs, *weights)

    low = low_p[..., :48].astype(jnp.float32)
    high = high_p[..., :32].astype(jnp.float32)
    return [jnp.transpose(low, (0, 3, 1, 2)),             # back to NCHW
            jnp.transpose(high, (0, 3, 1, 2))]


# ----------------------------------------------------------------------------
# Main
# ----------------------------------------------------------------------------

if __name__ == "__main__":
    key = jax.random.PRNGKey(0)
    x = jax.random.normal(key, (2, 3, 16, 16), jnp.float32)            # NCHW, like PyTorch
    params = init_params(seed=42, in_ch=3)

    fwd = jax.jit(deeplabv3_plus_forward)
    outs = fwd(params, x)
    for o in outs:
        jax.block_until_ready(o)

    assert outs[0].shape == (2, 48, 8, 8), outs[0].shape
    assert outs[1].shape == (2, 32, 8, 8), outs[1].shape
    assert all(bool(jnp.all(jnp.isfinite(o))) for o in outs)
    print("KERNEL_OK")
</pallas_src>

<mosaic_0001>
module attributes {stable_mosaic.version = 11 : i64} {
  func.func @_fused_forward_kernel(%arg0: i32, %arg1: memref<1x36x9x128xbf16, #tpu.memory_space<vmem>>, %arg2: memref<9x128x128xbf16, #tpu.memory_space<vmem>>, %arg3: memref<2x128xf32, #tpu.memory_space<vmem>>, %arg4: memref<9x128x128xbf16, #tpu.memory_space<vmem>>, %arg5: memref<2x128xf32, #tpu.memory_space<vmem>>, %arg6: memref<9x128xf32, #tpu.memory_space<vmem>>, %arg7: memref<2x128xf32, #tpu.memory_space<vmem>>, %arg8: memref<128x128xbf16, #tpu.memory_space<vmem>>, %arg9: memref<2x128xf32, #tpu.memory_space<vmem>>, %arg10: memref<9x128xf32, #tpu.memory_space<vmem>>, %arg11: memref<2x128xf32, #tpu.memory_space<vmem>>, %arg12: memref<128x128xbf16, #tpu.memory_space<vmem>>, %arg13: memref<2x128xf32, #tpu.memory_space<vmem>>, %arg14: memref<128x128xbf16, #tpu.memory_space<vmem>>, %arg15: memref<8x128x128xbf16, #tpu.memory_space<vmem>>, %arg16: memref<128x128xbf16, #tpu.memory_space<vmem>>, %arg17: memref<2x128xf32, #tpu.memory_space<vmem>>, %arg18: memref<2x128xf32, #tpu.memory_space<vmem>>, %arg19: memref<128x128xbf16, #tpu.memory_space<vmem>>, %arg20: memref<128x128xbf16, #tpu.memory_space<vmem>>, %arg21: memref<2x128xf32, #tpu.memory_space<vmem>>, %arg22: memref<1x8x8x128xbf16, #tpu.memory_space<vmem>>, %arg23: memref<1x8x8x128xbf16, #tpu.memory_space<vmem>>, %arg24: memref<10x10x128xbf16, #tpu.memory_space<vmem>>, %arg25: memref<10x10x128xf32, #tpu.memory_space<vmem>>, %arg26: memref<12x12x128xf32, #tpu.memory_space<vmem>>, %arg27: memref<20x20x128xbf16, #tpu.memory_space<vmem>>) attributes {dimension_semantics = [#tpu.dimension_semantics<parallel>], iteration_bounds = array<i64: 2>, scalar_prefetch = 0 : i64, scratch_operands = 4 : i64, tpu.core_type = #tpu.core_type<tc>, window_params = [{transform_indices = @transform_0, window_bounds = array<i64: 1, 36, 9, 128>}, {pipeline_mode = #tpu.pipeline_mode<synchronous>, transform_indices = @transform_1, window_bounds = array<i64: 9, 128, 128>}, {pipeline_mode = #tpu.pipeline_mode<synchronous>, transform_indices = @transform_2, window_bounds = array<i64: 2, 128>}, {pipeline_mode = #tpu.pipeline_mode<synchronous>, transform_indices = @transform_3, window_bounds = array<i64: 9, 128, 128>}, {pipeline_mode = #tpu.pipeline_mode<synchronous>, transform_indices = @transform_4, window_bounds = array<i64: 2, 128>}, {pipeline_mode = #tpu.pipeline_mode<synchronous>, transform_indices = @transform_5, window_bounds = array<i64: 9, 128>}, {pipeline_mode = #tpu.pipeline_mode<synchronous>, transform_indices = @transform_6, window_bounds = array<i64: 2, 128>}, {pipeline_mode = #tpu.pipeline_mode<synchronous>, transform_indices = @transform_7, window_bounds = array<i64: 128, 128>}, {pipeline_mode = #tpu.pipeline_mode<synchronous>, transform_indices = @transform_8, window_bounds = array<i64: 2, 128>}, {pipeline_mode = #tpu.pipeline_mode<synchronous>, transform_indices = @transform_9, window_bounds = array<i64: 9, 128>}, {pipeline_mode = #tpu.pipeline_mode<synchronous>, transform_indices = @transform_10, window_bounds = array<i64: 2, 128>}, {pipeline_mode = #tpu.pipeline_mode<synchronous>, transform_indices = @transform_11, window_bounds = array<i64: 128, 128>}, {pipeline_mode = #tpu.pipeline_mode<synchronous>, transform_indices = @transform_12, window_bounds = array<i64: 2, 128>}, {pipeline_mode = #tpu.pipeline_mode<synchronous>, transform_indices = @transform_13, window_bounds = array<i64: 128, 128>}, {pipeline_mode = #tpu.pipeline_mode<synchronous>, transform_indices = @transform_14, window_bounds = array<i64: 8, 128, 128>}, {pipeline_mode = #tpu.pipeline_mode<synchronous>, transform_indices = @transform_15, window_bounds = array<i64: 128, 128>}, {pipeline_mode = #tpu.pipeline_mode<synchronous>, transform_indices = @transform_16, window_bounds = array<i64: 2, 128>}, {pipeline_mode = #tpu.pipeline_mode<synchronous>, transform_indices = @transform_17, window_bounds = array<i64: 2, 128>}, {pipeline_mode = #tpu.pipeline_mode<synchronous>, transform_indices = @transform_18, window_bounds = array<i64: 128, 128>}, {pipeline_mode = #tpu.pipeline_mode<synchronous>, transform_indices = @transform_19, window_bounds = array<i64: 128, 128>}, {pipeline_mode = #tpu.pipeline_mode<synchronous>, transform_indices = @transform_20, window_bounds = array<i64: 2, 128>}, {transform_indices = @transform_21, window_bounds = array<i64: 1, 8, 8, 128>}, {transform_indices = @transform_22, window_bounds = array<i64: 1, 8, 8, 128>}]} {
    %cst = arith.constant 0.000000e+00 : bf16
    %0 = vector.broadcast %cst : bf16 to vector<10x10x128xbf16>
    %c0 = arith.constant 0 : index
    %c0_0 = arith.constant 0 : index
    %c0_1 = arith.constant 0 : index
    %1 = vector.load %arg24[%c0, %c0_0, %c0_1] : memref<10x10x128xbf16, #tpu.memory_space<vmem>>, vector<10x10x128xbf16>
    tpu.vector_store %arg24[%c0, %c0_0, %c0_1], %0 {strides = array<i32>} : memref<10x10x128xbf16, #tpu.memory_space<vmem>>, vector<10x10x128xbf16>,
    %cst_2 = arith.constant 0.000000e+00 : f32
    %2 = vector.broadcast %cst_2 : f32 to vector<10x10x128xf32>
    %c0_3 = arith.constant 0 : index
    %c0_4 = arith.constant 0 : index
    %c0_5 = arith.constant 0 : index
    %3 = vector.load %arg25[%c0_3, %c0_4, %c0_5] : memref<10x10x128xf32, #tpu.memory_space<vmem>>, vector<10x10x128xf32>
    tpu.vector_store %arg25[%c0_3, %c0_4, %c0_5], %2 {strides = array<i32>} : memref<10x10x128xf32, #tpu.memory_space<vmem>>, vector<10x10x128xf32>,
    %cst_6 = arith.constant 0.000000e+00 : f32
    %4 = vector.broadcast %cst_6 : f32 to vector<12x12x128xf32>
    %c0_7 = arith.constant 0 : index
    %c0_8 = arith.constant 0 : index
    %c0_9 = arith.constant 0 : index
    %5 = vector.load %arg26[%c0_7, %c0_8, %c0_9] : memref<12x12x128xf32, #tpu.memory_space<vmem>>, vector<12x12x128xf32>
    tpu.vector_store %arg26[%c0_7, %c0_8, %c0_9], %4 {strides = array<i32>} : memref<12x12x128xf32, #tpu.memory_space<vmem>>, vector<12x12x128xf32>,
    %cst_10 = arith.constant 0.000000e+00 : bf16
    %6 = vector.broadcast %cst_10 : bf16 to vector<20x20x128xbf16>
    %c0_11 = arith.constant 0 : index
    %c0_12 = arith.constant 0 : index
    %c0_13 = arith.constant 0 : index
    %7 = vector.load %arg27[%c0_11, %c0_12, %c0_13] : memref<20x20x128xbf16, #tpu.memory_space<vmem>>, vector<20x20x128xbf16>
    tpu.vector_store %arg27[%c0_11, %c0_12, %c0_13], %6 {strides = array<i32>} : memref<20x20x128xbf16, #tpu.memory_space<vmem>>, vector<20x20x128xbf16>,
    %cst_14 = arith.constant 0.000000e+00 : f32
    %8 = vector.broadcast %cst_14 : f32 to vector<64x128xf32>
    %c0_15 = arith.constant 0 : index
    %c0_16 = arith.constant 0 : index
    %c0_17 = arith.constant 0 : index
    %c0_18 = arith.constant 0 : index
    %9 = vector.load %arg1[%c0_15, %c0_16, %c0_17, %c0_18] : memref<1x36x9x128xbf16, #tpu.memory_space<vmem>>, vector<1x8x8x128xbf16>
    %10 = vector.shape_cast %9 : vector<1x8x8x128xbf16> to vector<8x8x128xbf16>
    %11 = vector.shape_cast %10 : vector<8x8x128xbf16> to vector<64x128xbf16>
    %c0_19 = arith.constant 0 : index
    %c0_20 = arith.constant 0 : index
    %c0_21 = arith.constant 0 : index
    %12 = vector.load %arg2[%c0_19, %c0_20, %c0_21] : memref<9x128x128xbf16, #tpu.memory_space<vmem>>, vector<1x128x128xbf16>
    %13 = vector.shape_cast %12 : vector<1x128x128xbf16> to vector<128x128xbf16>
    %cst_22 = arith.constant dense<0.000000e+00> : vector<64x128xf32>
    %14 = tpu.matmul %11, %13, %cst_22 {dimension_numbers = #tpu.dot_dimension_numbers<[1], [0], [0], [1], [0, 0, 1, 1], [], []>} : vector<64x128xbf16>, vector<128x128xbf16>, vector<64x128xf32> -> vector<64x128xf32>
    %15 = arith.addf %8, %14 : vector<64x128xf32>
    %c0_23 = arith.constant 0 : index
    %c9 = arith.constant 9 : index
    %c0_24 = arith.constant 0 : index
    %c0_25 = arith.constant 0 : index
    %16 = vector.load %arg1[%c0_23, %c9, %c0_24, %c0_25] : memref<1x36x9x128xbf16, #tpu.memory_space<vmem>>, vector<1x8x8x128xbf16>
    %17 = vector.shape_cast %16 : vector<1x8x8x128xbf16> to vector<8x8x128xbf16>
    %18 = vector.shape_cast %17 : vector<8x8x128xbf16> to vector<64x128xbf16>
    %c1 = arith.constant 1 : index
    %c0_26 = arith.constant 0 : index
    %c0_27 = arith.constant 0 : index
    %19 = vector.load %arg2[%c1, %c0_26, %c0_27] : memref<9x128x128xbf16, #tpu.memory_space<vmem>>, vector<1x128x128xbf16>
    %20 = vector.shape_cast %19 : vector<1x128x128xbf16> to vector<128x128xbf16>
    %cst_28 = arith.constant dense<0.000000e+00> : vector<64x128xf32>
    %21 = tpu.matmul %18, %20, %cst_28 {dimension_numbers = #tpu.dot_dimension_numbers<[1], [0], [0], [1], [0, 0, 1, 1], [], []>} : vector<64x128xbf16>, vector<128x128xbf16>, vector<64x128xf32> -> vector<64x128xf32>
    %22 = arith.addf %15, %21 : vector<64x128xf32>
    %c0_29 = arith.constant 0 : index
    %c0_30 = arith.constant 0 : index
    %c1_31 = arith.constant 1 : index
    %c0_32 = arith.constant 0 : index
    %23 = vector.load %arg1[%c0_29, %c0_30, %c1_31, %c0_32] : memref<1x36x9x128xbf16, #tpu.memory_space<vmem>>, vector<1x8x8x128xbf16>
    %24 = vector.shape_cast %23 : vector<1x8x8x128xbf16> to vector<8x8x128xbf16>
    %25 = vector.shape_cast %24 : vector<8x8x128xbf16> to vector<64x128xbf16>
    %c2 = arith.constant 2 : index
    %c0_33 = arith.constant 0 : index
    %c0_34 = arith.constant 0 : index
    %26 = vector.load %arg2[%c2, %c0_33, %c0_34] : memref<9x128x128xbf16, #tpu.memory_space<vmem>>, vector<1x128x128xbf16>
    %27 = vector.shape_cast %26 : vector<1x128x128xbf16> to vector<128x128xbf16>
    %cst_35 = arith.constant dense<0.000000e+00> : vector<64x128xf32>
    %28 = tpu.matmul %25, %27, %cst_35 {dimension_numbers = #tpu.dot_dimension_numbers<[1], [0], [0], [1], [0, 0, 1, 1], [], []>} : vector<64x128xbf16>, vector<128x128xbf16>, vector<64x128xf32> -> vector<64x128xf32>
    %29 = arith.addf %22, %28 : vector<64x128xf32>
    %c0_36 = arith.constant 0 : index
    %c18 = arith.constant 18 : index
    %c0_37 = arith.constant 0 : index
    %c0_38 = arith.constant 0 : index
    %30 = vector.load %arg1[%c0_36, %c18, %c0_37, %c0_38] : memref<1x36x9x128xbf16, #tpu.memory_space<vmem>>, vector<1x8x8x128xbf16>
    %31 = vector.shape_cast %30 : vector<1x8x8x128xbf16> to vector<8x8x128xbf16>
    %32 = vector.shape_cast %31 : vector<8x8x128xbf16> to vector<64x128xbf16>
    %c3 = arith.constant 3 : index
    %c0_39 = arith.constant 0 : index
    %c0_40 = arith.constant 0 : index
    %33 = vector.load %arg2[%c3, %c0_39, %c0_40] : memref<9x128x128xbf16, #tpu.memory_space<vmem>>, vector<1x128x128xbf16>
    %34 = vector.shape_cast %33 : vector<1x128x128xbf16> to vector<128x128xbf16>
    %cst_41 = arith.constant dense<0.000000e+00> : vector<64x128xf32>
    %35 = tpu.matmul %32, %34, %cst_41 {dimension_numbers = #tpu.dot_dimension_numbers<[1], [0], [0], [1], [0, 0, 1, 1], [], []>} : vector<64x128xbf16>, vector<128x128xbf16>, vector<64x128xf32> -> vector<64x128xf32>
    %36 = arith.addf %29, %35 : vector<64x128xf32>
    %c0_42 = arith.constant 0 : index
    %c27 = arith.constant 27 : index
    %c0_43 = arith.constant 0 : index
    %c0_44 = arith.constant 0 : index
    %37 = vector.load %arg1[%c0_42, %c27, %c0_43, %c0_44] : memref<1x36x9x128xbf16, #tpu.memory_space<vmem>>, vector<1x8x8x128xbf16>
    %38 = vector.shape_cast %37 : vector<1x8x8x128xbf16> to vector<8x8x128xbf16>
    %39 = vector.shape_cast %38 : vector<8x8x128xbf16> to vector<64x128xbf16>
    %c4 = arith.constant 4 : index
    %c0_45 = arith.constant 0 : index
    %c0_46 = arith.constant 0 : index
    %40 = vector.load %arg2[%c4, %c0_45, %c0_46] : memref<9x128x128xbf16, #tpu.memory_space<vmem>>, vector<1x128x128xbf16>
    %41 = vector.shape_cast %40 : vector<1x128x128xbf16> to vector<128x128xbf16>
    %cst_47 = arith.constant dense<0.000000e+00> : vector<64x128xf32>
    %42 = tpu.matmul %39, %41, %cst_47 {dimension_numbers = #tpu.dot_dimension_numbers<[1], [0], [0], [1], [0, 0, 1, 1], [], []>} : vector<64x128xbf16>, vector<128x128xbf16>, vector<64x128xf32> -> vector<64x128xf32>
    %43 = arith.addf %36, %42 : vector<64x128xf32>
    %c0_48 = arith.constant 0 : index
    %c18_49 = arith.constant 18 : index
    %c1_50 = arith.constant 1 : index
    %c0_51 = arith.constant 0 : index
    %44 = vector.load %arg1[%c0_48, %c18_49, %c1_50, %c0_51] : memref<1x36x9x128xbf16, #tpu.memory_space<vmem>>, vector<1x8x8x128xbf16>
    %45 = vector.shape_cast %44 : vector<1x8x8x128xbf16> to vector<8x8x128xbf16>
    %46 = vector.shape_cast %45 : vector<8x8x128xbf16> to vector<64x128xbf16>
    %c5 = arith.constant 5 : index
    %c0_52 = arith.constant 0 : index
    %c0_53 = arith.constant 0 : index
    %47 = vector.load %arg2[%c5, %c0_52, %c0_53] : memref<9x128x128xbf16, #tpu.memory_space<vmem>>, vector<1x128x128xbf16>
    %48 = vector.shape_cast %47 : vector<1x128x128xbf16> to vector<128x128xbf16>
    %cst_54 = arith.constant dense<0.000000e+00> : vector<64x128xf32>
    %49 = tpu.matmul %46, %48, %cst_54 {dimension_numbers = #tpu.dot_dimension_numbers<[1], [0], [0], [1], [0, 0, 1, 1], [], []>} : vector<64x128xbf16>, vector<128x128xbf16>, vector<64x128xf32> -> vector<64x128xf32>
    %50 = arith.addf %43, %49 : vector<64x128xf32>
    %c0_55 = arith.constant 0 : index
    %c1_56 = arith.constant 1 : index
    %c0_57 = arith.constant 0 : index
    %c0_58 = arith.constant 0 : index
    %51 = vector.load %arg1[%c0_55, %c1_56, %c0_57, %c0_58] : memref<1x36x9x128xbf16, #tpu.memory_space<vmem>>, vector<1x8x8x128xbf16>
    %52 = vector.shape_cast %51 : vector<1x8x8x128xbf16> to vector<8x8x128xbf16>
    %53 = vector.shape_cast %52 : vector<8x8x128xbf16> to vector<64x128xbf16>
    %c6 = arith.constant 6 : index
    %c0_59 = arith.constant 0 : index
    %c0_60 = arith.constant 0 : index
    %54 = vector.load %arg2[%c6, %c0_59, %c0_60] : memref<9x128x128xbf16, #tpu.memory_space<vmem>>, vector<1x128x128xbf16>
    %55 = vector.shape_cast %54 : vector<1x128x128xbf16> to vector<128x128xbf16>
    %cst_61 = arith.constant dense<0.000000e+00> : vector<64x128xf32>
    %56 = tpu.matmul %53, %55, %cst_61 {dimension_numbers = #tpu.dot_dimension_numbers<[1], [0], [0], [1], [0, 0, 1, 1], [], []>} : vector<64x128xbf16>, vector<128x128xbf16>, vector<64x128xf32> -> vector<64x128xf32>
    %57 = arith.addf %50, %56 : vector<64x128xf32>
    %c0_62 = arith.constant 0 : index
    %c10 = arith.constant 10 : index
    %c0_63 = arith.constant 0 : index
    %c0_64 = arith.constant 0 : index
    %58 = vector.load %arg1[%c0_62, %c10, %c0_63, %c0_64] : memref<1x36x9x128xbf16, #tpu.memory_space<vmem>>, vector<1x8x8x128xbf16>
    %59 = vector.shape_cast %58 : vector<1x8x8x128xbf16> to vector<8x8x128xbf16>
    %60 = vector.shape_cast %59 : vector<8x8x128xbf16> to vector<64x128xbf16>
    %c7 = arith.constant 7 : index
    %c0_65 = arith.constant 0 : index
    %c0_66 = arith.constant 0 : index
    %61 = vector.load %arg2[%c7, %c0_65, %c0_66] : memref<9x128x128xbf16, #tpu.memory_space<vmem>>, vector<1x128x128xbf16>
    %62 = vector.shape_cast %61 : vector<1x128x128xbf16> to vector<128x128xbf16>
    %cst_67 = arith.constant dense<0.000000e+00> : vector<64x128xf32>
    %63 = tpu.matmul %60, %62, %cst_67 {dimension_numbers = #tpu.dot_dimension_numbers<[1], [0], [0], [1], [0, 0, 1, 1], [], []>} : vector<64x128xbf16>, vector<128x128xbf16>, vector<64x128xf32> -> vector<64x128xf32>
    %64 = arith.addf %57, %63 : vector<64x128xf32>
    %c0_68 = arith.constant 0 : index
    %c1_69 = arith.constant 1 : index
    %c1_70 = arith.constant 1 : index
    %c0_71 = arith.constant 0 : index
    %65 = vector.load %arg1[%c0_68, %c1_69, %c1_70, %c0_71] : memref<1x36x9x128xbf16, #tpu.memory_space<vmem>>, vector<1x8x8x128xbf16>
    %66 = vector.shape_cast %65 : vector<1x8x8x128xbf16> to vector<8x8x128xbf16>
    %67 = vector.shape_cast %66 : vector<8x8x128xbf16> to vector<64x128xbf16>
    %c8 = arith.constant 8 : index
    %c0_72 = arith.constant 0 : index
    %c0_73 = arith.constant 0 : index
    %68 = vector.load %arg2[%c8, %c0_72, %c0_73] : memref<9x128x128xbf16, #tpu.memory_space<vmem>>, vector<1x128x128xbf16>
    %69 = vector.shape_cast %68 : vector<1x128x128xbf16> to vector<128x128xbf16>
    %cst_74 = arith.constant dense<0.000000e+00> : vector<64x128xf32>
    %70 = tpu.matmul %67, %69, %cst_74 {dimension_numbers = #tpu.dot_dimension_numbers<[1], [0], [0], [1], [0, 0, 1, 1], [], []>} : vector<64x128xbf16>, vector<128x128xbf16>, vector<64x128xf32> -> vector<64x128xf32>
    %71 = arith.addf %64, %70 : vector<64x128xf32>
    %c0_75 = arith.constant 0 : index
    %c0_76 = arith.constant 0 : index
    %72 = vector.load %arg3[%c0_75, %c0_76] : memref<2x128xf32, #tpu.memory_space<vmem>>, vector<2x128xf32>
    %73 = vector.extract_strided_slice %72 {offsets = [0, 0], sizes = [1, 128], strides = [1, 1]} : vector<2x128xf32> to vector<1x128xf32>
    %74 = vector.broadcast %73 : vector<1x128xf32> to vector<64x128xf32>
    %75 = arith.mulf %71, %74 : vector<64x128xf32>
    %76 = vector.extract_strided_slice %72 {offsets = [1, 0], sizes = [1, 128], strides = [1, 1]} : vector<2x128xf32> to vector<1x128xf32>
    %77 = vector.broadcast %76 : vector<1x128xf32> to vector<64x128xf32>
    %78 = arith.addf %75, %77 : vector<64x128xf32>
    %cst_77 = arith.constant 0.000000e+00 : f32
    %79 = vector.broadcast %cst_77 : f32 to vector<64x128xf32>
    %80 = arith.maximumf %78, %79 : vector<64x128xf32>
    %81 = vector.shape_cast %80 : vector<64x128xf32> to vector<8x8x128xf32>
    %82 = arith.truncf %81 : vector<8x8x128xf32> to vector<8x8x128xbf16>
    %c1_78 = arith.constant 1 : index
    %c1_79 = arith.constant 1 : index
    %c0_80 = arith.constant 0 : index
    %83 = vector.load %arg24[%c1_78, %c1_79, %c0_80] : memref<10x10x128xbf16, #tpu.memory_space<vmem>>, vector<8x8x128xbf16>
    tpu.vector_store %arg24[%c1_78, %c1_79, %c0_80], %82 {strides = array<i32>} : memref<10x10x128xbf16, #tpu.memory_space<vmem>>, vector<8x8x128xbf16>,
    %cst_81 = arith.constant 0.000000e+00 : f32
    %84 = vector.broadcast %cst_81 : f32 to vector<64x128xf32>
    %c0_82 = arith.constant 0 : index
    %c0_83 = arith.constant 0 : index
    %c0_84 = arith.constant 0 : index
    %85 = vector.load %arg24[%c0_82, %c0_83, %c0_84] : memref<10x10x128xbf16, #tpu.memory_space<vmem>>, vector<8x8x128xbf16>
    %86 = vector.shape_cast %85 : vector<8x8x128xbf16> to vector<64x128xbf16>
    %c0_85 = arith.constant 0 : index
    %c0_86 = arith.constant 0 : index
    %c0_87 = arith.constant 0 : index
    %87 = vector.load %arg4[%c0_85, %c0_86, %c0_87] : memref<9x128x128xbf16, #tpu.memory_space<vmem>>, vector<1x128x128xbf16>
    %88 = vector.shape_cast %87 : vector<1x128x128xbf16> to vector<128x128xbf16>
    %cst_88 = arith.constant dense<0.000000e+00> : vector<64x128xf32>
    %89 = tpu.matmul %86, %88, %cst_88 {dimension_numbers = #tpu.dot_dimension_numbers<[1], [0], [0], [1], [0, 0, 1, 1], [], []>} : vector<64x128xbf16>, vector<128x128xbf16>, vector<64x128xf32> -> vector<64x128xf32>
    %90 = arith.addf %84, %89 : vector<64x128xf32>
    %c0_89 = arith.constant 0 : index
    %c1_90 = arith.constant 1 : index
    %c0_91 = arith.constant 0 : index
    %91 = vector.load %arg24[%c0_89, %c1_90, %c0_91] : memref<10x10x128xbf16, #tpu.memory_space<vmem>>, vector<8x8x128xbf16>
    %92 = vector.shape_cast %91 : vector<8x8x128xbf16> to vector<64x128xbf16>
    %c1_92 = arith.constant 1 : index
    %c0_93 = arith.constant 0 : index
    %c0_94 = arith.constant 0 : index
    %93 = vector.load %arg4[%c1_92, %c0_93, %c0_94] : memref<9x128x128xbf16, #tpu.memory_space<vmem>>, vector<1x128x128xbf16>
    %94 = vector.shape_cast %93 : vector<1x128x128xbf16> to vector<128x128xbf16>
    %cst_95 = arith.constant dense<0.000000e+00> : vector<64x128xf32>
    %95 = tpu.matmul %92, %94, %cst_95 {dimension_numbers = #tpu.dot_dimension_numbers<[1], [0], [0], [1], [0, 0, 1, 1], [], []>} : vector<64x128xbf16>, vector<128x128xbf16>, vector<64x128xf32> -> vector<64x128xf32>
    %96 = arith.addf %90, %95 : vector<64x128xf32>
    %c0_96 = arith.constant 0 : index
    %c2_97 = arith.constant 2 : index
    %c0_98 = arith.constant 0 : index
    %97 = vector.load %arg24[%c0_96, %c2_97, %c0_98] : memref<10x10x128xbf16, #tpu.memory_space<vmem>>, vector<8x8x128xbf16>
    %98 = vector.shape_cast %97 : vector<8x8x128xbf16> to vector<64x128xbf16>
    %c2_99 = arith.constant 2 : index
    %c0_100 = arith.constant 0 : index
    %c0_101 = arith.constant 0 : index
    %99 = vector.load %arg4[%c2_99, %c0_100, %c0_101] : memref<9x128x128xbf16, #tpu.memory_space<vmem>>, vector<1x128x128xbf16>
    %100 = vector.shape_cast %99 : vector<1x128x128xbf16> to vector<128x128xbf16>
    %cst_102 = arith.constant dense<0.000000e+00> : vector<64x128xf32>
    %101 = tpu.matmul %98, %100, %cst_102 {dimension_numbers = #tpu.dot_dimension_numbers<[1], [0], [0], [1], [0, 0, 1, 1], [], []>} : vector<64x128xbf16>, vector<128x128xbf16>, vector<64x128xf32> -> vector<64x128xf32>
    %102 = arith.addf %96, %101 : vector<64x128xf32>
    %c1_103 = arith.constant 1 : index
    %c0_104 = arith.constant 0 : index
    %c0_105 = arith.constant 0 : index
    %103 = vector.load %arg24[%c1_103, %c0_104, %c0_105] : memref<10x10x128xbf16, #tpu.memory_space<vmem>>, vector<8x8x128xbf16>
    %104 = vector.shape_cast %103 : vector<8x8x128xbf16> to vector<64x128xbf16>
    %c3_106 = arith.constant 3 : index
    %c0_107 = arith.constant 0 : index
    %c0_108 = arith.constant 0 : index
    %105 = vector.load %arg4[%c3_106, %c0_107, %c0_108] : memref<9x128x128xbf16, #tpu.memory_space<vmem>>, vector<1x128x128xbf16>
    %106 = vector.shape_cast %105 : vector<1x128x128xbf16> to vector<128x128xbf16>
    %cst_109 = arith.constant dense<0.000000e+00> : vector<64x128xf32>
    %107 = tpu.matmul %104, %106, %cst_109 {dimension_numbers = #tpu.dot_dimension_numbers<[1], [0], [0], [1], [0, 0, 1, 1], [], []>} : vector<64x128xbf16>, vector<128x128xbf16>, vector<64x128xf32> -> vector<64x128xf32>
    %108 = arith.addf %102, %107 : vector<64x128xf32>
    %c1_110 = arith.constant 1 : index
    %c1_111 = arith.constant 1 : index
    %c0_112 = arith.constant 0 : index
    %109 = vector.load %arg24[%c1_110, %c1_111, %c0_112] : memref<10x10x128xbf16, #tpu.memory_space<vmem>>, vector<8x8x128xbf16>
    %110 = vector.shape_cast %109 : vector<8x8x128xbf16> to vector<64x128xbf16>
    %c4_113 = arith.constant 4 : index
    %c0_114 = arith.constant 0 : index
    %c0_115 = arith.constant 0 : index
    %111 = vector.load %arg4[%c4_113, %c0_114, %c0_115] : memref<9x128x128xbf16, #tpu.memory_space<vmem>>, vector<1x128x128xbf16>
    %112 = vector.shape_cast %111 : vector<1x128x128xbf16> to vector<128x128xbf16>
    %cst_116 = arith.constant dense<0.000000e+00> : vector<64x128xf32>
    %113 = tpu.matmul %110, %112, %cst_116 {dimension_numbers = #tpu.dot_dimension_numbers<[1], [0], [0], [1], [0, 0, 1, 1], [], []>} : vector<64x128xbf16>, vector<128x128xbf16>, vector<64x128xf32> -> vector<64x128xf32>
    %114 = arith.addf %108, %113 : vector<64x128xf32>
    %c1_117 = arith.constant 1 : index
    %c2_118 = arith.constant 2 : index
    %c0_119 = arith.constant 0 : index
    %115 = vector.load %arg24[%c1_117, %c2_118, %c0_119] : memref<10x10x128xbf16, #tpu.memory_space<vmem>>, vector<8x8x128xbf16>
    %116 = vector.shape_cast %115 : vector<8x8x128xbf16> to vector<64x128xbf16>
    %c5_120 = arith.constant 5 : index
    %c0_121 = arith.constant 0 : index
    %c0_122 = arith.constant 0 : index
    %117 = vector.load %arg4[%c5_120, %c0_121, %c0_122] : memref<9x128x128xbf16, #tpu.memory_space<vmem>>, vector<1x128x128xbf16>
    %118 = vector.shape_cast %117 : vector<1x128x128xbf16> to vector<128x128xbf16>
    %cst_123 = arith.constant dense<0.000000e+00> : vector<64x128xf32>
    %119 = tpu.matmul %116, %118, %cst_123 {dimension_numbers = #tpu.dot_dimension_numbers<[1], [0], [0], [1], [0, 0, 1, 1], [], []>} : vector<64x128xbf16>, vector<128x128xbf16>, vector<64x128xf32> -> vector<64x128xf32>
    %120 = arith.addf %114, %119 : vector<64x128xf32>
    %c2_124 = arith.constant 2 : index
    %c0_125 = arith.constant 0 : index
    %c0_126 = arith.constant 0 : index
    %121 = vector.load %arg24[%c2_124, %c0_125, %c0_126] : memref<10x10x128xbf16, #tpu.memory_space<vmem>>, vector<8x8x128xbf16>
    %122 = vector.shape_cast %121 : vector<8x8x128xbf16> to vector<64x128xbf16>
    %c6_127 = arith.constant 6 : index
    %c0_128 = arith.constant 0 : index
    %c0_129 = arith.constant 0 : index
    %123 = vector.load %arg4[%c6_127, %c0_128, %c0_129] : memref<9x128x128xbf16, #tpu.memory_space<vmem>>, vector<1x128x128xbf16>
    %124 = vector.shape_cast %123 : vector<1x128x128xbf16> to vector<128x128xbf16>
    %cst_130 = arith.constant dense<0.000000e+00> : vector<64x128xf32>
    %125 = tpu.matmul %122, %124, %cst_130 {dimension_numbers = #tpu.dot_dimension_numbers<[1], [0], [0], [1], [0, 0, 1, 1], [], []>} : vector<64x128xbf16>, vector<128x128xbf16>, vector<64x128xf32> -> vector<64x128xf32>
    %126 = arith.addf %120, %125 : vector<64x128xf32>
    %c2_131 = arith.constant 2 : index
    %c1_132 = arith.constant 1 : index
    %c0_133 = arith.constant 0 : index
    %127 = vector.load %arg24[%c2_131, %c1_132, %c0_133] : memref<10x10x128xbf16, #tpu.memory_space<vmem>>, vector<8x8x128xbf16>
    %128 = vector.shape_cast %127 : vector<8x8x128xbf16> to vector<64x128xbf16>
    %c7_134 = arith.constant 7 : index
    %c0_135 = arith.constant 0 : index
    %c0_136 = arith.constant 0 : index
    %129 = vector.load %arg4[%c7_134, %c0_135, %c0_136] : memref<9x128x128xbf16, #tpu.memory_space<vmem>>, vector<1x128x128xbf16>
    %130 = vector.shape_cast %129 : vector<1x128x128xbf16> to vector<128x128xbf16>
    %cst_137 = arith.constant dense<0.000000e+00> : vector<64x128xf32>
    %131 = tpu.matmul %128, %130, %cst_137 {dimension_numbers = #tpu.dot_dimension_numbers<[1], [0], [0], [1], [0, 0, 1, 1], [], []>} : vector<64x128xbf16>, vector<128x128xbf16>, vector<64x128xf32> -> vector<64x128xf32>
    %132 = arith.addf %126, %131 : vector<64x128xf32>
    %c2_138 = arith.constant 2 : index
    %c2_139 = arith.constant 2 : index
    %c0_140 = arith.constant 0 : index
    %133 = vector.load %arg24[%c2_138, %c2_139, %c0_140] : memref<10x10x128xbf16, #tpu.memory_space<vmem>>, vector<8x8x128xbf16>
    %134 = vector.shape_cast %133 : vector<8x8x128xbf16> to vector<64x128xbf16>
    %c8_141 = arith.constant 8 : index
    %c0_142 = arith.constant 0 : index
    %c0_143 = arith.constant 0 : index
    %135 = vector.load %arg4[%c8_141, %c0_142, %c0_143] : memref<9x128x128xbf16, #tpu.memory_space<vmem>>, vector<1x128x128xbf16>
    %136 = vector.shape_cast %135 : vector<1x128x128xbf16> to vector<128x128xbf16>
    %cst_144 = arith.constant dense<0.000000e+00> : vector<64x128xf32>
    %137 = tpu.matmul %134, %136, %cst_144 {dimension_numbers = #tpu.dot_dimension_numbers<[1], [0], [0], [1], [0, 0, 1, 1], [], []>} : vector<64x128xbf16>, vector<128x128xbf16>, vector<64x128xf32> -> vector<64x128xf32>
    %138 = arith.addf %132, %137 : vector<64x128xf32>
    %c0_145 = arith.constant 0 : index
    %c0_146 = arith.constant 0 : index
    %139 = vector.load %arg5[%c0_145, %c0_146] : memref<2x128xf32, #tpu.memory_space<vmem>>, vector<2x128xf32>
    %140 = vector.extract_strided_slice %139 {offsets = [0, 0], sizes = [1, 128], strides = [1, 1]} : vector<2x128xf32> to vector<1x128xf32>
    %141 = vector.broadcast %140 : vector<1x128xf32> to vector<64x128xf32>
    %142 = arith.mulf %138, %141 : vector<64x128xf32>
    %143 = vector.extract_strided_slice %139 {offsets = [1, 0], sizes = [1, 128], strides = [1, 1]} : vector<2x128xf32> to vector<1x128xf32>
    %144 = vector.broadcast %143 : vector<1x128xf32> to vector<64x128xf32>
    %145 = arith.addf %142, %144 : vector<64x128xf32>
    %cst_147 = arith.constant 0.000000e+00 : f32
    %146 = vector.broadcast %cst_147 : f32 to vector<64x128xf32>
    %147 = arith.maximumf %145, %146 : vector<64x128xf32>
    %148 = vector.shape_cast %147 : vector<64x128xf32> to vector<8x8x128xf32>
    %c1_148 = arith.constant 1 : index
    %c1_149 = arith.constant 1 : index
    %c0_150 = arith.constant 0 : index
    %149 = vector.load %arg25[%c1_148, %c1_149, %c0_150] : memref<10x10x128xf32, #tpu.memory_space<vmem>>, vector<8x8x128xf32>
    tpu.vector_store %arg25[%c1_148, %c1_149, %c0_150], %148 {strides = array<i32>} : memref<10x10x128xf32, #tpu.memory_space<vmem>>, vector<8x8x128xf32>,
    %cst_151 = arith.constant 0.000000e+00 : f32
    %150 = vector.broadcast %cst_151 : f32 to vector<64x128xf32>
    %c0_152 = arith.constant 0 : index
    %c0_153 = arith.constant 0 : index
    %c0_154 = arith.constant 0 : index
    %151 = vector.load %arg25[%c0_152, %c0_153, %c0_154] : memref<10x10x128xf32, #tpu.memory_space<vmem>>, vector<8x8x128xf32>
    %152 = vector.shape_cast %151 : vector<8x8x128xf32> to vector<64x128xf32>
    %c0_155 = arith.constant 0 : index
    %c0_156 = arith.constant 0 : index
    %153 = vector.load %arg6[%c0_155, %c0_156] : memref<9x128xf32, #tpu.memory_space<vmem>>, vector<1x128xf32>
    %154 = vector.broadcast %153 : vector<1x128xf32> to vector<64x128xf32>
    %155 = arith.mulf %152, %154 : vector<64x128xf32>
    %156 = arith.addf %150, %155 : vector<64x128xf32>
    %c0_157 = arith.constant 0 : index
    %c1_158 = arith.constant 1 : index
    %c0_159 = arith.constant 0 : index
    %157 = vector.load %arg25[%c0_157, %c1_158, %c0_159] : memref<10x10x128xf32, #tpu.memory_space<vmem>>, vector<8x8x128xf32>
    %158 = vector.shape_cast %157 : vector<8x8x128xf32> to vector<64x128xf32>
    %c1_160 = arith.constant 1 : index
    %c0_161 = arith.constant 0 : index
    %159 = vector.load %arg6[%c1_160, %c0_161] : memref<9x128xf32, #tpu.memory_space<vmem>>, vector<1x128xf32>
    %160 = vector.broadcast %159 : vector<1x128xf32> to vector<64x128xf32>
    %161 = arith.mulf %158, %160 : vector<64x128xf32>
    %162 = arith.addf %156, %161 : vector<64x128xf32>
    %c0_162 = arith.constant 0 : index
    %c2_163 = arith.constant 2 : index
    %c0_164 = arith.constant 0 : index
    %163 = vector.load %arg25[%c0_162, %c2_163, %c0_164] : memref<10x10x128xf32, #tpu.memory_space<vmem>>, vector<8x8x128xf32>
    %164 = vector.shape_cast %163 : vector<8x8x128xf32> to vector<64x128xf32>
    %c2_165 = arith.constant 2 : index
    %c0_166 = arith.constant 0 : index
    %165 = vector.load %arg6[%c2_165, %c0_166] : memref<9x128xf32, #tpu.memory_space<vmem>>, vector<1x128xf32>
    %166 = vector.broadcast %165 : vector<1x128xf32> to vector<64x128xf32>
    %167 = arith.mulf %164, %166 : vector<64x128xf32>
    %168 = arith.addf %162, %167 : vector<64x128xf32>
    %c1_167 = arith.constant 1 : index
    %c0_168 = arith.constant 0 : index
    %c0_169 = arith.constant 0 : index
    %169 = vector.load %arg25[%c1_167, %c0_168, %c0_169] : memref<10x10x128xf32, #tpu.memory_space<vmem>>, vector<8x8x128xf32>
    %170 = vector.shape_cast %169 : vector<8x8x128xf32> to vector<64x128xf32>
    %c3_170 = arith.constant 3 : index
    %c0_171 = arith.constant 0 : index
    %171 = vector.load %arg6[%c3_170, %c0_171] : memref<9x128xf32, #tpu.memory_space<vmem>>, vector<1x128xf32>
    %172 = vector.broadcast %171 : vector<1x128xf32> to vector<64x128xf32>
    %173 = arith.mulf %170, %172 : vector<64x128xf32>
    %174 = arith.addf %168, %173 : vector<64x128xf32>
    %c1_172 = arith.constant 1 : index
    %c1_173 = arith.constant 1 : index
    %c0_174 = arith.constant 0 : index
    %175 = vector.load %arg25[%c1_172, %c1_173, %c0_174] : memref<10x10x128xf32, #tpu.memory_space<vmem>>, vector<8x8x128xf32>
    %176 = vector.shape_cast %175 : vector<8x8x128xf32> to vector<64x128xf32>
    %c4_175 = arith.constant 4 : index
    %c0_176 = arith.constant 0 : index
    %177 = vector.load %arg6[%c4_175, %c0_176] : memref<9x128xf32, #tpu.memory_space<vmem>>, vector<1x128xf32>
    %178 = vector.broadcast %177 : vector<1x128xf32> to vector<64x128xf32>
    %179 = arith.mulf %176, %178 : vector<64x128xf32>
    %180 = arith.addf %174, %179 : vector<64x128xf32>
    %c1_177 = arith.constant 1 : index
    %c2_178 = arith.constant 2 : index
    %c0_179 = arith.constant 0 : index
    %181 = vector.load %arg25[%c1_177, %c2_178, %c0_179] : memref<10x10x128xf32, #tpu.memory_space<vmem>>, vector<8x8x128xf32>
    %182 = vector.shape_cast %181 : vector<8x8x128xf32> to vector<64x128xf32>
    %c5_180 = arith.constant 5 : index
    %c0_181 = arith.constant 0 : index
    %183 = vector.load %arg6[%c5_180, %c0_181] : memref<9x128xf32, #tpu.memory_space<vmem>>, vector<1x128xf32>
    %184 = vector.broadcast %183 : vector<1x128xf32> to vector<64x128xf32>
    %185 = arith.mulf %182, %184 : vector<64x128xf32>
    %186 = arith.addf %180, %185 : vector<64x128xf32>
    %c2_182 = arith.constant 2 : index
    %c0_183 = arith.constant 0 : index
    %c0_184 = arith.constant 0 : index
    %187 = vector.load %arg25[%c2_182, %c0_183, %c0_184] : memref<10x10x128xf32, #tpu.memory_space<vmem>>, vector<8x8x128xf32>
    %188 = vector.shape_cast %187 : vector<8x8x128xf32> to vector<64x128xf32>
    %c6_185 = arith.constant 6 : index
    %c0_186 = arith.constant 0 : index
    %189 = vector.load %arg6[%c6_185, %c0_186] : memref<9x128xf32, #tpu.memory_space<vmem>>, vector<1x128xf32>
    %190 = vector.broadcast %189 : vector<1x128xf32> to vector<64x128xf32>
    %191 = arith.mulf %188, %190 : vector<64x128xf32>
    %192 = arith.addf %186, %191 : vector<64x128xf32>
    %c2_187 = arith.constant 2 : index
    %c1_188 = arith.constant 1 : index
    %c0_189 = arith.constant 0 : index
    %193 = vector.load %arg25[%c2_187, %c1_188, %c0_189] : memref<10x10x128xf32, #tpu.memory_space<vmem>>, vector<8x8x128xf32>
    %194 = vector.shape_cast %193 : vector<8x8x128xf32> to vector<64x128xf32>
    %c7_190 = arith.constant 7 : index
    %c0_191 = arith.constant 0 : index
    %195 = vector.load %arg6[%c7_190, %c0_191] : memref<9x128xf32, #tpu.memory_space<vmem>>, vector<1x128xf32>
    %196 = vector.broadcast %195 : vector<1x128xf32> to vector<64x128xf32>
    %197 = arith.mulf %194, %196 : vector<64x128xf32>
    %198 = arith.addf %192, %197 : vector<64x128xf32>
    %c2_192 = arith.constant 2 : index
    %c2_193 = arith.constant 2 : index
    %c0_194 = arith.constant 0 : index
    %199 = vector.load %arg25[%c2_192, %c2_193, %c0_194] : memref<10x10x128xf32, #tpu.memory_space<vmem>>, vector<8x8x128xf32>
    %200 = vector.shape_cast %199 : vector<8x8x128xf32> to vector<64x128xf32>
    %c8_195 = arith.constant 8 : index
    %c0_196 = arith.constant 0 : index
    %201 = vector.load %arg6[%c8_195, %c0_196] : memref<9x128xf32, #tpu.memory_space<vmem>>, vector<1x128xf32>
    %202 = vector.broadcast %201 : vector<1x128xf32> to vector<64x128xf32>
    %203 = arith.mulf %200, %202 : vector<64x128xf32>
    %204 = arith.addf %198, %203 : vector<64x128xf32>
    %c0_197 = arith.constant 0 : index
    %c0_198 = arith.constant 0 : index
    %205 = vector.load %arg7[%c0_197, %c0_198] : memref<2x128xf32, #tpu.memory_space<vmem>>, vector<2x128xf32>
    %206 = vector.extract_strided_slice %205 {offsets = [0, 0], sizes = [1, 128], strides = [1, 1]} : vector<2x128xf32> to vector<1x128xf32>
    %207 = vector.broadcast %206 : vector<1x128xf32> to vector<64x128xf32>
    %208 = arith.mulf %204, %207 : vector<64x128xf32>
    %209 = vector.extract_strided_slice %205 {offsets = [1, 0], sizes = [1, 128], strides = [1, 1]} : vector<2x128xf32> to vector<1x128xf32>
    %210 = vector.broadcast %209 : vector<1x128xf32> to vector<64x128xf32>
    %211 = arith.addf %208, %210 : vector<64x128xf32>
    %212 = arith.truncf %211 : vector<64x128xf32> to vector<64x128xbf16>
    %c0_199 = arith.constant 0 : index
    %c0_200 = arith.constant 0 : index
    %213 = vector.load %arg8[%c0_199, %c0_200] : memref<128x128xbf16, #tpu.memory_space<vmem>>, vector<128x128xbf16>
    %cst_201 = arith.constant dense<0.000000e+00> : vector<64x128xf32>
    %214 = tpu.matmul %212, %213, %cst_201 {dimension_numbers = #tpu.dot_dimension_numbers<[1], [0], [0], [1], [0, 0, 1, 1], [], []>} : vector<64x128xbf16>, vector<128x128xbf16>, vector<64x128xf32> -> vector<64x128xf32>
    %c0_202 = arith.constant 0 : index
    %c0_203 = arith.constant 0 : index
    %215 = vector.load %arg9[%c0_202, %c0_203] : memref<2x128xf32, #tpu.memory_space<vmem>>, vector<2x128xf32>
    %216 = vector.extract_strided_slice %215 {offsets = [0, 0], sizes = [1, 128], strides = [1, 1]} : vector<2x128xf32> to vector<1x128xf32>
    %217 = vector.broadcast %216 : vector<1x128xf32> to vector<64x128xf32>
    %218 = arith.mulf %214, %217 : vector<64x128xf32>
    %219 = vector.extract_strided_slice %215 {offsets = [1, 0], sizes = [1, 128], strides = [1, 1]} : vector<2x128xf32> to vector<1x128xf32>
    %220 = vector.broadcast %219 : vector<1x128xf32> to vector<64x128xf32>
    %221 = arith.addf %218, %220 : vector<64x128xf32>
    %cst_204 = arith.constant 0.000000e+00 : f32
    %222 = vector.broadcast %cst_204 : f32 to vector<64x128xf32>
    %223 = arith.maximumf %221, %222 : vector<64x128xf32>
    %224 = vector.shape_cast %223 : vector<64x128xf32> to vector<8x8x128xf32>
    %c2_205 = arith.constant 2 : index
    %c2_206 = arith.constant 2 : index
    %c0_207 = arith.constant 0 : index
    %225 = vector.load %arg26[%c2_205, %c2_206, %c0_207] : memref<12x12x128xf32, #tpu.memory_space<vmem>>, vector<8x8x128xf32>
    tpu.vector_store %arg26[%c2_205, %c2_206, %c0_207], %224 {strides = array<i32>} : memref<12x12x128xf32, #tpu.memory_space<vmem>>, vector<8x8x128xf32>,
    %226 = vector.shape_cast %223 : vector<64x128xf32> to vector<1x8x8x128xf32>
    %227 = arith.truncf %226 : vector<1x8x8x128xf32> to vector<1x8x8x128xbf16>
    %c0_208 = arith.constant 0 : index
    %c0_209 = arith.constant 0 : index
    %c0_210 = arith.constant 0 : index
    %c0_211 = arith.constant 0 : index
    %228 = vector.load %arg22[%c0_208, %c0_209, %c0_210, %c0_211] : memref<1x8x8x128xbf16, #tpu.memory_space<vmem>>, vector<1x8x8x128xbf16>
    tpu.vector_store %arg22[%c0_208, %c0_209, %c0_210, %c0_211], %227 {strides = array<i32>} : memref<1x8x8x128xbf16, #tpu.memory_space<vmem>>, vector<1x8x8x128xbf16>,
    %cst_212 = arith.constant 0.000000e+00 : f32
    %229 = vector.broadcast %cst_212 : f32 to vector<64x128xf32>
    %c0_213 = arith.constant 0 : index
    %c0_214 = arith.constant 0 : index
    %c0_215 = arith.constant 0 : index
    %230 = vector.load %arg26[%c0_213, %c0_214, %c0_215] : memref<12x12x128xf32, #tpu.memory_space<vmem>>, vector<8x8x128xf32>
    %231 = vector.shape_cast %230 : vector<8x8x128xf32> to vector<64x128xf32>
    %c0_216 = arith.constant 0 : index
    %c0_217 = arith.constant 0 : index
    %232 = vector.load %arg10[%c0_216, %c0_217] : memref<9x128xf32, #tpu.memory_space<vmem>>, vector<1x128xf32>
    %233 = vector.broadcast %232 : vector<1x128xf32> to vector<64x128xf32>
    %234 = arith.mulf %231, %233 : vector<64x128xf32>
    %235 = arith.addf %229, %234 : vector<64x128xf32>
    %c0_218 = arith.constant 0 : index
    %c2_219 = arith.constant 2 : index
    %c0_220 = arith.constant 0 : index
    %236 = vector.load %arg26[%c0_218, %c2_219, %c0_220] : memref<12x12x128xf32, #tpu.memory_space<vmem>>, vector<8x8x128xf32>
    %237 = vector.shape_cast %236 : vector<8x8x128xf32> to vector<64x128xf32>
    %c1_221 = arith.constant 1 : index
    %c0_222 = arith.constant 0 : index
    %238 = vector.load %arg10[%c1_221, %c0_222] : memref<9x128xf32, #tpu.memory_space<vmem>>, vector<1x128xf32>
    %239 = vector.broadcast %238 : vector<1x128xf32> to vector<64x128xf32>
    %240 = arith.mulf %237, %239 : vector<64x128xf32>
    %241 = arith.addf %235, %240 : vector<64x128xf32>
    %c0_223 = arith.constant 0 : index
    %c4_224 = arith.constant 4 : index
    %c0_225 = arith.constant 0 : index
    %242 = vector.load %arg26[%c0_223, %c4_224, %c0_225] : memref<12x12x128xf32, #tpu.memory_space<vmem>>, vector<8x8x128xf32>
    %243 = vector.shape_cast %242 : vector<8x8x128xf32> to vector<64x128xf32>
    %c2_226 = arith.constant 2 : index
    %c0_227 = arith.constant 0 : index
    %244 = vector.load %arg10[%c2_226, %c0_227] : memref<9x128xf32, #tpu.memory_space<vmem>>, vector<1x128xf32>
    %245 = vector.broadcast %244 : vector<1x128xf32> to vector<64x128xf32>
    %246 = arith.mulf %243, %245 : vector<64x128xf32>
    %247 = arith.addf %241, %246 : vector<64x128xf32>
    %c2_228 = arith.constant 2 : index
    %c0_229 = arith.constant 0 : index
    %c0_230 = arith.constant 0 : index
    %248 = vector.load %arg26[%c2_228, %c0_229, %c0_230] : memref<12x12x128xf32, #tpu.memory_space<vmem>>, vector<8x8x128xf32>
    %249 = vector.shape_cast %248 : vector<8x8x128xf32> to vector<64x128xf32>
    %c3_231 = arith.constant 3 : index
    %c0_232 = arith.constant 0 : index
    %250 = vector.load %arg10[%c3_231, %c0_232] : memref<9x128xf32, #tpu.memory_space<vmem>>, vector<1x128xf32>
    %251 = vector.broadcast %250 : vector<1x128xf32> to vector<64x128xf32>
    %252 = arith.mulf %249, %251 : vector<64x128xf32>
    %253 = arith.addf %247, %252 : vector<64x128xf32>
    %c2_233 = arith.constant 2 : index
    %c2_234 = arith.constant 2 : index
    %c0_235 = arith.constant 0 : index
    %254 = vector.load %arg26[%c2_233, %c2_234, %c0_235] : memref<12x12x128xf32, #tpu.memory_space<vmem>>, vector<8x8x128xf32>
    %255 = vector.shape_cast %254 : vector<8x8x128xf32> to vector<64x128xf32>
    %c4_236 = arith.constant 4 : index
    %c0_237 = arith.constant 0 : index
    %256 = vector.load %arg10[%c4_236, %c0_237] : memref<9x128xf32, #tpu.memory_space<vmem>>, vector<1x128xf32>
    %257 = vector.broadcast %256 : vector<1x128xf32> to vector<64x128xf32>
    %258 = arith.mulf %255, %257 : vector<64x128xf32>
    %259 = arith.addf %253, %258 : vector<64x128xf32>
    %c2_238 = arith.constant 2 : index
    %c4_239 = arith.constant 4 : index
    %c0_240 = arith.constant 0 : index
    %260 = vector.load %arg26[%c2_238, %c4_239, %c0_240] : memref<12x12x128xf32, #tpu.memory_space<vmem>>, vector<8x8x128xf32>
    %261 = vector.shape_cast %260 : vector<8x8x128xf32> to vector<64x128xf32>
    %c5_241 = arith.constant 5 : index
    %c0_242 = arith.constant 0 : index
    %262 = vector.load %arg10[%c5_241, %c0_242] : memref<9x128xf32, #tpu.memory_space<vmem>>, vector<1x128xf32>
    %263 = vector.broadcast %262 : vector<1x128xf32> to vector<64x128xf32>
    %264 = arith.mulf %261, %263 : vector<64x128xf32>
    %265 = arith.addf %259, %264 : vector<64x128xf32>
    %c4_243 = arith.constant 4 : index
    %c0_244 = arith.constant 0 : index
    %c0_245 = arith.constant 0 : index
    %266 = vector.load %arg26[%c4_243, %c0_244, %c0_245] : memref<12x12x128xf32, #tpu.memory_space<vmem>>, vector<8x8x128xf32>
    %267 = vector.shape_cast %266 : vector<8x8x128xf32> to vector<64x128xf32>
    %c6_246 = arith.constant 6 : index
    %c0_247 = arith.constant 0 : index
    %268 = vector.load %arg10[%c6_246, %c0_247] : memref<9x128xf32, #tpu.memory_space<vmem>>, vector<1x128xf32>
    %269 = vector.broadcast %268 : vector<1x128xf32> to vector<64x128xf32>
    %270 = arith.mulf %267, %269 : vector<64x128xf32>
    %271 = arith.addf %265, %270 : vector<64x128xf32>
    %c4_248 = arith.constant 4 : index
    %c2_249 = arith.constant 2 : index
    %c0_250 = arith.constant 0 : index
    %272 = vector.load %arg26[%c4_248, %c2_249, %c0_250] : memref<12x12x128xf32, #tpu.memory_space<vmem>>, vector<8x8x128xf32>
    %273 = vector.shape_cast %272 : vector<8x8x128xf32> to vector<64x128xf32>
    %c7_251 = arith.constant 7 : index
    %c0_252 = arith.constant 0 : index
    %274 = vector.load %arg10[%c7_251, %c0_252] : memref<9x128xf32, #tpu.memory_space<vmem>>, vector<1x128xf32>
    %275 = vector.broadcast %274 : vector<1x128xf32> to vector<64x128xf32>
    %276 = arith.mulf %273, %275 : vector<64x128xf32>
    %277 = arith.addf %271, %276 : vector<64x128xf32>
    %c4_253 = arith.constant 4 : index
    %c4_254 = arith.constant 4 : index
    %c0_255 = arith.constant 0 : index
    %278 = vector.load %arg26[%c4_253, %c4_254, %c0_255] : memref<12x12x128xf32, #tpu.memory_space<vmem>>, vector<8x8x128xf32>
    %279 = vector.shape_cast %278 : vector<8x8x128xf32> to vector<64x128xf32>
    %c8_256 = arith.constant 8 : index
    %c0_257 = arith.constant 0 : index
    %280 = vector.load %arg10[%c8_256, %c0_257] : memref<9x128xf32, #tpu.memory_space<vmem>>, vector<1x128xf32>
    %281 = vector.broadcast %280 : vector<1x128xf32> to vector<64x128xf32>
    %282 = arith.mulf %279, %281 : vector<64x128xf32>
    %283 = arith.addf %277, %282 : vector<64x128xf32>
    %c0_258 = arith.constant 0 : index
    %c0_259 = arith.constant 0 : index
    %284 = vector.load %arg11[%c0_258, %c0_259] : memref<2x128xf32, #tpu.memory_space<vmem>>, vector<2x128xf32>
    %285 = vector.extract_strided_slice %284 {offsets = [0, 0], sizes = [1, 128], strides = [1, 1]} : vector<2x128xf32> to vector<1x128xf32>
    %286 = vector.broadcast %285 : vector<1x128xf32> to vector<64x128xf32>
    %287 = arith.mulf %283, %286 : vector<64x128xf32>
    %288 = vector.extract_strided_slice %284 {offsets = [1, 0], sizes = [1, 128], strides = [1, 1]} : vector<2x128xf32> to vector<1x128xf32>
    %289 = vector.broadcast %288 : vector<1x128xf32> to vector<64x128xf32>
    %290 = arith.addf %287, %289 : vector<64x128xf32>
    %291 = arith.truncf %290 : vector<64x128xf32> to vector<64x128xbf16>
    %c0_260 = arith.constant 0 : index
    %c0_261 = arith.constant 0 : index
    %292 = vector.load %arg12[%c0_260, %c0_261] : memref<128x128xbf16, #tpu.memory_space<vmem>>, vector<128x128xbf16>
    %cst_262 = arith.constant dense<0.000000e+00> : vector<64x128xf32>
    %293 = tpu.matmul %291, %292, %cst_262 {dimension_numbers = #tpu.dot_dimension_numbers<[1], [0], [0], [1], [0, 0, 1, 1], [], []>} : vector<64x128xbf16>, vector<128x128xbf16>, vector<64x128xf32> -> vector<64x128xf32>
    %c0_263 = arith.constant 0 : index
    %c0_264 = arith.constant 0 : index
    %294 = vector.load %arg13[%c0_263, %c0_264] : memref<2x128xf32, #tpu.memory_space<vmem>>, vector<2x128xf32>
    %295 = vector.extract_strided_slice %294 {offsets = [0, 0], sizes = [1, 128], strides = [1, 1]} : vector<2x128xf32> to vector<1x128xf32>
    %296 = vector.broadcast %295 : vector<1x128xf32> to vector<64x128xf32>
    %297 = arith.mulf %293, %296 : vector<64x128xf32>
    %298 = vector.extract_strided_slice %294 {offsets = [1, 0], sizes = [1, 128], strides = [1, 1]} : vector<2x128xf32> to vector<1x128xf32>
    %299 = vector.broadcast %298 : vector<1x128xf32> to vector<64x128xf32>
    %300 = arith.addf %297, %299 : vector<64x128xf32>
    %cst_265 = arith.constant 0.000000e+00 : f32
    %301 = vector.broadcast %cst_265 : f32 to vector<64x128xf32>
    %302 = arith.maximumf %300, %301 : vector<64x128xf32>
    %303 = arith.truncf %302 : vector<64x128xf32> to vector<64x128xbf16>
    %304 = vector.shape_cast %303 : vector<64x128xbf16> to vector<8x8x128xbf16>
    %c6_266 = arith.constant 6 : index
    %c6_267 = arith.constant 6 : index
    %c0_268 = arith.constant 0 : index
    %305 = vector.load %arg27[%c6_266, %c6_267, %c0_268] : memref<20x20x128xbf16, #tpu.memory_space<vmem>>, vector<8x8x128xbf16>
    tpu.vector_store %arg27[%c6_266, %c6_267, %c0_268], %304 {strides = array<i32>} : memref<20x20x128xbf16, #tpu.memory_space<vmem>>, vector<8x8x128xbf16>,
    %c0_269 = arith.constant 0 : index
    %c0_270 = arith.constant 0 : index
    %306 = vector.load %arg14[%c0_269, %c0_270] : memref<128x128xbf16, #tpu.memory_space<vmem>>, vector<128x128xbf16>
    %cst_271 = arith.constant dense<0.000000e+00> : vector<64x128xf32>
    %307 = tpu.matmul %303, %306, %cst_271 {dimension_numbers = #tpu.dot_dimension_numbers<[1], [0], [0], [1], [0, 0, 1, 1], [], []>} : vector<64x128xbf16>, vector<128x128xbf16>, vector<64x128xf32> -> vector<64x128xf32>
    %c0_272 = arith.constant 0 : index
    %c0_273 = arith.constant 0 : index
    %c0_274 = arith.constant 0 : index
    %308 = vector.load %arg27[%c0_272, %c0_273, %c0_274] : memref<20x20x128xbf16, #tpu.memory_space<vmem>>, vector<8x8x128xbf16>
    %309 = vector.shape_cast %308 : vector<8x8x128xbf16> to vector<64x128xbf16>
    %c0_275 = arith.constant 0 : index
    %c0_276 = arith.constant 0 : index
    %c0_277 = arith.constant 0 : index
    %310 = vector.load %arg15[%c0_275, %c0_276, %c0_277] : memref<8x128x128xbf16, #tpu.memory_space<vmem>>, vector<1x128x128xbf16>
    %311 = vector.shape_cast %310 : vector<1x128x128xbf16> to vector<128x128xbf16>
    %cst_278 = arith.constant dense<0.000000e+00> : vector<64x128xf32>
    %312 = tpu.matmul %309, %311, %cst_278 {dimension_numbers = #tpu.dot_dimension_numbers<[1], [0], [0], [1], [0, 0, 1, 1], [], []>} : vector<64x128xbf16>, vector<128x128xbf16>, vector<64x128xf32> -> vector<64x128xf32>
    %313 = arith.addf %307, %312 : vector<64x128xf32>
    %c0_279 = arith.constant 0 : index
    %c6_280 = arith.constant 6 : index
    %c0_281 = arith.constant 0 : index
    %314 = vector.load %arg27[%c0_279, %c6_280, %c0_281] : memref<20x20x128xbf16, #tpu.memory_space<vmem>>, vector<8x8x128xbf16>
    %315 = vector.shape_cast %314 : vector<8x8x128xbf16> to vector<64x128xbf16>
    %c1_282 = arith.constant 1 : index
    %c0_283 = arith.constant 0 : index
    %c0_284 = arith.constant 0 : index
    %316 = vector.load %arg15[%c1_282, %c0_283, %c0_284] : memref<8x128x128xbf16, #tpu.memory_space<vmem>>, vector<1x128x128xbf16>
    %317 = vector.shape_cast %316 : vector<1x128x128xbf16> to vector<128x128xbf16>
    %cst_285 = arith.constant dense<0.000000e+00> : vector<64x128xf32>
    %318 = tpu.matmul %315, %317, %cst_285 {dimension_numbers = #tpu.dot_dimension_numbers<[1], [0], [0], [1], [0, 0, 1, 1], [], []>} : vector<64x128xbf16>, vector<128x128xbf16>, vector<64x128xf32> -> vector<64x128xf32>
    %319 = arith.addf %313, %318 : vector<64x128xf32>
    %c0_286 = arith.constant 0 : index
    %c12 = arith.constant 12 : index
    %c0_287 = arith.constant 0 : index
    %320 = vector.load %arg27[%c0_286, %c12, %c0_287] : memref<20x20x128xbf16, #tpu.memory_space<vmem>>, vector<8x8x128xbf16>
    %321 = vector.shape_cast %320 : vector<8x8x128xbf16> to vector<64x128xbf16>
    %c2_288 = arith.constant 2 : index
    %c0_289 = arith.constant 0 : index
    %c0_290 = arith.constant 0 : index
    %322 = vector.load %arg15[%c2_288, %c0_289, %c0_290] : memref<8x128x128xbf16, #tpu.memory_space<vmem>>, vector<1x128x128xbf16>
    %323 = vector.shape_cast %322 : vector<1x128x128xbf16> to vector<128x128xbf16>
    %cst_291 = arith.constant dense<0.000000e+00> : vector<64x128xf32>
    %324 = tpu.matmul %321, %323, %cst_291 {dimension_numbers = #tpu.dot_dimension_numbers<[1], [0], [0], [1], [0, 0, 1, 1], [], []>} : vector<64x128xbf16>, vector<128x128xbf16>, vector<64x128xf32> -> vector<64x128xf32>
    %325 = arith.addf %319, %324 : vector<64x128xf32>
    %c6_292 = arith.constant 6 : index
    %c0_293 = arith.constant 0 : index
    %c0_294 = arith.constant 0 : index
    %326 = vector.load %arg27[%c6_292, %c0_293, %c0_294] : memref<20x20x128xbf16, #tpu.memory_space<vmem>>, vector<8x8x128xbf16>
    %327 = vector.shape_cast %326 : vector<8x8x128xbf16> to vector<64x128xbf16>
    %c3_295 = arith.constant 3 : index
    %c0_296 = arith.constant 0 : index
    %c0_297 = arith.constant 0 : index
    %328 = vector.load %arg15[%c3_295, %c0_296, %c0_297] : memref<8x128x128xbf16, #tpu.memory_space<vmem>>, vector<1x128x128xbf16>
    %329 = vector.shape_cast %328 : vector<1x128x128xbf16> to vector<128x128xbf16>
    %cst_298 = arith.constant dense<0.000000e+00> : vector<64x128xf32>
    %330 = tpu.matmul %327, %329, %cst_298 {dimension_numbers = #tpu.dot_dimension_numbers<[1], [0], [0], [1], [0, 0, 1, 1], [], []>} : vector<64x128xbf16>, vector<128x128xbf16>, vector<64x128xf32> -> vector<64x128xf32>
    %331 = arith.addf %325, %330 : vector<64x128xf32>
    %c6_299 = arith.constant 6 : index
    %c12_300 = arith.constant 12 : index
    %c0_301 = arith.constant 0 : index
    %332 = vector.load %arg27[%c6_299, %c12_300, %c0_301] : memref<20x20x128xbf16, #tpu.memory_space<vmem>>, vector<8x8x128xbf16>
    %333 = vector.shape_cast %332 : vector<8x8x128xbf16> to vector<64x128xbf16>
    %c4_302 = arith.constant 4 : index
    %c0_303 = arith.constant 0 : index
    %c0_304 = arith.constant 0 : index
    %334 = vector.load %arg15[%c4_302, %c0_303, %c0_304] : memref<8x128x128xbf16, #tpu.memory_space<vmem>>, vector<1x128x128xbf16>
    %335 = vector.shape_cast %334 : vector<1x128x128xbf16> to vector<128x128xbf16>
    %cst_305 = arith.constant dense<0.000000e+00> : vector<64x128xf32>
    %336 = tpu.matmul %333, %335, %cst_305 {dimension_numbers = #tpu.dot_dimension_numbers<[1], [0], [0], [1], [0, 0, 1, 1], [], []>} : vector<64x128xbf16>, vector<128x128xbf16>, vector<64x128xf32> -> vector<64x128xf32>
    %337 = arith.addf %331, %336 : vector<64x128xf32>
    %c12_306 = arith.constant 12 : index
    %c0_307 = arith.constant 0 : index
    %c0_308 = arith.constant 0 : index
    %338 = vector.load %arg27[%c12_306, %c0_307, %c0_308] : memref<20x20x128xbf16, #tpu.memory_space<vmem>>, vector<8x8x128xbf16>
    %339 = vector.shape_cast %338 : vector<8x8x128xbf16> to vector<64x128xbf16>
    %c5_309 = arith.constant 5 : index
    %c0_310 = arith.constant 0 : index
    %c0_311 = arith.constant 0 : index
    %340 = vector.load %arg15[%c5_309, %c0_310, %c0_311] : memref<8x128x128xbf16, #tpu.memory_space<vmem>>, vector<1x128x128xbf16>
    %341 = vector.shape_cast %340 : vector<1x128x128xbf16> to vector<128x128xbf16>
    %cst_312 = arith.constant dense<0.000000e+00> : vector<64x128xf32>
    %342 = tpu.matmul %339, %341, %cst_312 {dimension_numbers = #tpu.dot_dimension_numbers<[1], [0], [0], [1], [0, 0, 1, 1], [], []>} : vector<64x128xbf16>, vector<128x128xbf16>, vector<64x128xf32> -> vector<64x128xf32>
    %343 = arith.addf %337, %342 : vector<64x128xf32>
    %c12_313 = arith.constant 12 : index
    %c6_314 = arith.constant 6 : index
    %c0_315 = arith.constant 0 : index
    %344 = vector.load %arg27[%c12_313, %c6_314, %c0_315] : memref<20x20x128xbf16, #tpu.memory_space<vmem>>, vector<8x8x128xbf16>
    %345 = vector.shape_cast %344 : vector<8x8x128xbf16> to vector<64x128xbf16>
    %c6_316 = arith.constant 6 : index
    %c0_317 = arith.constant 0 : index
    %c0_318 = arith.constant 0 : index
    %346 = vector.load %arg15[%c6_316, %c0_317, %c0_318] : memref<8x128x128xbf16, #tpu.memory_space<vmem>>, vector<1x128x128xbf16>
    %347 = vector.shape_cast %346 : vector<1x128x128xbf16> to vector<128x128xbf16>
    %cst_319 = arith.constant dense<0.000000e+00> : vector<64x128xf32>
    %348 = tpu.matmul %345, %347, %cst_319 {dimension_numbers = #tpu.dot_dimension_numbers<[1], [0], [0], [1], [0, 0, 1, 1], [], []>} : vector<64x128xbf16>, vector<128x128xbf16>, vector<64x128xf32> -> vector<64x128xf32>
    %349 = arith.addf %343, %348 : vector<64x128xf32>
    %c12_320 = arith.constant 12 : index
    %c12_321 = arith.constant 12 : index
    %c0_322 = arith.constant 0 : index
    %350 = vector.load %arg27[%c12_320, %c12_321, %c0_322] : memref<20x20x128xbf16, #tpu.memory_space<vmem>>, vector<8x8x128xbf16>
    %351 = vector.shape_cast %350 : vector<8x8x128xbf16> to vector<64x128xbf16>
    %c7_323 = arith.constant 7 : index
    %c0_324 = arith.constant 0 : index
    %c0_325 = arith.constant 0 : index
    %352 = vector.load %arg15[%c7_323, %c0_324, %c0_325] : memref<8x128x128xbf16, #tpu.memory_space<vmem>>, vector<1x128x128xbf16>
    %353 = vector.shape_cast %352 : vector<1x128x128xbf16> to vector<128x128xbf16>
    %cst_326 = arith.constant dense<0.000000e+00> : vector<64x128xf32>
    %354 = tpu.matmul %351, %353, %cst_326 {dimension_numbers = #tpu.dot_dimension_numbers<[1], [0], [0], [1], [0, 0, 1, 1], [], []>} : vector<64x128xbf16>, vector<128x128xbf16>, vector<64x128xf32> -> vector<64x128xf32>
    %355 = arith.addf %349, %354 : vector<64x128xf32>
    %c0_327 = arith.constant 0 : index
    %c0_328 = arith.constant 0 : index
    %356 = vector.load %arg17[%c0_327, %c0_328] : memref<2x128xf32, #tpu.memory_space<vmem>>, vector<2x128xf32>
    %357 = vector.extract_strided_slice %356 {offsets = [0, 0], sizes = [1, 128], strides = [1, 1]} : vector<2x128xf32> to vector<1x128xf32>
    %358 = vector.broadcast %357 : vector<1x128xf32> to vector<64x128xf32>
    %359 = arith.mulf %355, %358 : vector<64x128xf32>
    %360 = vector.extract_strided_slice %356 {offsets = [1, 0], sizes = [1, 128], strides = [1, 1]} : vector<2x128xf32> to vector<1x128xf32>
    %361 = vector.broadcast %360 : vector<1x128xf32> to vector<64x128xf32>
    %362 = arith.addf %359, %361 : vector<64x128xf32>
    %cst_329 = arith.constant 0.000000e+00 : f32
    %363 = vector.broadcast %cst_329 : f32 to vector<64x128xf32>
    %364 = arith.maximumf %362, %363 : vector<64x128xf32>
    %cst_330 = arith.constant dense<0.000000e+00> : vector<128xf32>
    %365 = vector.multi_reduction <add>, %302, %cst_330 [0] : vector<64x128xf32> to vector<128xf32>
    %366 = vector.shape_cast %365 : vector<128xf32> to vector<1x128xf32>
    %cst_331 = arith.constant 6.400000e+01 : f32
    %367 = vector.broadcast %cst_331 : f32 to vector<1x128xf32>
    %368 = arith.divf %366, %367 : vector<1x128xf32>
    %369 = arith.truncf %368 : vector<1x128xf32> to vector<1x128xbf16>
    %c0_332 = arith.constant 0 : index
    %c0_333 = arith.constant 0 : index
    %370 = vector.load %arg16[%c0_332, %c0_333] : memref<128x128xbf16, #tpu.memory_space<vmem>>, vector<128x128xbf16>
    %cst_334 = arith.constant dense<0.000000e+00> : vector<1x128xf32>
    %371 = tpu.matmul %369, %370, %cst_334 {dimension_numbers = #tpu.dot_dimension_numbers<[1], [0], [0], [1], [0, 0, 1, 1], [], []>} : vector<1x128xbf16>, vector<128x128xbf16>, vector<1x128xf32> -> vector<1x128xf32>
    %c0_335 = arith.constant 0 : index
    %c0_336 = arith.constant 0 : index
    %372 = vector.load %arg18[%c0_335, %c0_336] : memref<2x128xf32, #tpu.memory_space<vmem>>, vector<2x128xf32>
    %373 = vector.extract_strided_slice %372 {offsets = [0, 0], sizes = [1, 128], strides = [1, 1]} : vector<2x128xf32> to vector<1x128xf32>
    %374 = arith.mulf %371, %373 : vector<1x128xf32>
    %375 = vector.extract_strided_slice %372 {offsets = [1, 0], sizes = [1, 128], strides = [1, 1]} : vector<2x128xf32> to vector<1x128xf32>
    %376 = arith.addf %374, %375 : vector<1x128xf32>
    %cst_337 = arith.constant 0.000000e+00 : f32
    %377 = vector.broadcast %cst_337 : f32 to vector<1x128xf32>
    %378 = arith.maximumf %376, %377 : vector<1x128xf32>
    %379 = arith.truncf %364 : vector<64x128xf32> to vector<64x128xbf16>
    %c0_338 = arith.constant 0 : index
    %c0_339 = arith.constant 0 : index
    %380 = vector.load %arg19[%c0_338, %c0_339] : memref<128x128xbf16, #tpu.memory_space<vmem>>, vector<128x128xbf16>
    %cst_340 = arith.constant dense<0.000000e+00> : vector<64x128xf32>
    %381 = tpu.matmul %379, %380, %cst_340 {dimension_numbers = #tpu.dot_dimension_numbers<[1], [0], [0], [1], [0, 0, 1, 1], [], []>} : vector<64x128xbf16>, vector<128x128xbf16>, vector<64x128xf32> -> vector<64x128xf32>
    %382 = arith.truncf %378 : vector<1x128xf32> to vector<1x128xbf16>
    %c0_341 = arith.constant 0 : index
    %c0_342 = arith.constant 0 : index
    %383 = vector.load %arg20[%c0_341, %c0_342] : memref<128x128xbf16, #tpu.memory_space<vmem>>, vector<128x128xbf16>
    %cst_343 = arith.constant dense<0.000000e+00> : vector<1x128xf32>
    %384 = tpu.matmul %382, %383, %cst_343 {dimension_numbers = #tpu.dot_dimension_numbers<[1], [0], [0], [1], [0, 0, 1, 1], [], []>} : vector<1x128xbf16>, vector<128x128xbf16>, vector<1x128xf32> -> vector<1x128xf32>
    %385 = vector.broadcast %384 : vector<1x128xf32> to vector<64x128xf32>
    %386 = arith.addf %381, %385 : vector<64x128xf32>
    %c0_344 = arith.constant 0 : index
    %c0_345 = arith.constant 0 : index
    %387 = vector.load %arg21[%c0_344, %c0_345] : memref<2x128xf32, #tpu.memory_space<vmem>>, vector<2x128xf32>
    %388 = vector.extract_strided_slice %387 {offsets = [0, 0], sizes = [1, 128], strides = [1, 1]} : vector<2x128xf32> to vector<1x128xf32>
    %389 = vector.broadcast %388 : vector<1x128xf32> to vector<64x128xf32>
    %390 = arith.mulf %386, %389 : vector<64x128xf32>
    %391 = vector.extract_strided_slice %387 {offsets = [1, 0], sizes = [1, 128], strides = [1, 1]} : vector<2x128xf32> to vector<1x128xf32>
    %392 = vector.broadcast %391 : vector<1x128xf32> to vector<64x128xf32>
    %393 = arith.addf %390, %392 : vector<64x128xf32>
    %cst_346 = arith.constant 0.000000e+00 : f32
    %394 = vector.broadcast %cst_346 : f32 to vector<64x128xf32>
    %395 = arith.maximumf %393, %394 : vector<64x128xf32>
    %396 = vector.shape_cast %395 : vector<64x128xf32> to vector<1x8x8x128xf32>
    %397 = arith.truncf %396 : vector<1x8x8x128xf32> to vector<1x8x8x128xbf16>
    %c0_347 = arith.constant 0 : index
    %c0_348 = arith.constant 0 : index
    %c0_349 = arith.constant 0 : index
    %c0_350 = arith.constant 0 : index
    %398 = vector.load %arg23[%c0_347, %c0_348, %c0_349, %c0_350] : memref<1x8x8x128xbf16, #tpu.memory_space<vmem>>, vector<1x8x8x128xbf16>
    tpu.vector_store %arg23[%c0_347, %c0_348, %c0_349, %c0_350], %397 {strides = array<i32>} : memref<1x8x8x128xbf16, #tpu.memory_space<vmem>>, vector<1x8x8x128xbf16>,
    return
  }
  func.func @transform_0(%arg0: i32) -> (i32, i32, i32, i32) {
    %c0_i32 = arith.constant 0 : i32
    %c0_i32_0 = arith.constant 0 : i32
    %c0_i32_1 = arith.constant 0 : i32
    %c0_i32_2 = arith.constant 0 : i32
    return %arg0, %c0_i32, %c0_i32_0, %c0_i32_1 : i32, i32, i32, i32
  }
  func.func @transform_1(%arg0: i32) -> (i32, i32, i32) {
    %c0_i32 = arith.constant 0 : i32
    %c0_i32_0 = arith.constant 0 : i32
    %c0_i32_1 = arith.constant 0 : i32
    %c0_i32_2 = arith.constant 0 : i32
    return %c0_i32, %c0_i32_0, %c0_i32_1 : i32, i32, i32
  }
  func.func @transform_2(%arg0: i32) -> (i32, i32) {
    %c0_i32 = arith.constant 0 : i32
    %c0_i32_0 = arith.constant 0 : i32
    %c0_i32_1 = arith.constant 0 : i32
    return %c0_i32, %c0_i32_0 : i32, i32
  }
  func.func @transform_3(%arg0: i32) -> (i32, i32, i32) {
    %c0_i32 = arith.constant 0 : i32
    %c0_i32_0 = arith.constant 0 : i32
    %c0_i32_1 = arith.constant 0 : i32
    %c0_i32_2 = arith.constant 0 : i32
    return %c0_i32, %c0_i32_0, %c0_i32_1 : i32, i32, i32
  }
  func.func @transform_4(%arg0: i32) -> (i32, i32) {
    %c0_i32 = arith.constant 0 : i32
    %c0_i32_0 = arith.constant 0 : i32
    %c0_i32_1 = arith.constant 0 : i32
    return %c0_i32, %c0_i32_0 : i32, i32
  }
  func.func @transform_5(%arg0: i32) -> (i32, i32) {
    %c0_i32 = arith.constant 0 : i32
    %c0_i32_0 = arith.constant 0 : i32
    %c0_i32_1 = arith.constant 0 : i32
    return %c0_i32, %c0_i32_0 : i32, i32
  }
  func.func @transform_6(%arg0: i32) -> (i32, i32) {
    %c0_i32 = arith.constant 0 : i32
    %c0_i32_0 = arith.constant 0 : i32
    %c0_i32_1 = arith.constant 0 : i32
    return %c0_i32, %c0_i32_0 : i32, i32
  }
  func.func @transform_7(%arg0: i32) -> (i32, i32) {
    %c0_i32 = arith.constant 0 : i32
    %c0_i32_0 = arith.constant 0 : i32
    %c0_i32_1 = arith.constant 0 : i32
    return %c0_i32, %c0_i32_0 : i32, i32
  }
  func.func @transform_8(%arg0: i32) -> (i32, i32) {
    %c0_i32 = arith.constant 0 : i32
    %c0_i32_0 = arith.constant 0 : i32
    %c0_i32_1 = arith.constant 0 : i32
    return %c0_i32, %c0_i32_0 : i32, i32
  }
  func.func @transform_9(%arg0: i32) -> (i32, i32) {
    %c0_i32 = arith.constant 0 : i32
    %c0_i32_0 = arith.constant 0 : i32
    %c0_i32_1 = arith.constant 0 : i32
    return %c0_i32, %c0_i32_0 : i32, i32
  }
  func.func @transform_10(%arg0: i32) -> (i32, i32) {
    %c0_i32 = arith.constant 0 : i32
    %c0_i32_0 = arith.constant 0 : i32
    %c0_i32_1 = arith.constant 0 : i32
    return %c0_i32, %c0_i32_0 : i32, i32
  }
  func.func @transform_11(%arg0: i32) -> (i32, i32) {
    %c0_i32 = arith.constant 0 : i32
    %c0_i32_0 = arith.constant 0 : i32
    %c0_i32_1 = arith.constant 0 : i32
    return %c0_i32, %c0_i32_0 : i32, i32
  }
  func.func @transform_12(%arg0: i32) -> (i32, i32) {
    %c0_i32 = arith.constant 0 : i32
    %c0_i32_0 = arith.constant 0 : i32
    %c0_i32_1 = arith.constant 0 : i32
    return %c0_i32, %c0_i32_0 : i32, i32
  }
  func.func @transform_13(%arg0: i32) -> (i32, i32) {
    %c0_i32 = arith.constant 0 : i32
    %c0_i32_0 = arith.constant 0 : i32
    %c0_i32_1 = arith.constant 0 : i32
    return %c0_i32, %c0_i32_0 : i32, i32
  }
  func.func @transform_14(%arg0: i32) -> (i32, i32, i32) {
    %c0_i32 = arith.constant 0 : i32
    %c0_i32_0 = arith.constant 0 : i32
    %c0_i32_1 = arith.constant 0 : i32
    %c0_i32_2 = arith.constant 0 : i32
    return %c0_i32, %c0_i32_0, %c0_i32_1 : i32, i32, i32
  }
  func.func @transform_15(%arg0: i32) -> (i32, i32) {
    %c0_i32 = arith.constant 0 : i32
    %c0_i32_0 = arith.constant 0 : i32
    %c0_i32_1 = arith.constant 0 : i32
    return %c0_i32, %c0_i32_0 : i32, i32
  }
  func.func @transform_16(%arg0: i32) -> (i32, i32) {
    %c0_i32 = arith.constant 0 : i32
    %c0_i32_0 = arith.constant 0 : i32
    %c0_i32_1 = arith.constant 0 : i32
    return %c0_i32, %c0_i32_0 : i32, i32
  }
  func.func @transform_17(%arg0: i32) -> (i32, i32) {
    %c0_i32 = arith.constant 0 : i32
    %c0_i32_0 = arith.constant 0 : i32
    %c0_i32_1 = arith.constant 0 : i32
    return %c0_i32, %c0_i32_0 : i32, i32
  }
  func.func @transform_18(%arg0: i32) -> (i32, i32) {
    %c0_i32 = arith.constant 0 : i32
    %c0_i32_0 = arith.constant 0 : i32
    %c0_i32_1 = arith.constant 0 : i32
    return %c0_i32, %c0_i32_0 : i32, i32
  }
  func.func @transform_19(%arg0: i32) -> (i32, i32) {
    %c0_i32 = arith.constant 0 : i32
    %c0_i32_0 = arith.constant 0 : i32
    %c0_i32_1 = arith.constant 0 : i32
    return %c0_i32, %c0_i32_0 : i32, i32
  }
  func.func @transform_20(%arg0: i32) -> (i32, i32) {
    %c0_i32 = arith.constant 0 : i32
    %c0_i32_0 = arith.constant 0 : i32
    %c0_i32_1 = arith.constant 0 : i32
    return %c0_i32, %c0_i32_0 : i32, i32
  }
  func.func @transform_21(%arg0: i32) -> (i32, i32, i32, i32) {
    %c0_i32 = arith.constant 0 : i32
    %c0_i32_0 = arith.constant 0 : i32
    %c0_i32_1 = arith.constant 0 : i32
    %c0_i32_2 = arith.constant 0 : i32
    return %arg0, %c0_i32, %c0_i32_0, %c0_i32_1 : i32, i32, i32, i32
  }
  func.func @transform_22(%arg0: i32) -> (i32, i32, i32, i32) {
    %c0_i32 = arith.constant 0 : i32
    %c0_i32_0 = arith.constant 0 : i32
    %c0_i32_1 = arith.constant 0 : i32
    %c0_i32_2 = arith.constant 0 : i32
    return %arg0, %c0_i32, %c0_i32_0, %c0_i32_1 : i32, i32, i32, i32
  }
}

</mosaic_0001>

<bundles_post_ra>
// kernel: deeplabv3_plus_forward.1
= control target key start
LH: loop header
LB: loop body
LE: loop exit
PB: predicated region body
PF: predicated region fallthrough
CT: control target
= control target key end

     0   :  { %s13411_s0 = inlined_call_operand.vmem [shape: bf16[2,36,9,128], index: 0, kind: input, shape index: {}]   ;;  %s13412_s1 = inlined_call_operand.vmem [shape: bf16[9,128,128], index: 1, kind: input, shape index: {}]   ;;  %s13413_s2 = inlined_call_operand.vmem [shape: f32[2,128], index: 2, kind: input, shape index: {}]   ;;  %s13414_s3 = inlined_call_operand.vmem [shape: bf16[9,128,128], index: 3, kind: input, shape index: {}]   ;;  %s13415_s4 = inlined_call_operand.vmem [shape: f32[2,128], index: 4, kind: input, shape index: {}]   ;;  %s13416_s5 = inlined_call_operand.vmem [shape: f32[9,128], index: 5, kind: input, shape index: {}]   ;;  %s13417_s6 = inlined_call_operand.vmem [shape: f32[2,128], index: 6, kind: input, shape index: {}]   ;;  %s13418_s7 = inlined_call_operand.vmem [shape: bf16[128,128], index: 7, kind: input, shape index: {}]   ;;  %s13419_s8 = inlined_call_operand.hbm [shape: f32[2,128], index: 8, kind: input, shape index: {}]   ;;  %s13420_s9 = inlined_call_operand.vmem [shape: f32[9,128], index: 9, kind: input, shape index: {}]   ;;  %s13421_s10 = inlined_call_operand.vmem [shape: f32[2,128], index: 10, kind: input, shape index: {}]   ;;  %s13422_s11 = inlined_call_operand.vmem [shape: bf16[128,128], index: 11, kind: input, shape index: {}]   ;;  %s13423_s12 = inlined_call_operand.vmem [shape: f32[2,128], index: 12, kind: input, shape index: {}]   ;;  %s13424_s13 = inlined_call_operand.vmem [shape: bf16[128,128], index: 13, kind: input, shape index: {}]   ;;  %s13425_s14 = inlined_call_operand.vmem [shape: bf16[8,128,128], index: 14, kind: input, shape index: {}]   ;;  %s13426_s15 = inlined_call_operand.vmem [shape: bf16[128,128], index: 15, kind: input, shape index: {}]   ;;  %s13427_s16 = inlined_call_operand.hbm [shape: f32[2,128], index: 16, kind: input, shape index: {}]   ;;  %s13428_s17 = inlined_call_operand.hbm [shape: f32[2,128], index: 17, kind: input, shape index: {}]   ;;  %s13429_s18 = inlined_call_operand.hbm [shape: bf16[128,128], index: 18, kind: input, shape index: {}]   ;;  %s13430_s19 = inlined_call_operand.hbm [shape: bf16[128,128], index: 19, kind: input, shape index: {}]   ;;  %s13431_s20 = inlined_call_operand.hbm [shape: f32[2,128], index: 20, kind: input, shape index: {}]   ;;  %s13432_s21 = inlined_call_operand.vmem [shape: bf16[2,8,8,128], index: 21, kind: output, shape index: {0}]   ;;  %s13433_s22 = inlined_call_operand.vmem [shape: bf16[2,8,8,128], index: 22, kind: output, shape index: {1}]  }
   0x1   :  { %13441 = sst [smem:[#allocation21_spill]] %s13411_s0 }
   0x2   :  { %13442 = sst [smem:[#allocation22_spill]] %s13412_s1 }
   0x3   :  { %13443 = sst [smem:[#allocation23_spill]] %s13413_s2 }
   0x4   :  { %13444 = sst [smem:[#allocation24_spill]] %s13414_s3 }
   0x5   :  { %13445 = sst [smem:[#allocation25_spill]] %s13415_s4 }
   0x6   :  { %13446 = sst [smem:[#allocation26_spill]] %s13416_s5 }
   0x7   :  { %13447 = sst [smem:[#allocation27_spill]] %s13417_s6 }
   0x8   :  { %13448 = sst [smem:[#allocation28_spill]] %s13423_s12 }
   0x9   :  { %13449 = sst [smem:[#allocation29_spill]] %s13427_s16 }
   0xa   :  { %13450 = sst [smem:[#allocation30_spill]] %s13433_s22 }
   0xb   :  { %28 = vsyncpa [#allocation7], 0 }
   0xc   :  { %29 = vsyncpa [#allocation9], 0 }
   0xd   :  { %30 = vsyncpa [#allocation12], 0 }
   0xe   :  { %31 = vsyncpa [#allocation15], 0  ;;  %s11310_s3 = smov 0  }
   0xf LB: > { %13451 = sst [smem:[#allocation20_spill]] %s11182_s3  ;;  %s11184_s28 = smov [#allocation8]   ;;  %s11182_s3 = sphi %s11310_s3, %s37_s3  }
  0x10   : > { %s606_s29 = sshll.u32 %s11184_s28, 4  ;;  %s11316_s30 = sadd.s32 4294967295, %s11182_s3   ;;  %s11321_s29 = int_to_ptr.vmem [resolvable:$true] %s606_s29 }
  0x11   : > { %p8297_p0 = scmp.ge.s32.totalorder %s11182_s3, 1  ;;  %p540_p1 = scmp.lt.s32.totalorder %s11182_s3, 3 }
  0x12   : > { %p13438_p2 = scmp.eq.s32.totalorder %s11316_s30, 0  ;;  %s11185_s0 = smov [#allocation11]  }
  0x13   : > { %p11323_p3 = pnand %p8297_p0, %p540_p1  ;;  %s627_s23 = sshll.u32 %s11185_s0, 4  ;;  %s11329_s23 = int_to_ptr.vmem [resolvable:$true] %s627_s23 }
  0x14   : > { %s11186_s5 = smov [#allocation6]   ;;  %s11187_s6 = smov [#allocation10]  }
  0x15   : > { %s13452_s4 = scalar_select %p11323_p3, 1, 0 }
  0x16   : > { %p10636_p4 = pneg %p11323_p3  ;;  %s574_s24 = sshll.u32 %s11186_s5, 4  ;;  %s11337_s24 = int_to_ptr.vmem [resolvable:$true] %s574_s24 }
  0x17   : > { %s11339_s25 = sshll.u32 %s11187_s6, 4  ;;  %s13454_s16 = sld [smem:[#allocation29_spill]]  ;;  %s618_s25 = int_to_ptr.vmem [resolvable:$true] %s11339_s25 }
  0x18   : > { %p11333_p5 = pnand %p13438_p2, %p10636_p4 }
  0x1a   : > { %p11349_p7 = pneg %p11333_p5 }
  0x1d   : > { %s10992_s27 = scalar_lea.hbm %s13454_s16, 32 }
  0x1e   : > { %p10993_p6 = scmp.ne.s32.totalorder %s13454_s16, %s10992_s27  ;;  %p10999_p10 = scmp.lt.u32.totalorder %s10992_s27, %s13454_s16 }
  0x20   : > { %p10995_p8 = pnand %p11349_p7, %p10993_p6 }
  0x22   : > { %p10996_p9 = pneg %p10995_p8 }
  0x24   : > { %p11001_p11 = pnand %p10999_p10, %p10996_p9 }
  0x26   : > { %11004 = shalt.err (!%p11001_p11)
}
  0x27   : > { %s11005_s26 = scalar_lea.vmem %s11321_s29, 32  ;;  %p11013_p1 = scmp.lt.s32.totalorder %s11321_s29, %s11321_s29 }
  0x28   : > { %p11006_p12 = scmp.ne.s32.totalorder %s11321_s29, %s11005_s26  ;;  %p11014_p4 = scmp.lt.s32.totalorder %s11005_s26, %s11005_s26 }
  0x2a   : > { %p11008_p13 = pnand %p11006_p12, %p11349_p7  ;;  %p11015_p6 = por %p11014_p4, %p11013_p1 }
  0x2c   : > { %p11009_p0 = pneg %p11008_p13 }
  0x2e   : > { %p11016_p8 = pnand %p11015_p6, %p11009_p0 }
  0x30   : > { %11019 = shalt.err (!%p11016_p8)
}
  0x31   : > { %10642 = dma.hbm_to_vmem [thread:$0]  (!%p11333_p5), %s13454_s16, 32, %s11321_s29, [#allocation9]  }
  0x32   : > { %s11020_s5 = scalar_lea.hbm %s13429_s18, 1024 }
  0x33   : > { %p11021_p9 = scmp.ne.s32.totalorder %s13429_s18, %s11020_s5  ;;  %p11027_p12 = scmp.lt.u32.totalorder %s11020_s5, %s13429_s18 }
  0x35   : > { %p11023_p10 = pnand %p11021_p9, %p11349_p7 }
  0x37   : > { %p11024_p11 = pneg %p11023_p10 }
  0x39   : > { %p11029_p13 = pnand %p11027_p12, %p11024_p11 }
  0x3b   : > { %11032 = shalt.err (!%p11029_p13)
}
  0x3c   : > { %s11033_s29 = scalar_lea.vmem %s11329_s23, 1024  ;;  %p11041_p6 = scmp.lt.s32.totalorder %s11329_s23, %s11329_s23 }
  0x3d   : > { %p11034_p0 = scmp.ne.s32.totalorder %s11329_s23, %s11033_s29  ;;  %p11042_p8 = scmp.lt.s32.totalorder %s11033_s29, %s11033_s29 }
  0x3f   : > { %p11036_p1 = pnand %p11034_p0, %p11349_p7  ;;  %p11043_p9 = por %p11042_p8, %p11041_p6 }
  0x41   : > { %p11037_p4 = pneg %p11036_p1 }
  0x43   : > { %p11044_p10 = pnand %p11043_p9, %p11037_p4 }
  0x45   : > { %11047 = shalt.err (!%p11044_p10)
}
  0x46   : > { %s13440_s22 = smov 64   ;;  %s11189_s12 = smov 4  }
  0x47   : > { %10648 = dma.hbm_to_vmem [thread:$0]  (!%p11333_p5), %s13429_s18, 1024, %s11329_s23, [#allocation12], %s13440_s22, %s13440_s22, %s11189_s12  }
  0x48   : > { %s11048_s5 = scalar_lea.hbm %s13419_s8, 32 }
  0x49   : > { %p11049_p11 = scmp.ne.s32.totalorder %s13419_s8, %s11048_s5  ;;  %p11055_p0 = scmp.lt.u32.totalorder %s11048_s5, %s13419_s8 }
  0x4b   : > { %p11051_p12 = pnand %p11049_p11, %p11349_p7 }
  0x4d   : > { %p11052_p13 = pneg %p11051_p12 }
  0x4f   : > { %p11057_p1 = pnand %p11055_p0, %p11052_p13 }
  0x51   : > { %11060 = shalt.err (!%p11057_p1)
}
  0x52   : > { %s11061_s23 = scalar_lea.vmem %s11337_s24, 32  ;;  %p11069_p9 = scmp.lt.s32.totalorder %s11337_s24, %s11337_s24 }
  0x53   : > { %p11062_p4 = scmp.ne.s32.totalorder %s11337_s24, %s11061_s23  ;;  %p11070_p10 = scmp.lt.s32.totalorder %s11061_s23, %s11061_s23 }
  0x55   : > { %p11064_p6 = pnand %p11062_p4, %p11349_p7  ;;  %p11071_p11 = por %p11070_p10, %p11069_p9 }
  0x57   : > { %p11065_p8 = pneg %p11064_p6 }
  0x59   : > { %p11072_p12 = pnand %p11071_p11, %p11065_p8 }
  0x5b   : > { %11075 = shalt.err (!%p11072_p12)
}
  0x5c   : > { %10639 = dma.hbm_to_vmem [thread:$0]  (!%p11333_p5), %s13419_s8, 32, %s11337_s24, [#allocation7]  }
  0x5d   : > { %s11076_s0 = scalar_lea.hbm %s13428_s17, 32 }
  0x5e   : > { %p11077_p13 = scmp.ne.s32.totalorder %s13428_s17, %s11076_s0  ;;  %p11083_p4 = scmp.lt.u32.totalorder %s11076_s0, %s13428_s17 }
  0x60   : > { %p11079_p0 = pnand %p11077_p13, %p11349_p7 }
  0x62   : > { %p11080_p1 = pneg %p11079_p0 }
  0x64   : > { %p11085_p6 = pnand %p11083_p4, %p11080_p1 }
  0x66   : > { %11088 = shalt.err (!%p11085_p6)
}
  0x67   : > { %s11089_s23 = scalar_lea.vmem %s618_s25, 32  ;;  %p11097_p11 = scmp.lt.s32.totalorder %s618_s25, %s618_s25 }
  0x68   : > { %p11090_p8 = scmp.ne.s32.totalorder %s618_s25, %s11089_s23  ;;  %p11098_p12 = scmp.lt.s32.totalorder %s11089_s23, %s11089_s23 }
  0x6a   : > { %p11092_p9 = pnand %p11090_p8, %p11349_p7  ;;  %p11099_p2 = por %p11098_p12, %p11097_p11 }
  0x6c   : > { %p11093_p10 = pneg %p11092_p9 }
  0x6e   : > { %p11100_p3 = pnand %p11099_p2, %p11093_p10 }
  0x70   : > { %11103 = shalt.err (!%p11100_p3)
}
  0x71   : > { %10645 = dma.hbm_to_vmem [thread:$0]  (!%p11333_p5), %s13428_s17, 32, %s618_s25, [#allocation9]  }
  0x72   : > { %s11190_s2 = smov [#allocation13]   ;;  %s11191_s28 = smov [#allocation14]  }
  0x73   : > { %s640_s27 = sshll.u32 %s11190_s2, 4  ;;  %s654_s0 = sshll.u32 %s11191_s28, 4  ;;  %s641_s27 = int_to_ptr.vmem [resolvable:$true] %s640_s27  ;;  %s655_s0 = int_to_ptr.vmem [resolvable:$true] %s654_s0 }
  0x74   : > { %s11104_s26 = scalar_lea.hbm %s13430_s19, 1024 }
  0x75   : > { %p11105_p2 = scmp.ne.s32.totalorder %s13430_s19, %s11104_s26  ;;  %p11111_p0 = scmp.lt.u32.totalorder %s11104_s26, %s13430_s19 }
  0x77   : > { %p11107_p3 = pnand %p11105_p2, %p11349_p7 }
  0x79   : > { %p11108_p13 = pneg %p11107_p3 }
  0x7b   : > { %p11113_p1 = pnand %p11111_p0, %p11108_p13 }
  0x7d   : > { %11116 = shalt.err (!%p11113_p1)
}
  0x7e   : > { %s11117_s25 = scalar_lea.vmem %s641_s27, 1024  ;;  %p11125_p9 = scmp.lt.s32.totalorder %s641_s27, %s641_s27 }
  0x7f   : > { %p11118_p4 = scmp.ne.s32.totalorder %s641_s27, %s11117_s25  ;;  %p11126_p10 = scmp.lt.s32.totalorder %s11117_s25, %s11117_s25 }
  0x81   : > { %p11120_p6 = pnand %p11118_p4, %p11349_p7  ;;  %p11127_p11 = por %p11126_p10, %p11125_p9 }
  0x83   : > { %p11121_p8 = pneg %p11120_p6 }
  0x85   : > { %p11128_p12 = pnand %p11127_p11, %p11121_p8 }
  0x87   : > { %11131 = shalt.err (!%p11128_p12)
}
  0x88   : > { %s13456_s16 = smov 64   ;;  %s11132_s6 = scalar_lea.hbm %s13431_s20, 32 }
  0x89   : > { %10651 = dma.hbm_to_vmem [thread:$0]  (!%p11333_p5), %s13430_s19, 1024, %s641_s27, [#allocation12], %s13456_s16, %s13456_s16, %s11189_s12  }
  0x8a   : > { %p11133_p2 = scmp.ne.s32.totalorder %s13431_s20, %s11132_s6  ;;  %p11139_p0 = scmp.lt.u32.totalorder %s11132_s6, %s13431_s20 }
  0x8c   : > { %p11135_p3 = pnand %p11133_p2, %p11349_p7 }
  0x8e   : > { %p11136_p13 = pneg %p11135_p3 }
  0x90   : > { %p11141_p1 = pnand %p11139_p0, %p11136_p13 }
  0x92   : > { %11144 = shalt.err (!%p11141_p1)
}
  0x93   : > { %s11145_s25 = scalar_lea.vmem %s655_s0, 32  ;;  %p11153_p9 = scmp.lt.s32.totalorder %s655_s0, %s655_s0 }
  0x94   : > { %p11146_p4 = scmp.ne.s32.totalorder %s655_s0, %s11145_s25  ;;  %p11154_p10 = scmp.lt.s32.totalorder %s11145_s25, %s11145_s25 }
  0x96   : > { %p11148_p6 = pnand %p11146_p4, %p11349_p7  ;;  %p11155_p11 = por %p11154_p10, %p11153_p9 }
  0x98   : > { %p11149_p8 = pneg %p11148_p6 }
  0x9a   : > { %p11156_p12 = pnand %p11155_p11, %p11149_p8 }
  0x9c   : > { %11159 = shalt.err (!%p11156_p12)
}
  0x9d   : > { %10654 = dma.hbm_to_vmem [thread:$0]  (!%p11333_p5), %s13431_s20, 32, %s655_s0, [#allocation15]  }
  0x9e   : > { %p13457_p2 = scmp.ne.s32.totalorder %s13452_s4, 0 }
  0x9f   : > { %p13458_p3 = scmp.eq.s32.totalorder (!%p13457_p2), %s11316_s30, 0 }
  0xa0   : > { %675 = sbr.rel (%p13457_p2) target bundleno = 2330 (0x91a), region = 104 }
  0xa7   : > { %11165 = dma.done.wait (%p13458_p3), [#allocation7], 32   ;;  %p13459_p7 = pmov %p13458_p3 }
  0xa8   : > { %p13460_p13 = pmov %p13458_p3 }
  0xa9   : > { %11167 = vsyncadd (%p13459_p7), [#allocation7], 4294967264 }
  0xaa   : > { %11169 = dma.done.wait (%p13460_p13), [#allocation9], 64   ;;  %p13461_p0 = pmov %p13458_p3 }
  0xac   : > { %11171 = vsyncadd (%p13461_p0), [#allocation9], 4294967232  ;;  %p13462_p1 = pmov %p13461_p0 }
  0xad   : > { %p13463_p5 = pmov %p13461_p0 }
  0xae   : > { %11173 = dma.done.wait (%p13462_p1), [#allocation12], 2048  }
  0xaf   : > { %11175 = vsyncadd (%p13463_p5), [#allocation12], 4294965248  ;;  %p13464_p4 = pmov %p13461_p0 }
  0xb0   : > { %p13465_p6 = pmov %p13461_p0 }
  0xb1   : > { %11177 = dma.done.wait (%p13464_p4), [#allocation15], 32  }
  0xb2   : > { %11179 = vsyncadd (%p13465_p6), [#allocation15], 4294967264  ;;  %p762_p8 = scmp.lt.s32.totalorder %s11316_s30, 1  ;;  %s13466_s1 = sld [smem:[#allocation22_spill]]  ;;  %vm1242_vm0 = vsmask.f32 3328 }
  0xb3   : > { %s13467_s26 = sld [smem:[#allocation21_spill]]  ;;  %vm1243_vm1 = vsmask.f32 7440  ;;  %s13470_s27 = sld [smem:[#allocation24_spill]]  ;;  %vm2905_vm3 = vcmask 1043456   ;;  %vm2911_vm5 = vcmask 1040384  }
  0xb4   : > { %s13489_s30 = smov (!%p762_p8, %s11316_s30), 1  ;;  %vm11626_vm2 = vmor %vm1242_vm0, %vm1243_vm1  ;;  %s13471_s16 = sld [smem:[#allocation23_spill]]  ;;  %vm2906_vm4 = vsmask.f32 7938  ;;  %vm2912_vm6 = vsmask.f32 256 }
  0xb5   : > { %s10611_s22 = smul.u32 288, %s13489_s30  ;;  %vm12061_vm7 = vmand %vm2905_vm3, %vm2906_vm4  ;;  %vm3410_vm9 = vcmask 1042432   ;;  %vm3411_vm10 = vcmask 1046532   ;;  %s13478_s25 = sld [smem:[#allocation25_spill]]  ;;  %vm11194_vm12 = vmmov 0   ;;  %vm6292_vm13 = vcmask 1044484  }
  0xb6   : > { %vm12068_vm8 = vmand %vm2911_vm5, %vm2912_vm6  ;;  %s13479_s4 = sld [smem:[#allocation26_spill]]  ;;  %s13480_s5 = sld [smem:[#allocation27_spill]]  ;;  %vm6512_vm15 = vcmask 1041408   ;;  %vm6513_vm0 = vcmask 1045508  }
  0xb7   : > { %vm12197_vm11 = vmor %vm3410_vm9, %vm3411_vm10  ;;  %s9217_s3 = sshll.u32 %s13489_s30, 5  ;;  %s13481_s2 = sld [smem:[#allocation28_spill]] }
  0xb8   : > { %v10686_v0 = vld [vmem:[%s13466_s1 + $0xc0] sm:$0xff]   ;;  %v10687_v1 = vld [vmem:[%s13466_s1 + $0xc8] sm:$0xff]   ;;  %v10688_v2 = vld [vmem:[%s13466_s1 + $0xd0] sm:$0xff]   ;;  %s13486_s12 = sld [smem:[#allocation30_spill]] }
  0xb9   : > { %9731 = vmatprep.subr.bf16.mxu0 %v10686_v0  ;;  %s11512_s29 = scalar_lea.vmem %s13467_s26, %s10611_s22  ;;  %v10689_v3 = vld [vmem:[%s13466_s1 + $0xd8] sm:$0xff]   ;;  %v10694_v4 = vld [vmem:[%s13466_s1 + $0x40] sm:$0xff]   ;;  %v10698_v7 = vld [vmem:[%s13466_s1 + $0x48] sm:$0xff]  }
  0xba   : > { %9732 = vmatpush3.bf16.msra.mxu0 %v10686_v0  ;;  %v10695_v5 = vld [vmem:[%s11512_s29 + $0x90] ss:$8 sps:$4 sm:$0xff]   ;;  %9659 = vmatprep.subr.bf16.mxu1 %v10694_v4  ;;  %v10690_v6 = vld [vmem:[%s13466_s1 + $0xe0] sm:$0xff]   ;;  %v10691_v9 = vld [vmem:[%s13466_s1 + $0xe8] sm:$0xff]  }
  0xbb   : > { %9733 = vmatprep.subr.bf16.mxu0 %v10687_v1  ;;  %9660 = vmatpush3.bf16.msra.mxu1 %v10694_v4  ;;  %v10700_v8 = vld [vmem:[%s13466_s1 + $0x50] sm:$0xff]   ;;  %v10702_v10 = vld [vmem:[%s13466_s1 + $0x58] sm:$0xff]   ;;  %v10704_v12 = vld [vmem:[%s13466_s1 + $0x60] sm:$0xff]  }
  0xbc   : > { %9747 = vmatprep.mubr.bf16.mxu0 %v10695_v5  ;;  %9661 = vmatprep.subr.bf16.mxu1 %v10698_v7  ;;  %v10692_v11 = vld [vmem:[%s13466_s1 + $0xf0] sm:$0xff]   ;;  %v10693_v13 = vld [vmem:[%s13466_s1 + $0xf8] sm:$0xff]   ;;  %v10706_v14 = vld [vmem:[%s13466_s1 + $0x68] sm:$0xff]  }
  0xbd   : > { %v10696_v15 = vld [vmem:[%s13466_s1 + $0x100] sm:$0xff]   ;;  %v10708_v16 = vld [vmem:[%s13466_s1 + $0x70] sm:$0xff]   ;;  %v10699_v19 = vld [vmem:[%s13466_s1 + $0x108] sm:$0xff]  }
  0xbe   : > { %9734 = vmatpush3.bf16.msra.mxu0 %v10687_v1  ;;  %v10714_v17 = vld [vmem:[%s11512_s29 + $0x48] ss:$8 sps:$4 sm:$0xff]   ;;  %v10712_v21 = vld [vmem:[%s13466_s1 + $0x78] sm:$0xff]   ;;  %v10715_v23 = vld [vmem:[%s13466_s1] sm:$0xff]   ;;  %s776_s0 = scalar_lea.vmem %s13486_s12, %s9217_s3 }
  0xbf   : > { %9735 = vmatprep.subr.bf16.mxu0 %v10688_v2  ;;  %9662 = vmatpush3.bf16.msra.mxu1 %v10698_v7  ;;  %v10697_v18 = vld [vmem:[%s11512_s29 + $0xa0] ss:$8 sps:$4 sm:$0xff]   ;;  %v10709_v20 = vld [vmem:[%s11512_s29 + $0xb0] ss:$8 sps:$4 sm:$0xff]   ;;  %v8466_v40 = vld [vmem:[%s11512_s29 + $0x94] sm:$0x1] }
  0xc0   : > { %9663 = vmatprep.subr.bf16.mxu1 %v10700_v8  ;;  %9675 = vmatprep.mubr.bf16.mxu1 %v10714_v17  ;;  %v10701_v22 = vld [vmem:[%s13466_s1 + $0x110] sm:$0xff]   ;;  %v10711_v24 = vld [vmem:[%s11512_s29 + $0xc0] ss:$8 sps:$4 sm:$0xff]   ;;  %v10703_v26 = vld [vmem:[%s13466_s1 + $0x118] sm:$0xff]   ;;  %v1879_v47 = vshll.u32 %v8466_v40, 16 }
  0xc1   : > { %v10716_v25 = vld [vmem:[%s11512_s29 + $0x58] ss:$8 sps:$4 sm:$0xff]   ;;  %v10720_v28 = vld [vmem:[%s13466_s1 + $0x8] sm:$0xff]   ;;  %v10722_v30 = vld [vmem:[%s13466_s1 + $0x10] sm:$0xff]  }
  0xc2   : > { %9736 = vmatpush3.bf16.msra.mxu0 %v10688_v2  ;;  %v10717_v27 = vld [vmem:[%s11512_s29 + $0xd8] ss:$8 sps:$4 sm:$0xff]   ;;  %v10730_v31 = vld [vmem:[%s11512_s29 + $0x68] ss:$8 sps:$4 sm:$0xff]   ;;  %v8468_v43 = vld [vmem:[%s11512_s29 + $0x9c] sm:$0x1] }
  0xc3   : > { %9737 = vmatprep.subr.bf16.mxu0 %v10689_v3  ;;  %9664 = vmatpush3.bf16.msra.mxu1 %v10700_v8  ;;  %v10705_v29 = vld [vmem:[%s13466_s1 + $0x120] sm:$0xff]   ;;  %v10707_v33 = vld [vmem:[%s13466_s1 + $0x128] sm:$0xff]   ;;  %v10724_v34 = vld [vmem:[%s13466_s1 + $0x18] sm:$0xff]   ;;  %v1893_v52 = vshll.u32 %v8468_v43, 16  ;;  %v1881_v61 = vrot.slane %v1879_v47, 5 }
  0xc4   : > { %9665 = vmatprep.subr.bf16.mxu1 %v10702_v10  ;;  %v10732_v32 = vld [vmem:[%s11512_s29 + $0x78] ss:$8 sps:$4 sm:$0xff]   ;;  %v10710_v35 = vld [vmem:[%s13466_s1 + $0x130] sm:$0xff]   ;;  %v10728_v42 = vld [vmem:[%s13466_s1 + $0x28] sm:$0xff]  }
  0xc5   : > { %v10726_v36 = vld [vmem:[%s13466_s1 + $0x20] sm:$0xff]   ;;  %v10713_v38 = vld [vmem:[%s13466_s1 + $0x138] sm:$0xff]   ;;  %v8465_v39 = vld [vmem:[%s11512_s29 + $0x90] sm:$0xf]  ;;  %v1895_v62 = vrot.slane %v1893_v52, 5 }
  0xc6   : > { %9738 = vmatpush3.bf16.msra.mxu0 %v10689_v3  ;;  %v10738_v37 = vld [vmem:[%s11512_s29] ss:$8 sps:$4 sm:$0xff]   ;;  %v8467_v41 = vld [vmem:[%s11512_s29 + $0x98] sm:$0xf]  ;;  %v1870_v44 = vshrl.u32 %v8465_v39, 16  ;;  %v1873_v45 = vshll.u32 %v8465_v39, 16  ;;  %vm13130_vm14 = vmor %vm2911_vm5, %vm6292_vm13 }
  0xc7   : > { %9739 = vmatprep.subr.bf16.mxu0 %v10690_v6  ;;  %9666 = vmatpush3.bf16.msra.mxu1 %v10702_v10  ;;  %v1884_v46 = vshrl.u32 %v8467_v41, 16  ;;  %v1887_v48 = vshll.u32 %v8467_v41, 16  ;;  %v10718_v54 = vld [vmem:[%s13466_s1 + $0x140] sm:$0xff]   ;;  %v10731_v55 = vld [vmem:[%s13466_s1 + $0x30] sm:$0xff]   ;;  %v10721_v59 = vld [vmem:[%s13466_s1 + $0x148] sm:$0xff]  }
  0xc8   : > { %9667 = vmatprep.subr.bf16.mxu1 %v10704_v12  ;;  %v1872_v49 = vrot.slane %v1870_v44, 4  ;;  %v1875_v50 = vrot.slane %v1873_v45, 5  ;;  %v10719_v57 = vld [vmem:[%s11512_s29 + $0xe8] ss:$8 sps:$4 sm:$0xff]   ;;  %v10733_v60 = vld [vmem:[%s11512_s29 + $0xf8] ss:$8 sps:$4 sm:$0xff]   ;;  %vm13177_vm1 = vmor %vm6512_vm15, %vm6513_vm0 }
  0xc9   : > { %v1886_v51 = vrot.slane %v1884_v46, 4  ;;  %v1889_v53 = vrot.slane %v1887_v48, 5  ;;  %v10736_v63 = vld [vmem:[%s13466_s1 + $0x38] sm:$0xff]   ;;  %v8469_v0 = vld [vmem:[%s11512_s29 + $0xa0] sm:$0xf]  ;;  %v10729_v41 = vld [vmem:[%s13466_s1 + $0x168] sm:$0xff]  }
  0xca   : > { %9740 = vmatpush3.bf16.msra.mxu0 %v10690_v6  ;;  %v1876_v56 = vor.u32 %v1875_v50, %v1872_v49  ;;  %v8471_v1 = vld [vmem:[%s11512_s29 + $0xa8] sm:$0xf]  ;;  %v8470_v5 = vld [vmem:[%s11512_s29 + $0xa4] sm:$0x1]  ;;  %v10723_v6 = vld [vmem:[%s13466_s1 + $0x150] sm:$0xff]   ;;  %v1898_v8 = vshrl.u32 %v8469_v0, 16 }
  0xcb   : > { %9741 = vmatprep.subr.bf16.mxu0 %v10691_v9  ;;  %9668 = vmatpush3.bf16.msra.mxu1 %v10704_v12  ;;  %v1890_v58 = vor.u32 %v1889_v53, %v1886_v51  ;;  %v8472_v7 = vld [vmem:[%s11512_s29 + $0xac] sm:$0x1]  ;;  %v1901_v10 = vshll.u32 %v8469_v0, 16  ;;  %v1912_v12 = vshrl.u32 %v8471_v1, 16  ;;  %v10725_v17 = vld [vmem:[%s13466_s1 + $0x158] sm:$0xff]   ;;  %v10862_v2 = vld [vmem:[%s13470_s27 + $0x220] sm:$0xff]  }
  0xcc   : > { %9669 = vmatprep.subr.bf16.mxu1 %v10706_v14  ;;  %v1877_v3 = vrot.slane %v1876_v56, 4  ;;  %v10753_v43 = vld [vmem:[%s11512_s29 + $0x30] ss:$8 sps:$4 sm:$0xff]   ;;  %v8477_v50 = vld [vmem:[%s11512_s29 + $0xc0] sm:$0xf] }
  0xcd   : > { %v1891_v4 = vrot.slane %v1890_v58, 4  ;;  %v8478_v52 = vld [vmem:[%s11512_s29 + $0xc4] sm:$0x1]  ;;  %v8479_v53 = vld [vmem:[%s11512_s29 + $0xc8] sm:$0xf]  ;;  %v1957_v58 = vshll.u32 %v8477_v50, 16 }
  0xce   : > { %9742 = vmatpush3.bf16.msra.mxu0 %v10691_v9  ;;  %v10739_v9 = vld [vmem:[%s13466_s1 + $0x80] sm:$0xff]   ;;  %v1971_v0 = vshll.u32 %v8479_v53, 16 }
  0xcf   : > { %9743 = vmatprep.subr.bf16.mxu0 %v10692_v11  ;;  %9670 = vmatpush3.bf16.msra.mxu1 %v10706_v14  ;;  %v10740_v14 = vld [vmem:[%s11512_s29 + $0x10] ss:$8 sps:$4 sm:$0xff]  }
  0xd0   : > { %9671 = vmatprep.subr.bf16.mxu1 %v10708_v16 }
  0xd2   : > { %9744 = vmatpush3.bf16.msra.mxu0 %v10692_v11  ;;  %v10735_v11 = vld [vmem:[%s11512_s29 + $0x108] ss:$8 sps:$4 sm:$0xff]  }
  0xd3   : > { %9745 = vmatprep.subr.bf16.mxu0 %v10693_v13  ;;  %9672 = vmatpush3.bf16.msra.mxu1 %v10708_v16  ;;  %v1896_v16 = vsel %vm11626_vm2, %v1891_v4, %v1895_v62  ;;  %v1963_v62 = vshll.u32 %v8478_v52, 16  ;;  %v1959_v4 = vrot.slane %v1957_v58, 5  ;;  %v10743_v58 = vld [vmem:[%s13466_s1 + $0x188] sm:$0xff]  }
  0xd4   : > { %9673 = vmatprep.subr.bf16.mxu1 %v10712_v21 }
  0xd6   : > { %9746 = vmatpush3.bf16.msra.mxu0 %v10693_v13  ;;  %v1915_v13 = vshll.u32 %v8471_v1, 16 }
  0xd7   : > { %9755 = vmatprep.subr.bf16.mxu0 %v10696_v15  ;;  %9674 = vmatpush3.bf16.msra.mxu1 %v10712_v21  ;;  %v1921_v21 = vshll.u32 %v8472_v7, 16 }
  0xd8   : > { %9683 = vmatprep.subr.bf16.mxu1 %v10715_v23 }
  0xd9   : > { %9748 = vmatmul.mubr.bf16.vlgmr.msra.gmra.mrb[0].mxu0 %v10697_v18  ;;  %v1900_v18 = vrot.slane %v1898_v8, 4 }
  0xda   : > { %9756 = vmatpush3.bf16.msra.mxu0 %v10696_v15  ;;  %9751 = vmatprep.mubr.bf16.mxu0 %v10709_v20  ;;  %v1882_v15 = vsel %vm11626_vm2, %v1877_v3, %v1881_v61  ;;  %v1903_v20 = vrot.slane %v1901_v10, 5 }
  0xdb   : > { %9757 = vmatprep.subr.bf16.mxu0 %v10699_v19  ;;  %9676 = vmatmul.mubr.bf16.vlgmr.msra.gmra.mrb[0].mxu1 %v10716_v25  ;;  %v1917_v25 = vrot.slane %v1915_v13, 5  ;;  %v1226_v13 = vld [vmem:[%s11512_s29] sm:$0xf] }
  0xdc   : > { %9684 = vmatpush3.bf16.msra.mxu1 %v10715_v23  ;;  %9679 = vmatprep.mubr.bf16.mxu1 %v10730_v31  ;;  %v8497_v23 = vcombine.low %v1882_v15, %v1896_v16  ;;  %v8474_v31 = vld [vmem:[%s11512_s29 + $0xb4] sm:$0x1]  ;;  %v1228_v15 = vld [vmem:[%s11512_s29 + $0x8] sm:$0xf]  ;;  %v10737_v16 = vld [vmem:[%s13466_s1 + $0x178] sm:$0xff]  }
  0xdd   : > { %9685 = vmatprep.subr.bf16.mxu1 %v10720_v28  ;;  %v1935_v46 = vshll.u32 %v8474_v31, 16 }
  0xde   : > { %9758 = vmatpush3.bf16.msra.mxu0 %v10699_v19  ;;  %v1907_v19 = vshll.u32 %v8470_v5, 16 }
  0xdf   : > { %9759 = vmatprep.subr.bf16.mxu0 %v10701_v22  ;;  %v11686_v1 = vrot.slane %v1935_v46, 5 }
  0xe0   : > { %9686 = vmatpush3.bf16.msra.mxu1 %v10720_v28  ;;  %v11654_v28 = vrot.slane %v1907_v19, 5  ;;  %v11709_v19 = vrot.slane %v1963_v62, 5 }
  0xe1   : > { %9752 = vmatmul.mubr.bf16.gmra.mrb[4].mxu0 %v10711_v24  ;;  %9687 = vmatprep.subr.bf16.mxu1 %v10722_v30  ;;  %v1914_v24 = vrot.slane %v1912_v12, 4 }
  0xe2   : > { %9760 = vmatpush3.bf16.msra.mxu0 %v10701_v22  ;;  %9771 = vmatprep.mubr.bf16.mxu0 %v10717_v27  ;;  %v10742_v22 = vld [vmem:[%s13466_s1 + $0x88] sm:$0xff]   ;;  %v10727_v27 = vld [vmem:[%s13466_s1 + $0x160] sm:$0xff]  }
  0xe3   : > { %9761 = vmatprep.subr.bf16.mxu0 %v10703_v26  ;;  %9680 = vmatmul.mubr.bf16.gmra.mrb[4].mxu1 %v10732_v32  ;;  %v1904_v32 = vor.u32 %v1903_v20, %v1900_v18  ;;  %v1229_v20 = vld [vmem:[%s11512_s29 + $0xc] sm:$0x1] }
  0xe4   : > { %9688 = vmatpush3.bf16.msra.mxu1 %v10722_v30  ;;  %9699 = vmatprep.mubr.bf16.mxu1 %v10738_v37  ;;  %v8473_v30 = vld [vmem:[%s11512_s29 + $0xb0] sm:$0xf]  ;;  %v1918_v37 = vor.u32 %v1917_v25, %v1914_v24  ;;  %v1260_v25 = vshrl.u32 %v1228_v15, 16  ;;  %v1269_v31 = vshll.u32 %v1229_v20, 16 }
  0xe5   : > { %9689 = vmatprep.subr.bf16.mxu1 %v10724_v34  ;;  %v10758_v20 = vld [vmem:[%s11512_s29 + $0x8] ss:$8 sps:$4 sm:$0xff]  }
  0xe6   : > { %9762 = vmatpush3.bf16.msra.mxu0 %v10703_v26  ;;  %v10752_v26 = vld [vmem:[%s11512_s29 + $0x20] ss:$8 sps:$4 sm:$0xff]   ;;  %v11678_v56 = vrot.slane %v1918_v37, 4  ;;  %v1232_v37 = vld [vmem:[%s11512_s29 + $0x18] sm:$0xf]  ;;  %v1271_v46 = vrot.slane %v1269_v31, 5 }
  0xe7   : > { %9763 = vmatprep.subr.bf16.mxu0 %v10705_v29  ;;  %v1291_v52 = vshll.u32 %v1232_v37, 16 }
  0xe8   : > { %9690 = vmatpush3.bf16.msra.mxu1 %v10724_v34  ;;  %v8476_v34 = vld [vmem:[%s11512_s29 + $0xbc] sm:$0x1] }
  0xe9   : > { %9691 = vmatprep.subr.bf16.mxu1 %v10726_v36  ;;  %v1949_v49 = vshll.u32 %v8476_v34, 16 }
  0xea   : > { %9764 = vmatpush3.bf16.msra.mxu0 %v10705_v29  ;;  %v10744_v29 = vld [vmem:[%s13466_s1 + $0x90] sm:$0xff]  }
  0xeb   : > { %9765 = vmatprep.subr.bf16.mxu0 %v10707_v33  ;;  %v11690_v7 = vrot.slane %v1949_v49, 5 }
  0xec   : > { %9692 = vmatpush3.bf16.msra.mxu1 %v10726_v36  ;;  %v1929_v36 = vshll.u32 %v8473_v30, 16 }
  0xed   : > { %9693 = vmatprep.subr.bf16.mxu1 %v10728_v42 }
  0xee   : > { %9766 = vmatpush3.bf16.msra.mxu0 %v10707_v33  ;;  %v8475_v33 = vld [vmem:[%s11512_s29 + $0xb8] sm:$0xf]  ;;  %v1931_v45 = vrot.slane %v1929_v36, 5 }
  0xef   : > { %9767 = vmatprep.subr.bf16.mxu0 %v10710_v35  ;;  %v1940_v39 = vshrl.u32 %v8475_v33, 16  ;;  %v1943_v40 = vshll.u32 %v8475_v33, 16 }
  0xf0   : > { %9694 = vmatpush3.bf16.msra.mxu1 %v10728_v42  ;;  %v10746_v42 = vld [vmem:[%s13466_s1 + $0x98] sm:$0xff]  }
  0xf1   : > { %9695 = vmatprep.subr.bf16.mxu1 %v10731_v55  ;;  %v1942_v47 = vrot.slane %v1940_v39, 4  ;;  %v1945_v48 = vrot.slane %v1943_v40, 5  ;;  %v10741_v39 = vld [vmem:[%s13466_s1 + $0x180] sm:$0xff]  }
  0xf2   : > { %9768 = vmatpush3.bf16.msra.mxu0 %v10710_v35  ;;  %v1926_v35 = vshrl.u32 %v8473_v30, 16 }
  0xf3   : > { %9769 = vmatprep.subr.bf16.mxu0 %v10713_v38  ;;  %v1946_v61 = vor.u32 %v1945_v48, %v1942_v47 }
  0xf4   : > { %9696 = vmatpush3.bf16.msra.mxu1 %v10731_v55  ;;  %v1928_v44 = vrot.slane %v1926_v35, 4  ;;  %v11676_v55 = vrot.slane %v1904_v32, 4  ;;  %v1231_v32 = vld [vmem:[%s11512_s29 + $0x14] sm:$0x1]  ;;  %v1262_v35 = vrot.slane %v1260_v25, 4 }
  0xf5   : > { %9697 = vmatprep.subr.bf16.mxu1 %v10736_v63  ;;  %v1947_v18 = vrot.slane %v1946_v61, 4  ;;  %v1283_v48 = vshll.u32 %v1231_v32, 16  ;;  %v1293_v61 = vrot.slane %v1291_v52, 5 }
  0xf6   : > { %9770 = vmatpush3.bf16.msra.mxu0 %v10713_v38  ;;  %v11663_v38 = vrot.slane %v1921_v21, 5  ;;  %v1932_v51 = vor.u32 %v1931_v45, %v1928_v44  ;;  %v1910_v10 = vsel %vm11626_vm2, %v11676_v55, %v11654_v28  ;;  %v1246_v21 = vshrl.u32 %v1226_v13, 16  ;;  %v10754_v44 = vld [vmem:[%s13466_s1 + $0xb0] sm:$0xff]  }
  0xf7   : > { %9779 = vmatprep.subr.bf16.mxu0 %v10718_v54  ;;  %v1952_v40 = vsel %vm11626_vm2, %v1947_v18, %v11690_v7  ;;  %v1237_v18 = vld [vmem:[%s11512_s29 + $0x2c] sm:$0x1] }
  0xf8   : > { %9698 = vmatpush3.bf16.msra.mxu1 %v10736_v63  ;;  %v1968_v63 = vshrl.u32 %v8479_v53, 16 }
  0xf9   : > { %9772 = vmatmul.mubr.bf16.vlgmr.msra.gmra.mrb[0].mxu0 %v10719_v57  ;;  %9707 = vmatprep.subr.bf16.mxu1 %v10739_v9  ;;  %v1954_v57 = vshrl.u32 %v8477_v50, 16 }
  0xfa   : > { %9780 = vmatpush3.bf16.msra.mxu0 %v10718_v54  ;;  %9775 = vmatprep.mubr.bf16.mxu0 %v10733_v60  ;;  %v8480_v54 = vld [vmem:[%s11512_s29 + $0xcc] sm:$0x1]  ;;  %v10748_v60 = vld [vmem:[%s13466_s1 + $0xa0] sm:$0xff]   ;;  %v1970_v8 = vrot.slane %v1968_v63, 4 }
  0xfb   : > { %9781 = vmatprep.subr.bf16.mxu0 %v10721_v59  ;;  %9700 = vmatmul.mubr.bf16.vlgmr.msra.gmra.mrb[0].mxu1 %v10740_v14  ;;  %v1956_v3 = vrot.slane %v1954_v57, 4  ;;  %v1977_v5 = vshll.u32 %v8480_v54, 16  ;;  %v1227_v14 = vld [vmem:[%s11512_s29 + $0x4] sm:$0x1] }
  0xfc   : > { %9708 = vmatpush3.bf16.msra.mxu1 %v10739_v9  ;;  %9703 = vmatprep.mubr.bf16.mxu1 %v10752_v26  ;;  %v1973_v9 = vrot.slane %v1971_v0, 5  ;;  %v1255_v24 = vshll.u32 %v1227_v14, 16  ;;  %v1263_v26 = vshll.u32 %v1228_v15, 16  ;;  %v1285_v0 = vrot.slane %v1283_v48, 5 }
  0xfd   : > { %9709 = vmatprep.subr.bf16.mxu1 %v10742_v22  ;;  %v1960_v12 = vor.u32 %v1959_v4, %v1956_v3 }
  0xfe   : > { %9782 = vmatpush3.bf16.msra.mxu0 %v10721_v59  ;;  %v10734_v59 = vld [vmem:[%s13466_s1 + $0x170] sm:$0xff]   ;;  %v1974_v34 = vor.u32 %v1973_v9, %v1970_v8  ;;  %v1265_v36 = vrot.slane %v1263_v26, 5  ;;  %v10756_v8 = vld [vmem:[%s13466_s1 + $0xb8] sm:$0xff]  }
  0xff   : > { %9783 = vmatprep.subr.bf16.mxu0 %v10723_v6  ;;  %v11715_v28 = vrot.slane %v1960_v12, 4 }
 0x100   : > { %9710 = vmatpush3.bf16.msra.mxu1 %v10742_v22  ;;  %v1249_v22 = vshll.u32 %v1226_v13, 16  ;;  %v1266_v45 = vor.u32 %v1265_v36, %v1262_v35  ;;  %v1975_v53 = vrot.slane %v1974_v34, 4  ;;  %v1234_v13 = vld [vmem:[%s11512_s29 + $0x20] sm:$0xf] }
 0x101   : > { %9776 = vmatmul.mubr.bf16.gmra.mrb[4].mxu0 %v10735_v11  ;;  %9711 = vmatprep.subr.bf16.mxu1 %v10744_v29  ;;  %v1924_v11 = vsel %vm11626_vm2, %v11678_v56, %v11663_v38  ;;  %v1233_v38 = vld [vmem:[%s11512_s29 + $0x1c] sm:$0x1] }
 0x102   : > { %9784 = vmatpush3.bf16.msra.mxu0 %v10723_v6  ;;  %9795 = vmatprep.mubr.bf16.mxu0 %v8497_v23  ;;  %v11688_v6 = vrot.slane %v1932_v51, 4  ;;  %v11712_v23 = vrot.slane %v1977_v5, 5  ;;  %v1251_v30 = vrot.slane %v1249_v22, 5  ;;  %v1288_v51 = vshrl.u32 %v1232_v37, 16 }
 0x103   : > { %9785 = vmatprep.subr.bf16.mxu0 %v10725_v17  ;;  %9704 = vmatmul.mubr.bf16.gmra.mrb[4].mxu1 %v10753_v43  ;;  %v1267_v54 = vrot.slane %v1266_v45, 4  ;;  %v1297_v56 = vshll.u32 %v1233_v38, 16  ;;  %v8498_v57 = vcombine.low %v1910_v10, %v1924_v11  ;;  %v10745_v11 = vld [vmem:[%s13466_s1 + $0x190] sm:$0xff]   ;;  %v1305_v22 = vshll.u32 %v1234_v13, 16  ;;  %v1241_v38 = vld [vmem:[%s11512_s29 + $0x3c] sm:$0x1] }
 0x104   : > { %9712 = vmatpush3.bf16.msra.mxu1 %v10744_v29  ;;  %v1248_v29 = vrot.slane %v1246_v21, 4  ;;  %v1938_v33 = vsel %vm11626_vm2, %v11688_v6, %v11686_v1  ;;  %v1966_v6 = vsel %vm11626_vm2, %v11715_v28, %v11709_v19  ;;  %v1980_v7 = vsel %vm11626_vm2, %v1975_v53, %v11712_v23  ;;  %v1239_v28 = vld [vmem:[%s11512_s29 + $0x34] sm:$0x1] }
 0x105   : > { %9713 = vmatprep.subr.bf16.mxu1 %v10746_v42  ;;  %v1272_v62 = vsel %vm11626_vm2, %v1267_v54, %v1271_v46  ;;  %v1299_v1 = vrot.slane %v1297_v56, 5  ;;  %v8499_v3 = vcombine.low %v1938_v33, %v1952_v40  ;;  %v8500_v14 = vcombine.low %v1966_v6, %v1980_v7  ;;  %v1240_v33 = vld [vmem:[%s11512_s29 + $0x38] sm:$0xf]  ;;  %v8582_v6 = vld [vmem:[%s11512_s29 + $0xc] sm:$0x1] }
 0x106   : > { %9786 = vmatpush3.bf16.msra.mxu0 %v10725_v17  ;;  %v10750_v17 = vld [vmem:[%s13466_s1 + $0xa8] sm:$0xff]   ;;  %v1302_v21 = vshrl.u32 %v1234_v13, 16  ;;  %v1307_v32 = vrot.slane %v1305_v22, 5  ;;  %v1347_v46 = vshll.u32 %v1240_v33, 16  ;;  %v8583_v7 = vld [vmem:[%s11512_s29 + $0x10] sm:$0xf] }
 0x107   : > { %9787 = vmatprep.subr.bf16.mxu0 %v10727_v27  ;;  %v10760_v13 = vld [vmem:[%s11512_s29 + $0x18] ss:$8 sps:$4 sm:$0xff]  }
 0x108   : > { %9714 = vmatpush3.bf16.msra.mxu1 %v10746_v42  ;;  %v1257_v42 = vrot.slane %v1255_v24, 5  ;;  %v1238_v24 = vld [vmem:[%s11512_s29 + $0x30] sm:$0xf]  ;;  %v1304_v31 = vrot.slane %v1302_v21, 4  ;;  %v1349_v54 = vrot.slane %v1347_v46, 5 }
 0x109   : > { %9715 = vmatprep.subr.bf16.mxu1 %v10748_v60  ;;  %v1333_v34 = vshll.u32 %v1238_v24, 16  ;;  %v8587_v22 = vld [vmem:[%s11512_s29 + $0x20] sm:$0xf] }
 0x10a   : > { %9788 = vmatpush3.bf16.msra.mxu0 %v10727_v27  ;;  %v1230_v27 = vld [vmem:[%s11512_s29 + $0x10] sm:$0xf]  ;;  %v1308_v40 = vor.u32 %v1307_v32, %v1304_v31  ;;  %v2539_v31 = vshll.u32 %v8587_v22, 16  ;;  %v8589_v32 = vld [vmem:[%s11512_s29 + $0x28] sm:$0xf] }
 0x10b   : > { %9789 = vmatprep.subr.bf16.mxu0 %v10729_v41  ;;  %v1274_v43 = vshrl.u32 %v1230_v27, 16  ;;  %v1277_v47 = vshll.u32 %v1230_v27, 16  ;;  %v1325_v27 = vshll.u32 %v1237_v18, 16 }
 0x10c   : > { %9716 = vmatpush3.bf16.msra.mxu1 %v10748_v60  ;;  %v1290_v60 = vrot.slane %v1288_v51, 4  ;;  %v1309_v48 = vrot.slane %v1308_v40, 4  ;;  %v10749_v51 = vld [vmem:[%s13466_s1 + $0x1a0] sm:$0xff]   ;;  %v8591_v40 = vld [vmem:[%s11512_s29 + $0x30] sm:$0xf] }
 0x10d   : > { %9717 = vmatprep.subr.bf16.mxu1 %v10750_v17  ;;  %v1276_v50 = vrot.slane %v1274_v43, 4  ;;  %v1279_v55 = vrot.slane %v1277_v47, 5  ;;  %v1344_v43 = vshrl.u32 %v1240_v33, 16  ;;  %v1327_v45 = vrot.slane %v1325_v27, 5  ;;  %v10761_v33 = vld [vmem:[%s13466_s1 + $0x1c8] sm:$0xff]  }
 0x10e   : > { %9790 = vmatpush3.bf16.msra.mxu0 %v10729_v41  ;;  %v1252_v41 = vor.u32 %v1251_v30, %v1248_v29  ;;  %v1294_v5 = vor.u32 %v1293_v61, %v1290_v60  ;;  %v1330_v29 = vshrl.u32 %v1238_v24, 16  ;;  %v10747_v30 = vld [vmem:[%s13466_s1 + $0x198] sm:$0xff]   ;;  %v1353_v47 = vshll.u32 %v1241_v38, 16  ;;  %v10751_v61 = vld [vmem:[%s13466_s1 + $0x1a8] sm:$0xff]  }
 0x10f   : > { %9791 = vmatprep.subr.bf16.mxu0 %v10734_v59  ;;  %v1280_v63 = vor.u32 %v1279_v55, %v1276_v50  ;;  %v1346_v50 = vrot.slane %v1344_v43, 4  ;;  %v2541_v38 = vrot.slane %v2539_v31, 5 }
 0x110   : > { %v1253_v49 = vrot.slane %v1252_v41, 4  ;;  %9718 = vmatpush3.bf16.msra.mxu1 %v10750_v17  ;;  %v1295_v10 = vrot.slane %v1294_v5, 4  ;;  %v1236_v17 = vld [vmem:[%s11512_s29 + $0x28] sm:$0xf]  ;;  %v1335_v41 = vrot.slane %v1333_v34, 5 }
 0x111   : > { %9719 = vmatprep.subr.bf16.mxu1 %v10754_v44  ;;  %v1281_v9 = vrot.slane %v1280_v63, 4  ;;  %v1316_v25 = vshrl.u32 %v1236_v17, 16  ;;  %v1319_v26 = vshll.u32 %v1236_v17, 16  ;;  %v8581_v5 = vld [vmem:[%s11512_s29 + $0x8] sm:$0xf] }
 0x112   : > { %9792 = vmatpush3.bf16.msra.mxu0 %v10734_v59  ;;  %v1258_v59 = vsel %vm11626_vm2, %v1253_v49, %v1257_v42  ;;  %v1300_v15 = vsel %vm11626_vm2, %v1295_v10, %v1299_v1  ;;  %v1339_v42 = vshll.u32 %v1239_v28, 16  ;;  %v2497_v10 = vshll.u32 %v8581_v5, 16  ;;  %v10766_v17 = vld [vmem:[%s11512_s29 + $0x28] ss:$8 sps:$4 sm:$0xff]  }
 0x113   : > { %9793 = vmatprep.subr.bf16.mxu0 %v10737_v16  ;;  %v8381_v4 = vcombine.low %v1258_v59, %v1272_v62  ;;  %v1286_v12 = vsel %vm11626_vm2, %v1281_v9, %v1285_v0  ;;  %v1318_v36 = vrot.slane %v1316_v25, 4  ;;  %v1321_v37 = vrot.slane %v1319_v26, 5  ;;  %v8588_v25 = vld [vmem:[%s11512_s29 + $0x24] sm:$0x1] }
 0x114   : > { %9720 = vmatpush3.bf16.msra.mxu1 %v10754_v44  ;;  %v8382_v19 = vcombine.low %v1286_v12, %v1300_v15  ;;  %v1341_v53 = vrot.slane %v1339_v42, 5  ;;  %v1355_v59 = vrot.slane %v1353_v47, 5  ;;  %v2494_v9 = vshrl.u32 %v8581_v5, 16  ;;  %v10759_v12 = vld [vmem:[%s13466_s1 + $0x1c0] sm:$0xff]   ;;  %v8585_v15 = vld [vmem:[%s11512_s29 + $0x18] sm:$0xf] }
 0x115   : > { %9723 = vmatprep.mubr.bf16.mxu1 %v8381_v4  ;;  %9721 = vmatprep.subr.bf16.mxu1 %v10756_v8  ;;  %v1322_v44 = vor.u32 %v1321_v37, %v1318_v36  ;;  %v10757_v4 = vld [vmem:[%s13466_s1 + $0x1b8] sm:$0xff]   ;;  %v2522_v26 = vshrl.u32 %v8585_v15, 16  ;;  %v2525_v27 = vshll.u32 %v8585_v15, 16 }
 0x116   : > { %9794 = vmatpush3.bf16.msra.mxu0 %v10737_v16  ;;  %v1235_v16 = vld [vmem:[%s11512_s29 + $0x24] sm:$0x1]  ;;  %v2496_v18 = vrot.slane %v2494_v9, 4 }
 0x117   : > { %9803 = vmatprep.subr.bf16.mxu0 %v10741_v39  ;;  %v1311_v23 = vshll.u32 %v1235_v16, 16  ;;  %v1323_v52 = vrot.slane %v1322_v44, 4  ;;  %v8586_v16 = vld [vmem:[%s11512_s29 + $0x1c] sm:$0x1]  ;;  %v2527_v36 = vrot.slane %v2525_v27, 5 }
 0x118   : > { %9722 = vmatpush3.bf16.msra.mxu1 %v10756_v8  ;;  %v8584_v8 = vld [vmem:[%s11512_s29 + $0x14] sm:$0x1]  ;;  %v8590_v44 = vld [vmem:[%s11512_s29 + $0x2c] sm:$0x1] }
 0x119   : > { %9796 = vmatmul.mubr.bf16.vlgmr.msra.gmra.mrb[0].mxu0 %v8498_v57  ;;  %v1313_v35 = vrot.slane %v1311_v23, 5  ;;  %v1328_v57 = vsel %vm11626_vm2, %v1323_v52, %v1327_v45  ;;  %v2517_v24 = vshll.u32 %v8584_v8, 16  ;;  %v2550_v45 = vshrl.u32 %v8589_v32, 16 }
 0x11a   : > { %9804 = vmatpush3.bf16.msra.mxu0 %v10741_v39  ;;  %9799 = vmatprep.mubr.bf16.mxu0 %v8499_v3  ;;  %v1332_v39 = vrot.slane %v1330_v29, 4  ;;  %v10755_v3 = vld [vmem:[%s13466_s1 + $0x1b0] sm:$0xff]   ;;  %v2531_v29 = vshll.u32 %v8586_v16, 16 }
 0x11b   : > { %9805 = vmatprep.subr.bf16.mxu0 %v10743_v58  ;;  %9724 = vmatmul.mubr.bf16.vlgmr.msra.gmra.mrb[0].mxu1 %v8382_v19  ;;  %v1314_v55 = vsel %vm11626_vm2, %v1309_v48, %v1313_v35  ;;  %v2499_v19 = vrot.slane %v2497_v10, 5  ;;  %v2524_v35 = vrot.slane %v2522_v26, 4  ;;  %v11812_v43 = vrot.slane %v2517_v24, 5 }
 0x11c   : > { %v1336_v49 = vor.u32 %v1335_v41, %v1332_v39  ;;  %v8383_v60 = vcombine.low %v1314_v55, %v1328_v57  ;;  %v2545_v39 = vshll.u32 %v8588_v25, 16  ;;  %v10762_v41 = vld [vmem:[%s13466_s1 + $0x1d0] sm:$0xff]   ;;  %v11819_v48 = vrot.slane %v2531_v29, 5  ;;  %v8593_v55 = vld [vmem:[%s11512_s29 + $0x38] sm:$0xf] }
 0x11d   : > { %v2500_v28 = vor.u32 %v2499_v19, %v2496_v18  ;;  %v2528_v52 = vor.u32 %v2527_v36, %v2524_v35  ;;  %v10770_v57 = vld [vmem:[%s11512_s29 + $0x50] ss:$8 sps:$4 sm:$0xff]   ;;  %v2581_v5 = vshll.u32 %v8593_v55, 16  ;;  %v10772_v35 = vld [vmem:[%s11512_s29 + $0x60] ss:$8 sps:$4 sm:$0xff]  }
 0x11e   : > { %9806 = vmatpush3.bf16.msra.mxu0 %v10743_v58  ;;  %v1337_v56 = vrot.slane %v1336_v49, 4  ;;  %v1350_v58 = vor.u32 %v1349_v54, %v1346_v50  ;;  %9727 = vmatprep.mubr.bf16.mxu1 %v8383_v60  ;;  %v8592_v49 = vld [vmem:[%s11512_s29 + $0x34] sm:$0x1]  ;;  %v2553_v50 = vshll.u32 %v8589_v32, 16  ;;  %v2564_v54 = vshrl.u32 %v8591_v40, 16 }
 0x11f   : > { %9807 = vmatprep.subr.bf16.mxu0 %v10745_v11  ;;  %v11815_v46 = vrot.slane %v2500_v28, 4  ;;  %v10765_v28 = vld [vmem:[%s13466_s1 + $0x1e8] sm:$0xff]   ;;  %v10767_v32 = vld [vmem:[%s13466_s1 + $0x1f0] sm:$0xff]  }
 0x120   : > { %v1342_v62 = vsel %vm11626_vm2, %v1337_v56, %v1341_v53  ;;  %v1351_v63 = vrot.slane %v1350_v58, 4  ;;  %v2552_v53 = vrot.slane %v2550_v45, 4  ;;  %v8594_v56 = vld [vmem:[%s11512_s29 + $0x3c] sm:$0x1]  ;;  %v2555_v60 = vrot.slane %v2553_v50, 5 }
 0x121   : > { %9800 = vmatmul.mubr.bf16.gmra.mrb[4].mxu0 %v8500_v14  ;;  %v2511_v14 = vshll.u32 %v8583_v7, 16  ;;  %v2587_v10 = vshll.u32 %v8594_v56, 16  ;;  %v10778_v36 = vld [vmem:[%s11512_s29 + $0x70] ss:$8 sps:$4 sm:$0xff]  }
 0x122   : > { %9808 = vmatpush3.bf16.msra.mxu0 %v10745_v11  ;;  %9819 = vmatprep.mubr.bf16.mxu0 %v10758_v20  ;;  %v1356_v0 = vsel %vm11626_vm2, %v1351_v63, %v1355_v59  ;;  %v2508_v11 = vshrl.u32 %v8583_v7, 16  ;;  %v2503_v20 = vshll.u32 %v8582_v6, 16  ;;  %v11826_v59 = vrot.slane %v2545_v39, 5  ;;  %v10763_v6 = vld [vmem:[%s13466_s1 + $0x1d8] sm:$0xff]   ;;  %v10779_v39 = vld [vmem:[%s11512_s29 + $0x80] ss:$8 sps:$4 sm:$0xff]  }
 0x123   : > { %9809 = vmatprep.subr.bf16.mxu0 %v10747_v30  ;;  %v8384_v1 = vcombine.low %v1342_v62, %v1356_v0  ;;  %v2513_v23 = vrot.slane %v2511_v14, 5  ;;  %v8596_v62 = vld [vmem:[%s11512_s29 + $0x44] sm:$0x1]  ;;  %v2559_v63 = vshll.u32 %v8590_v44, 16  ;;  %v2566_v0 = vrot.slane %v2564_v54, 4  ;;  %v10775_v44 = vld [vmem:[%s13466_s1 + $0x218] sm:$0xff]  }
 0x124   : > { %v2510_v21 = vrot.slane %v2508_v11, 4  ;;  %v11810_v42 = vrot.slane %v2503_v20, 5  ;;  %v11833_v7 = vrot.slane %v2528_v52, 4  ;;  %v2556_v8 = vor.u32 %v2555_v60, %v2552_v53  ;;  %v10784_v60 = vld [vmem:[%s13470_s27 + $0x50] sm:$0xff]  }
 0x125   : > { %9728 = vmatmul.mubr.bf16.gmra.mrb[4].mxu1 %v8384_v1  ;;  %v2567_v1 = vshll.u32 %v8591_v40, 16  ;;  %v11837_v15 = vrot.slane %v2559_v63, 5  ;;  %v2601_v18 = vshll.u32 %v8596_v62, 16  ;;  %v11844_v24 = vrot.slane %v2587_v10, 5  ;;  %v10786_v62 = vld [vmem:[%s13470_s27 + $0x60] sm:$0xff]   ;;  %v10787_v63 = vld [vmem:[%s13470_s27 + $0x68] sm:$0xff]  }
 0x126   : > { %9810 = vmatpush3.bf16.msra.mxu0 %v10747_v30  ;;  %v2536_v30 = vshrl.u32 %v8587_v22, 16  ;;  %v2514_v34 = vor.u32 %v2513_v23, %v2510_v21  ;;  %v10764_v21 = vld [vmem:[%s13466_s1 + $0x1e0] sm:$0xff]   ;;  %v2557_v22 = vrot.slane %v2556_v8, 4  ;;  %v2506_v40 = vsel %vm11626_vm2, %v11815_v46, %v11810_v42  ;;  %v10777_v42 = vld [vmem:[%s13466_s1 + $0x228] sm:$0xff]   ;;  %v10781_v46 = vld [vmem:[%s13466_s1 + $0x238] sm:$0xff]  }
 0x127   : > { %9811 = vmatprep.subr.bf16.mxu0 %v10749_v51  ;;  %v2569_v9 = vrot.slane %v2567_v1, 5  ;;  %v2603_v27 = vrot.slane %v2601_v18, 5  ;;  %v10789_v1 = vld [vmem:[%s13470_s27 + $0x78] sm:$0xff]  }
 0x128   : > { %v2538_v37 = vrot.slane %v2536_v30, 4  ;;  %v11817_v47 = vrot.slane %v2514_v34, 4  ;;  %v10771_v34 = vld [vmem:[%s13466_s1 + $0x200] sm:$0xff]  }
 0x129   : > { %v2570_v16 = vor.u32 %v2569_v9, %v2566_v0  ;;  %v10788_v0 = vld [vmem:[%s13470_s27 + $0x70] sm:$0xff]  }
 0x12a   : > { %9812 = vmatpush3.bf16.msra.mxu0 %v10749_v51  ;;  %v10768_v51 = vld [vmem:[%s11512_s29 + $0x38] ss:$8 sps:$4 sm:$0xff]   ;;  %v2542_v58 = vor.u32 %v2541_v38, %v2538_v37  ;;  %v10773_v37 = vld [vmem:[%s13466_s1 + $0x208] sm:$0xff]   ;;  %v10774_v38 = vld [vmem:[%s13466_s1 + $0x210] sm:$0xff]  }
 0x12b   : > { %9813 = vmatprep.subr.bf16.mxu0 %v10751_v61  ;;  %v2571_v26 = vrot.slane %v2570_v16, 4 }
 0x12c   : > { %v11835_v11 = vrot.slane %v2542_v58, 4  ;;  %v10782_v58 = vld [vmem:[%s13470_s27 + $0x40] sm:$0xff]  }
 0x12d   : > { %9875 = vmatprep.subr.bf16.mxu1 %v10782_v58 }
 0x12e   : > { %9814 = vmatpush3.bf16.msra.mxu0 %v10751_v61  ;;  %v8595_v61 = vld [vmem:[%s11512_s29 + $0x40] sm:$0xf]  ;;  %v2548_v50 = vsel %vm11626_vm2, %v11835_v11, %v11826_v59  ;;  %9876 = vmatpush3.bf16.msra.mxu1 %v10782_v58  ;;  %v10783_v59 = vld [vmem:[%s13470_s27 + $0x48] sm:$0xff]  }
 0x12f   : > { %9815 = vmatprep.subr.bf16.mxu0 %v10755_v3  ;;  %v2592_v14 = vshrl.u32 %v8595_v61, 16  ;;  %9877 = vmatprep.subr.bf16.mxu1 %v10783_v59 }
 0x131   : > { %v2594_v20 = vrot.slane %v2592_v14, 4 }
 0x132   : > { %9816 = vmatpush3.bf16.msra.mxu0 %v10755_v3  ;;  %v2573_v3 = vshll.u32 %v8592_v49, 16  ;;  %v10776_v49 = vld [vmem:[%s13466_s1 + $0x220] sm:$0xff]   ;;  %9878 = vmatpush3.bf16.msra.mxu1 %v10783_v59 }
 0x133   : > { %9817 = vmatprep.subr.bf16.mxu0 %v10757_v4  ;;  %9879 = vmatprep.subr.bf16.mxu1 %v10784_v60 }
 0x134   : > { %v11839_v19 = vrot.slane %v2573_v3, 5 }
 0x136   : > { %9818 = vmatpush3.bf16.msra.mxu0 %v10757_v4  ;;  %v2578_v4 = vshrl.u32 %v8593_v55, 16  ;;  %v2576_v52 = vsel %vm11626_vm2, %v2571_v26, %v11839_v19  ;;  %9880 = vmatpush3.bf16.msra.mxu1 %v10784_v60 }
 0x137   : > { %9827 = vmatprep.subr.bf16.mxu0 %v10759_v12 }
 0x139   : > { %9820 = vmatmul.mubr.bf16.vlgmr.msra.gmra.mrb[0].mxu0 %v10760_v13  ;;  %v2583_v13 = vrot.slane %v2581_v5, 5 }
 0x13a   : > { %9828 = vmatpush3.bf16.msra.mxu0 %v10759_v12  ;;  %9823 = vmatprep.mubr.bf16.mxu0 %v10766_v17  ;;  %v2580_v12 = vrot.slane %v2578_v4, 4  ;;  %v2595_v17 = vshll.u32 %v8595_v61, 16  ;;  %v10785_v61 = vld [vmem:[%s13470_s27 + $0x58] sm:$0xff]  }
 0x13b   : > { %9829 = vmatprep.subr.bf16.mxu0 %v10761_v33  ;;  %9881 = vmatprep.subr.bf16.mxu1 %v10785_v61 }
 0x13c   : > { %v2584_v23 = vor.u32 %v2583_v13, %v2580_v12  ;;  %v2597_v25 = vrot.slane %v2595_v17, 5  ;;  %9882 = vmatpush3.bf16.msra.mxu1 %v10785_v61  ;;  %v2760_v12 = vlaneseq }
 0x13d   : > { %9883 = vmatprep.subr.bf16.mxu1 %v10786_v62 }
 0x13e   : > { %9830 = vmatpush3.bf16.msra.mxu0 %v10761_v33  ;;  %v2598_v29 = vor.u32 %v2597_v25, %v2594_v20  ;;  %v2585_v30 = vrot.slane %v2584_v23, 4  ;;  %v10769_v33 = vld [vmem:[%s13466_s1 + $0x1f8] sm:$0xff]   ;;  %v2761_v13 = vshrl.u32 %v2760_v12, 7 }
 0x13f   : > { %9831 = vmatprep.subr.bf16.mxu0 %v10762_v41 }
 0x140   : > { %v2599_v31 = vrot.slane %v2598_v29, 4  ;;  %9884 = vmatpush3.bf16.msra.mxu1 %v10786_v62  ;;  %v12023_v14 = vsub.s32 0, %v2761_v13  ;;  %v12028_v16 = vsub.s32 1, %v2761_v13 }
 0x141   : > { %9824 = vmatmul.mubr.bf16.gmra.mrb[4].mxu0 %v10768_v51  ;;  %v2562_v51 = vsel %vm11626_vm2, %v2557_v22, %v11837_v15  ;;  %9885 = vmatprep.subr.bf16.mxu1 %v10787_v63  ;;  %v2759_v15 = vld [vmem:[%s13471_s16] sm:$0x3] }
 0x142   : > { %9832 = vmatpush3.bf16.msra.mxu0 %v10762_v41  ;;  %9843 = vmatprep.mubr.bf16.mxu0 %v10770_v57  ;;  %v2520_v41 = vsel %vm11626_vm2, %v11817_v47, %v11812_v43  ;;  %v10780_v43 = vld [vmem:[%s13466_s1 + $0x230] sm:$0xff]   ;;  %v2534_v47 = vsel %vm11626_vm2, %v11833_v7, %v11819_v48  ;;  %v8615_v54 = vcombine.low %v2562_v51, %v2576_v52  ;;  %v11192_v57 = vmov 0  }
 0x143   : > { %9833 = vmatprep.subr.bf16.mxu0 %v10763_v6  ;;  %v8613_v45 = vcombine.low %v2506_v40, %v2520_v41  ;;  %v8614_v53 = vcombine.low %v2534_v47, %v2548_v50  ;;  %v2590_v48 = vsel %vm11626_vm2, %v2585_v30, %v11844_v24  ;;  %v2604_v55 = vsel %vm11626_vm2, %v2599_v31, %v2603_v27 }
 0x144   : > { %v8616_v56 = vcombine.low %v2590_v48, %v2604_v55  ;;  %784 = vst [vmem:[#allocation2 + $0x18] sm:$0xf] %v11192_v57  ;;  %785 = vst [vmem:[#allocation2 + $0x1c] sm:$0x1] %v11192_v57  ;;  %9886 = vmatpush3.bf16.msra.mxu1 %v10787_v63  ;;  %v12031_v17 = vrot.slane %v2759_v15, %v12023_v14 }
 0x145   : > { %778 = vst [vmem:[#allocation2] sm:$0xf] %v11192_v57  ;;  %779 = vst [vmem:[#allocation2 + $0x4] sm:$0x1] %v11192_v57  ;;  %9887 = vmatprep.subr.bf16.mxu1 %v10788_v0 }
 0x146   : > { %9834 = vmatpush3.bf16.msra.mxu0 %v10763_v6  ;;  %780 = vst [vmem:[#allocation2 + $0x8] sm:$0xf] %v11192_v57  ;;  %781 = vst [vmem:[#allocation2 + $0xc] sm:$0x1] %v11192_v57  ;;  %v12016_v6 = vld [vmem:[%s13470_s27] sm:$0xff]  }
 0x147   : > { %9835 = vmatprep.subr.bf16.mxu0 %v10764_v21  ;;  %782 = vst [vmem:[#allocation2 + $0x10] sm:$0xf] %v11192_v57  ;;  %783 = vst [vmem:[#allocation2 + $0x14] sm:$0x1] %v11192_v57 }
 0x148   : > { %786 = vst [vmem:[#allocation2 + $0x20] sm:$0xf] %v11192_v57  ;;  %787 = vst [vmem:[#allocation2 + $0x24] sm:$0x1] %v11192_v57  ;;  %9888 = vmatpush3.bf16.msra.mxu1 %v10788_v0 }
 0x149   : > { %788 = vst [vmem:[#allocation2 + $0x28] sm:$0xf] %v11192_v57  ;;  %789 = vst [vmem:[#allocation2 + $0x2c] sm:$0x1] %v11192_v57  ;;  %9889 = vmatprep.subr.bf16.mxu1 %v10789_v1 }
 0x14a   : > { %9836 = vmatpush3.bf16.msra.mxu0 %v10764_v21  ;;  %790 = vst [vmem:[#allocation2 + $0x30] sm:$0xf] %v11192_v57  ;;  %791 = vst [vmem:[#allocation2 + $0x34] sm:$0x1] %v11192_v57  ;;  %v12036_v21 = vrot.slane %v2759_v15, %v12028_v16 }
 0x14b   : > { %9837 = vmatprep.subr.bf16.mxu0 %v10765_v28  ;;  %792 = vst [vmem:[#allocation2 + $0x38] sm:$0xf] %v11192_v57  ;;  %793 = vst [vmem:[#allocation2 + $0x3c] sm:$0x1] %v11192_v57  ;;  %v2923_v59 = vld [vmem:[#allocation2 + $0x18] sm:$0xf] }
 0x14c   : > { %794 = vst [vmem:[#allocation2 + $0x40] sm:$0xf] %v11192_v57  ;;  %795 = vst [vmem:[#allocation2 + $0x44] sm:$0x1] %v11192_v57  ;;  %9890 = vmatpush3.bf16.msra.mxu1 %v10789_v1  ;;  %v12033_v18 = vld [vmem:[#allocation2] sm:$0xf] }
 0x14d   : > { %796 = vst [vmem:[#allocation2 + $0x48] sm:$0xf] %v11192_v57  ;;  %797 = vst [vmem:[#allocation2 + $0x4c] sm:$0x1] %v11192_v57  ;;  %9899 = vmatprep.subr.bf16.mxu1 %v12016_v6  ;;  %v2992_v25 = vshrl.u32 %v12033_v18, 16  ;;  %v2995_v26 = vshll.u32 %v12033_v18, 16 }
 0x14e   : > { %9838 = vmatpush3.bf16.msra.mxu0 %v10765_v28  ;;  %842 = vst [vmem:[#allocation5] sm:$0xf] %v11192_v57  ;;  %843 = vst [vmem:[#allocation5 + $0x4] sm:$0xf] %v11192_v57  ;;  %v2926_v60 = vld [vmem:[#allocation2 + $0x1c] sm:$0x1] }
 0x14f   : > { %9839 = vmatprep.subr.bf16.mxu0 %v10767_v32  ;;  %844 = vst [vmem:[#allocation5 + $0x8] sm:$0x3] %v11192_v57  ;;  %845 = vst [vmem:[#allocation5 + $0xc] sm:$0xf] %v11192_v57  ;;  %v2914_v13 = vld [vmem:[#allocation2 + $0xc] sm:$0x1] }
 0x150   : > { %846 = vst [vmem:[#allocation5 + $0x10] sm:$0xf] %v11192_v57  ;;  %847 = vst [vmem:[#allocation5 + $0x14] sm:$0x3] %v11192_v57 }
 0x151   : > { %848 = vst [vmem:[#allocation5 + $0x18] sm:$0xf] %v11192_v57  ;;  %849 = vst [vmem:[#allocation5 + $0x1c] sm:$0xf] %v11192_v57 }
 0x152   : > { %9840 = vmatpush3.bf16.msra.mxu0 %v10767_v32  ;;  %850 = vst [vmem:[#allocation5 + $0x20] sm:$0x3] %v11192_v57  ;;  %851 = vst [vmem:[#allocation5 + $0x24] sm:$0xf] %v11192_v57 }
 0x153   : > { %9841 = vmatprep.subr.bf16.mxu0 %v10769_v33  ;;  %852 = vst [vmem:[#allocation5 + $0x28] sm:$0xf] %v11192_v57  ;;  %853 = vst [vmem:[#allocation5 + $0x2c] sm:$0x3] %v11192_v57 }
 0x154   : > { %854 = vst [vmem:[#allocation5 + $0x30] sm:$0xf] %v11192_v57  ;;  %855 = vst [vmem:[#allocation5 + $0x34] sm:$0xf] %v11192_v57 }
 0x155   : > { %856 = vst [vmem:[#allocation5 + $0x38] sm:$0x3] %v11192_v57  ;;  %857 = vst [vmem:[#allocation5 + $0x3c] sm:$0xf] %v11192_v57 }
 0x156   : > { %9842 = vmatpush3.bf16.msra.mxu0 %v10769_v33  ;;  %858 = vst [vmem:[#allocation5 + $0x40] sm:$0xf] %v11192_v57  ;;  %859 = vst [vmem:[#allocation5 + $0x44] sm:$0x3] %v11192_v57 }
 0x157   : > { %9851 = vmatprep.subr.bf16.mxu0 %v10771_v34  ;;  %860 = vst [vmem:[#allocation5 + $0x48] sm:$0xf] %v11192_v57  ;;  %861 = vst [vmem:[#allocation5 + $0x4c] sm:$0xf] %v11192_v57 }
 0x158   : > { %862 = vst [vmem:[#allocation5 + $0x50] sm:$0x3] %v11192_v57  ;;  %863 = vst [vmem:[#allocation5 + $0x54] sm:$0xf] %v11192_v57 }
 0x159   : > { %9844 = vmatmul.mubr.bf16.vlgmr.msra.gmra.mrb[0].mxu0 %v10772_v35  ;;  %864 = vst [vmem:[#allocation5 + $0x58] sm:$0xf] %v11192_v57  ;;  %865 = vst [vmem:[#allocation5 + $0x5c] sm:$0x3] %v11192_v57 }
 0x15a   : > { %9852 = vmatpush3.bf16.msra.mxu0 %v10771_v34  ;;  %9847 = vmatprep.mubr.bf16.mxu0 %v10778_v36  ;;  %866 = vst [vmem:[#allocation5 + $0x60] sm:$0xf] %v11192_v57  ;;  %867 = vst [vmem:[#allocation5 + $0x64] sm:$0xf] %v11192_v57  ;;  %v12046_v36 = vrot.slane %v2992_v25, 4 }
 0x15b   : > { %9853 = vmatprep.subr.bf16.mxu0 %v10773_v37  ;;  %868 = vst [vmem:[#allocation5 + $0x68] sm:$0x3] %v11192_v57  ;;  %869 = vst [vmem:[#allocation5 + $0x6c] sm:$0xf] %v11192_v57  ;;  %v2929_v25 = vld [vmem:[#allocation2 + $0x20] sm:$0xf] }
 0x15c   : > { %870 = vst [vmem:[#allocation5 + $0x70] sm:$0xf] %v11192_v57  ;;  %871 = vst [vmem:[#allocation5 + $0x74] sm:$0x3] %v11192_v57 }
 0x15d   : > { %872 = vst [vmem:[#allocation5 + $0x78] sm:$0xf] %v11192_v57  ;;  %873 = vst [vmem:[#allocation5 + $0x7c] sm:$0xf] %v11192_v57 }
 0x15e   : > { %9854 = vmatpush3.bf16.msra.mxu0 %v10773_v37  ;;  %874 = vst [vmem:[#allocation5 + $0x80] sm:$0x3] %v11192_v57  ;;  %875 = vst [vmem:[#allocation5 + $0x84] sm:$0xf] %v11192_v57  ;;  %v12048_v37 = vrot.slane %v2995_v26, 5 }
 0x15f   : > { %9855 = vmatprep.subr.bf16.mxu0 %v10774_v38  ;;  %876 = vst [vmem:[#allocation5 + $0x88] sm:$0xf] %v11192_v57  ;;  %877 = vst [vmem:[#allocation5 + $0x8c] sm:$0x3] %v11192_v57 }
 0x160   : > { %878 = vst [vmem:[#allocation5 + $0x90] sm:$0xf] %v11192_v57  ;;  %879 = vst [vmem:[#allocation5 + $0x94] sm:$0xf] %v11192_v57 }
 0x161   : > { %9848 = vmatmul.mubr.bf16.gmra.mrb[4].mxu0 %v10779_v39  ;;  %880 = vst [vmem:[#allocation5 + $0x98] sm:$0x3] %v11192_v57  ;;  %881 = vst [vmem:[#allocation5 + $0x9c] sm:$0xf] %v11192_v57 }
 0x162   : > { %9856 = vmatpush3.bf16.msra.mxu0 %v10774_v38  ;;  %9867 = vmatprep.mubr.bf16.mxu0 %v8613_v45  ;;  %882 = vst [vmem:[#allocation5 + $0xa0] sm:$0xf] %v11192_v57  ;;  %883 = vst [vmem:[#allocation5 + $0xa4] sm:$0x3] %v11192_v57  ;;  %v12052_v45 = vld [vmem:[#allocation2 + $0x4] sm:$0x1] }
 0x163   : > { %9857 = vmatprep.subr.bf16.mxu0 %v10775_v44  ;;  %884 = vst [vmem:[#allocation5 + $0xa8] sm:$0xf] %v11192_v57  ;;  %885 = vst [vmem:[#allocation5 + $0xac] sm:$0xf] %v11192_v57  ;;  %v3001_v47 = vshll.u32 %v12052_v45, 16 }
 0x164   : > { %886 = vst [vmem:[#allocation5 + $0xb0] sm:$0x3] %v11192_v57  ;;  %887 = vst [vmem:[#allocation5 + $0xb4] sm:$0xf] %v11192_v57 }
 0x165   : > { %888 = vst [vmem:[#allocation5 + $0xb8] sm:$0xf] %v11192_v57  ;;  %889 = vst [vmem:[#allocation5 + $0xbc] sm:$0x3] %v11192_v57 }
 0x166   : > { %9858 = vmatpush3.bf16.msra.mxu0 %v10775_v44  ;;  %890 = vst [vmem:[#allocation5 + $0xc0] sm:$0xf] %v11192_v57  ;;  %891 = vst [vmem:[#allocation5 + $0xc4] sm:$0xf] %v11192_v57 }
 0x167   : > { %9859 = vmatprep.subr.bf16.mxu0 %v10776_v49  ;;  %892 = vst [vmem:[#allocation5 + $0xc8] sm:$0x3] %v11192_v57  ;;  %893 = vst [vmem:[#allocation5 + $0xcc] sm:$0xf] %v11192_v57 }
 0x168   : > { %894 = vst [vmem:[#allocation5 + $0xd0] sm:$0xf] %v11192_v57  ;;  %895 = vst [vmem:[#allocation5 + $0xd4] sm:$0x3] %v11192_v57 }
 0x169   : > { %896 = vst [vmem:[#allocation5 + $0xd8] sm:$0xf] %v11192_v57  ;;  %897 = vst [vmem:[#allocation5 + $0xdc] sm:$0xf] %v11192_v57 }
 0x16a   : > { %9860 = vmatpush3.bf16.msra.mxu0 %v10776_v49  ;;  %898 = vst [vmem:[#allocation5 + $0xe0] sm:$0x3] %v11192_v57  ;;  %899 = vst [vmem:[#allocation5 + $0xe4] sm:$0xf] %v11192_v57 }
 0x16b   : > { %9861 = vmatprep.subr.bf16.mxu0 %v10777_v42  ;;  %900 = vst [vmem:[#allocation5 + $0xe8] sm:$0xf] %v11192_v57  ;;  %901 = vst [vmem:[#allocation5 + $0xec] sm:$0x3] %v11192_v57 }
 0x16e   : > { %9862 = vmatpush3.bf16.msra.mxu0 %v10777_v42 }
 0x16f   : > { %9863 = vmatprep.subr.bf16.mxu0 %v10780_v43 }
 0x172   : > { %9864 = vmatpush3.bf16.msra.mxu0 %v10780_v43 }
 0x173   : > { %9865 = vmatprep.subr.bf16.mxu0 %v10781_v46 }
 0x176   : > { %9866 = vmatpush3.bf16.msra.mxu0 %v10781_v46 }
 0x179   : > { %9868 = vmatmul.mubr.bf16.vlgmr.msra.gmra.mrb[0].mxu0 %v8614_v53 }
 0x17a   : > { %9871 = vmatprep.mubr.bf16.mxu0 %v8615_v54  ;;  %v2998_v54 = vor.u32 %v12048_v37, %v12046_v36 }
 0x181   : > { %9872 = vmatmul.mubr.bf16.gmra.mrb[4].mxu0 %v8616_v56 }
 0x1ee   : > { %v9725_v3 = vpop.f32.mrb[0].mxu1 }
 0x1ef   : > { %v1472_v4 = vpop.f32.mrb[1].mxu1 }
 0x1f0   : > { %v9726_v5 = vpop.f32.mrb[2].mxu1 }
 0x1f1   : > { %v1475_v7 = vpop.f32.mrb[3].mxu1 }
 0x1f8   : > { %v9729_v8 = vpop.f32.mrb[4].mxu1 }
 0x1f9   : > { %v1488_v9 = vpop.f32.mrb[5].mxu1 }
 0x1fa   : > { %v12019_v10 = vpop.f32.mrb[6].mxu1 }
 0x1fb   : > { %v12021_v11 = vpop.f32.mrb[7].mxu1 }
 0x24c   : > { %v9869_v19 = vpop.f32.mrb[0].mxu0 }
 0x24d   : > { %v10419_v20 = vadd.f32 %v9869_v19, %v9725_v3  ;;  %v2720_v22 = vpop.f32.mrb[1].mxu0 }
 0x24e   : > { %v10420_v23 = vadd.f32 %v2720_v22, %v1472_v4  ;;  %v9870_v24 = vpop.f32.mrb[2].mxu0  ;;  %v2908_v4 = vld [vmem:[#allocation2 + $0x8] sm:$0xf] }
 0x24f   : > { %v2766_v27 = vmul.f32 %v10419_v20, %v12031_v17  ;;  %v10421_v28 = vadd.f32 %v9870_v24, %v9726_v5  ;;  %v2723_v29 = vpop.f32.mrb[3].mxu0 }
 0x250   : > { %v2764_v30 = vmul.f32 %v10420_v23, %v12031_v17  ;;  %v10422_v31 = vadd.f32 %v2723_v29, %v1475_v7  ;;  %v2932_v29 = vld [vmem:[#allocation2 + $0x24] sm:$0x1] }
 0x251   : > { %v2778_v32 = vadd.f32 %v12036_v21, %v2766_v27  ;;  %v2767_v33 = vmul.f32 %v10421_v28, %v12031_v17 }
 0x252   : > { %v2776_v34 = vadd.f32 %v12036_v21, %v2764_v30  ;;  %v2765_v35 = vmul.f32 %v10422_v31, %v12031_v17 }
 0x253   : > { %v2786_v38 = vmax.f32 %v2778_v32, 0.0  ;;  %v2779_v39 = vadd.f32 %v12036_v21, %v2767_v33 }
 0x254   : > { %v2784_v40 = vmax.f32 %v2776_v34, 0.0  ;;  %v2777_v41 = vadd.f32 %v12036_v21, %v2765_v35  ;;  %v9873_v44 = vpop.f32.mrb[4].mxu0 }
 0x255   : > { %v9221_v49 = vpack.c.bf16 %v2786_v38, %v2786_v38  ;;  %v2787_v42 = vmax.f32 %v2779_v39, 0.0  ;;  %v10423_v43 = vadd.f32 %v9873_v44, %v9729_v8  ;;  %v2736_v46 = vpop.f32.mrb[5].mxu0  ;;  %v2917_v38 = vld [vmem:[#allocation2 + $0x10] sm:$0xf]  ;;  %v2920_v39 = vld [vmem:[#allocation2 + $0x14] sm:$0x1] }
 0x256   : > { %v9219_v50 = vpack.c.bf16 %v2784_v40, %v2784_v40  ;;  %v2785_v51 = vmax.f32 %v2777_v41, 0.0  ;;  %v10424_v52 = vadd.f32 %v2736_v46, %v1488_v9  ;;  %v9874_v53 = vpop.f32.mrb[6].mxu0 }
 0x257   : > { %v2841_v48 = vshrl.u32 %v9221_v49, 16  ;;  %v2844_v55 = vshll.u32 %v9221_v49, 16  ;;  %v9222_v56 = vpack.c.bf16 %v2787_v42, %v2787_v42  ;;  %v2770_v57 = vmul.f32 %v10423_v43, %v12031_v17  ;;  %v2739_v58 = vpop.f32.mrb[7].mxu0 }
 0x258   : > { %v2825_v61 = vshrl.u32 %v9219_v50, 16  ;;  %v2828_v62 = vshll.u32 %v9219_v50, 16  ;;  %v9220_v63 = vpack.c.bf16 %v2785_v51, %v2785_v51  ;;  %v2768_v0 = vmul.f32 %v10424_v52, %v12031_v17 }
 0x259   : > { %v2843_v1 = vrot.slane %v2841_v48, 7  ;;  %v2849_v5 = vshrl.u32 %v9222_v56, 16  ;;  %v2852_v7 = vshll.u32 %v9222_v56, 16  ;;  %v2782_v8 = vadd.f32 %v12036_v21, %v2770_v57 }
 0x25a   : > { %v2827_v12 = vrot.slane %v2825_v61, 7  ;;  %v2833_v15 = vshrl.u32 %v9220_v63, 16  ;;  %v2836_v19 = vshll.u32 %v9220_v63, 16  ;;  %v2780_v20 = vadd.f32 %v12036_v21, %v2768_v0  ;;  %v2950_v0 = vld [vmem:[#allocation2 + $0x3c] sm:$0x1] }
 0x25b   : > { %v2846_v22 = vor.u32 %v2844_v55, %v2843_v1  ;;  %v2847_v23 = vrot.slane %v2843_v1, 4  ;;  %v2851_v24 = vrot.slane %v2849_v5, 7  ;;  %v2790_v26 = vmax.f32 %v2782_v8, 0.0  ;;  %v2935_v1 = vld [vmem:[#allocation2 + $0x28] sm:$0xf] }
 0x25c   : > { %v2830_v27 = vor.u32 %v2828_v62, %v2827_v12  ;;  %v2831_v28 = vrot.slane %v2827_v12, 4  ;;  %v2835_v30 = vrot.slane %v2833_v15, 7  ;;  %v2788_v31 = vmax.f32 %v2780_v20, 0.0 }
 0x25d   : > { %v2924_v32 = vsel %vm12061_vm7, %v2846_v22, %v2923_v59  ;;  %v2927_v33 = vsel %vm12068_vm8, %v2847_v23, %v2926_v60  ;;  %v2854_v34 = vor.u32 %v2852_v7, %v2851_v24  ;;  %v2855_v35 = vrot.slane %v2851_v24, 4 }
 0x25e   : > { %2925 = vst [vmem:[#allocation2 + $0x18] sm:$0xf] %v2924_v32  ;;  %2928 = vst [vmem:[#allocation2 + $0x1c] sm:$0x1] %v2927_v33  ;;  %v2909_v40 = vsel %vm12061_vm7, %v2830_v27, %v2908_v4  ;;  %v2915_v41 = vsel %vm12068_vm8, %v2831_v28, %v2914_v13  ;;  %v2838_v44 = vor.u32 %v2836_v19, %v2835_v30  ;;  %v2839_v49 = vrot.slane %v2835_v30, 4 }
 0x25f   : > { %2910 = vst [vmem:[#allocation2 + $0x8] sm:$0xf] %v2909_v40  ;;  %2916 = vst [vmem:[#allocation2 + $0xc] sm:$0x1] %v2915_v41  ;;  %v2930_v42 = vsel %vm12061_vm7, %v2854_v34, %v2929_v25  ;;  %v2933_v43 = vsel %vm12068_vm8, %v2855_v35, %v2932_v29  ;;  %v9225_v46 = vpack.c.bf16 %v2790_v26, %v2790_v26  ;;  %v12096_v61 = vrot.slane %v2998_v54, 4 }
 0x260   : > { %v9223_v50 = vpack.c.bf16 %v2788_v31, %v2788_v31  ;;  %2931 = vst [vmem:[#allocation2 + $0x20] sm:$0xf] %v2930_v42  ;;  %2934 = vst [vmem:[#allocation2 + $0x24] sm:$0x1] %v2933_v43  ;;  %v2918_v51 = vsel %vm12061_vm7, %v2838_v44, %v2917_v38  ;;  %v2921_v52 = vsel %vm12068_vm8, %v2839_v49, %v2920_v39  ;;  %v12100_v62 = vrot.slane %v3001_v47, 5 }
 0x261   : > { %v10425_v48 = vadd.f32 %v9874_v53, %v12019_v10  ;;  %v10426_v55 = vadd.f32 %v2739_v58, %v12021_v11  ;;  %2919 = vst [vmem:[#allocation2 + $0x10] sm:$0xf] %v2918_v51  ;;  %2922 = vst [vmem:[#allocation2 + $0x14] sm:$0x1] %v2921_v52  ;;  %v2873_v56 = vshrl.u32 %v9225_v46, 16  ;;  %v2876_v53 = vshll.u32 %v9225_v46, 16 }
 0x262   : > { %v2857_v57 = vshrl.u32 %v9223_v50, 16  ;;  %v2947_v11 = vld [vmem:[#allocation2 + $0x38] sm:$0xf]  ;;  %v2860_v63 = vshll.u32 %v9223_v50, 16  ;;  %v2938_v4 = vld [vmem:[#allocation2 + $0x2c] sm:$0x1]  ;;  %v3004_v15 = vsel %vm11626_vm2, %v12096_v61, %v12100_v62 }
 0x263   : > { %v2771_v59 = vmul.f32 %v10425_v48, %v12031_v17  ;;  %v2769_v60 = vmul.f32 %v10426_v55, %v12031_v17  ;;  %v2875_v10 = vrot.slane %v2873_v56, 7  ;;  %v2953_v41 = vld [vmem:[#allocation2 + $0x40] sm:$0xf]  ;;  %v2956_v44 = vld [vmem:[#allocation2 + $0x44] sm:$0x1] }
 0x264   : > { %v2859_v58 = vrot.slane %v2857_v57, 7  ;;  %v2941_v49 = vld [vmem:[#allocation2 + $0x30] sm:$0xf]  ;;  %v2944_v42 = vld [vmem:[#allocation2 + $0x34] sm:$0x1] }
 0x265   : > { %v2783_v5 = vadd.f32 %v12036_v21, %v2771_v59  ;;  %v2781_v17 = vadd.f32 %v12036_v21, %v2769_v60  ;;  %v2878_v7 = vor.u32 %v2876_v53, %v2875_v10  ;;  %v2879_v36 = vrot.slane %v2875_v10, 4  ;;  %v12127_v30 = vld [vmem:[#allocation2 + $0x18] sm:$0xf]  ;;  %v12132_v40 = vld [vmem:[#allocation2 + $0x1c] sm:$0x1] }
 0x266   : > { %v2862_v37 = vor.u32 %v2860_v63, %v2859_v58  ;;  %v2863_v54 = vrot.slane %v2859_v58, 4  ;;  %v12104_v47 = vld [vmem:[#allocation2 + $0x8] sm:$0xf]  ;;  %v12106_v13 = vld [vmem:[#allocation2 + $0xc] sm:$0x1]  ;;  %v3034_v59 = vshrl.u32 %v12127_v30, 16 }
 0x267   : > { %v2791_v8 = vmax.f32 %v2783_v5, 0.0  ;;  %v2789_v12 = vmax.f32 %v2781_v17, 0.0  ;;  %v2948_v19 = vsel %vm12061_vm7, %v2878_v7, %v2947_v11  ;;  %v2951_v21 = vsel %vm12068_vm8, %v2879_v36, %v2950_v0  ;;  %v12137_v0 = vld [vmem:[#allocation2 + $0x20] sm:$0xf]  ;;  %v12139_v7 = vld [vmem:[#allocation2 + $0x24] sm:$0x1] }
 0x268   : > { %v2936_v20 = vsel %vm12061_vm7, %v2862_v37, %v2935_v1  ;;  %v2939_v22 = vsel %vm12068_vm8, %v2863_v54, %v2938_v4  ;;  %2949 = vst [vmem:[#allocation2 + $0x38] sm:$0xf] %v2948_v19  ;;  %2952 = vst [vmem:[#allocation2 + $0x3c] sm:$0x1] %v2951_v21  ;;  %v3006_v25 = vshrl.u32 %v12104_v47, 16  ;;  %v3009_v26 = vshll.u32 %v12104_v47, 16 }
 0x269   : > { %2937 = vst [vmem:[#allocation2 + $0x28] sm:$0xf] %v2936_v20  ;;  %2940 = vst [vmem:[#allocation2 + $0x2c] sm:$0x1] %v2939_v22  ;;  %v9226_v23 = vpack.c.bf16 %v2791_v8, %v2791_v8  ;;  %v9224_v24 = vpack.c.bf16 %v2789_v12, %v2789_v12  ;;  %v12122_v27 = vld [vmem:[#allocation2 + $0x10] sm:$0xf] }
 0x26a   : > { %v12124_v28 = vld [vmem:[#allocation2 + $0x14] sm:$0x1]  ;;  %v3015_v29 = vshll.u32 %v12106_v13, 16  ;;  %v3020_v31 = vshrl.u32 %v12122_v27, 16  ;;  %v3023_v32 = vshll.u32 %v12122_v27, 16  ;;  %v3008_v43 = vrot.slane %v3006_v25, 4 }
 0x26b   : > { %v3029_v33 = vshll.u32 %v12124_v28, 16  ;;  %v2881_v34 = vshrl.u32 %v9226_v23, 16  ;;  %v2884_v35 = vshll.u32 %v9226_v23, 16  ;;  %v2865_v38 = vshrl.u32 %v9224_v24, 16 }
 0x26c   : > { %v2868_v39 = vshll.u32 %v9224_v24, 16  ;;  %v3011_v46 = vrot.slane %v3009_v26, 5  ;;  %v3017_v50 = vrot.slane %v3015_v29, 5  ;;  %v3022_v51 = vrot.slane %v3020_v31, 4 }
 0x26d   : > { %v2883_v52 = vrot.slane %v2881_v34, 7  ;;  %v2867_v48 = vrot.slane %v2865_v38, 7  ;;  %v3025_v55 = vrot.slane %v3023_v32, 5  ;;  %v3031_v56 = vrot.slane %v3029_v33, 5 }
 0x26e   : > { %v3012_v57 = vor.u32 %v3011_v46, %v3008_v43  ;;  %v3037_v60 = vshll.u32 %v12127_v30, 16  ;;  %v3043_v10 = vshll.u32 %v12132_v40, 16  ;;  %v3036_v5 = vrot.slane %v3034_v59, 4 }
 0x26f   : > { %v2886_v53 = vor.u32 %v2884_v35, %v2883_v52  ;;  %v2887_v11 = vrot.slane %v2883_v52, 4  ;;  %v2870_v58 = vor.u32 %v2868_v39, %v2867_v48  ;;  %v2871_v63 = vrot.slane %v2867_v48, 4  ;;  %v12155_v24 = vld [vmem:[#allocation2 + $0x38] sm:$0xf]  ;;  %v10792_v48 = vld [vmem:[%s13470_s27 + $0x10] sm:$0xff]  }
 0x270   : > { %v3013_v1 = vrot.slane %v3012_v57, 4  ;;  %v3026_v4 = vor.u32 %v3025_v55, %v3022_v51  ;;  %v3039_v17 = vrot.slane %v3037_v60, 5  ;;  %v12149_v12 = vld [vmem:[#allocation2 + $0x28] sm:$0xf]  ;;  %v3045_v22 = vrot.slane %v3043_v10, 5 }
 0x271   : > { %v2954_v36 = vsel %vm12061_vm7, %v2886_v53, %v2953_v41  ;;  %v2957_v37 = vsel %vm12068_vm8, %v2887_v11, %v2956_v44  ;;  %v2942_v54 = vsel %vm12061_vm7, %v2870_v58, %v2941_v49  ;;  %v2945_v8 = vsel %vm12068_vm8, %v2871_v63, %v2944_v42  ;;  %v12153_v23 = vld [vmem:[#allocation2 + $0x2c] sm:$0x1]  ;;  %v3388_v11 = vld [vmem:[#allocation2 + $0x10] sm:$0xe] }
 0x272   : > { %2955 = vst [vmem:[#allocation2 + $0x40] sm:$0xf] %v2954_v36  ;;  %2958 = vst [vmem:[#allocation2 + $0x44] sm:$0x1] %v2957_v37  ;;  %v3018_v19 = vsel %vm11626_vm2, %v3013_v1, %v3017_v50  ;;  %v3027_v21 = vrot.slane %v3026_v4, 4  ;;  %v3040_v20 = vor.u32 %v3039_v17, %v3036_v5  ;;  %v3048_v9 = vshrl.u32 %v12137_v0, 16 }
 0x273   : > { %2943 = vst [vmem:[#allocation2 + $0x30] sm:$0xf] %v2942_v54  ;;  %2946 = vst [vmem:[#allocation2 + $0x34] sm:$0x1] %v2945_v8  ;;  %v8649_v3 = vcombine.low %v3004_v15, %v3018_v19  ;;  %v3051_v25 = vshll.u32 %v12137_v0, 16  ;;  %v3057_v26 = vshll.u32 %v12139_v7, 16 }
 0x274   : > { %v3032_v29 = vsel %vm11626_vm2, %v3027_v21, %v3031_v56  ;;  %v3041_v31 = vrot.slane %v3040_v20, 4  ;;  %v3062_v32 = vshrl.u32 %v12149_v12, 16  ;;  %v3065_v33 = vshll.u32 %v12149_v12, 16  ;;  %v10791_v44 = vld [vmem:[%s13470_s27 + $0x8] sm:$0xff]   ;;  %v12177_v50 = vld [vmem:[#allocation2 + $0x3c] sm:$0x1] }
 0x275   : > { %9891 = vmatprep.mubr.bf16.mxu1 %v8649_v3  ;;  %v3050_v34 = vrot.slane %v3048_v9, 4  ;;  %v3053_v35 = vrot.slane %v3051_v25, 5  ;;  %v3071_v61 = vshll.u32 %v12153_v23, 16  ;;  %v3090_v39 = vshrl.u32 %v12155_v24, 16  ;;  %v3389_v4 = vld [vmem:[#allocation2 + $0x18] sm:$0xe] }
 0x276   : > { %v3046_v62 = vsel %vm11626_vm2, %v3041_v31, %v3045_v22  ;;  %v3064_v15 = vrot.slane %v3062_v32, 4  ;;  %v3067_v38 = vrot.slane %v3065_v33, 5  ;;  %v3093_v42 = vshll.u32 %v12155_v24, 16  ;;  %v10794_v3 = vld [vmem:[%s13470_s27 + $0x18] sm:$0xff]  }
 0x277   : > { %v8650_v41 = vcombine.low %v3032_v29, %v3046_v62  ;;  %v3054_v49 = vor.u32 %v3053_v35, %v3050_v34  ;;  %v3059_v43 = vrot.slane %v3057_v26, 5  ;;  %v3092_v51 = vrot.slane %v3090_v39, 4  ;;  %v10795_v35 = vld [vmem:[%s13470_s27 + $0x20] sm:$0xff]   ;;  %v10796_v62 = vld [vmem:[%s13470_s27 + $0x28] sm:$0xff]   ;;  %v10869_v19 = vld [vmem:[%s13418_s7 + $0x18] sm:$0xff]  }
 0x278   : > { %v3068_v46 = vor.u32 %v3067_v38, %v3064_v15  ;;  %v3095_v57 = vrot.slane %v3093_v42, 5  ;;  %v3073_v60 = vrot.slane %v3071_v61, 5  ;;  %v3099_v1 = vshll.u32 %v12177_v50, 16  ;;  %v10797_v15 = vld [vmem:[%s13470_s27 + $0x30] sm:$0xff]   ;;  %v3386_v38 = vld [vmem:[#allocation2] sm:$0xe] }
 0x279   : > { %9892 = vmatmul.mubr.bf16.vlgmr.msra.gmra.mrb[8].mxu1 %v8650_v41  ;;  %v3055_v52 = vrot.slane %v3054_v49, 4  ;;  %v8675_v21 = vrot.slane %v3388_v11, 9  ;;  %v3423_v20 = vrot.slane %v12124_v28, 5  ;;  %v8676_v22 = vrot.slane %v3389_v4, 9  ;;  %v3387_v39 = vld [vmem:[#allocation2 + $0x8] sm:$0xe] }
 0x27a   : > { %v12182_v55 = vld [vmem:[#allocation2 + $0x30] sm:$0xf]  ;;  %v12184_v56 = vld [vmem:[#allocation2 + $0x34] sm:$0x1]  ;;  %9900 = vmatpush3.bf16.msra.mxu1 %v12016_v6  ;;  %v3069_v59 = vrot.slane %v3068_v46, 4  ;;  %v3096_v63 = vor.u32 %v3095_v57, %v3092_v51  ;;  %v3427_v9 = vrot.slane %v12132_v40, 5  ;;  %v8661_v61 = vcombine.low %v12033_v18, %v12104_v47 }
 0x27b   : > { %v3076_v10 = vshrl.u32 %v12182_v55, 16  ;;  %v3079_v53 = vshll.u32 %v12182_v55, 16  ;;  %9901 = vmatprep.subr.bf16.mxu1 %v10791_v44  ;;  %v3085_v58 = vshll.u32 %v12184_v56, 16  ;;  %v3060_v5 = vsel %vm11626_vm2, %v3055_v52, %v3059_v43  ;;  %v10798_v18 = vld [vmem:[%s13470_s27 + $0x38] sm:$0xff]   ;;  %v10800_v47 = vld [vmem:[%s13470_s27 + $0x80] sm:$0xff]  }
 0x27c   : > { %v3074_v6 = vsel %vm11626_vm2, %v3069_v59, %v3073_v60  ;;  %v3097_v54 = vrot.slane %v3096_v63, 4  ;;  %v3101_v29 = vrot.slane %v3099_v1, 5  ;;  %v12208_v31 = vsel %vm12197_vm11, %v8675_v21, %v3423_v20  ;;  %v10806_v52 = vld [vmem:[%s13470_s27 + $0xa0] sm:$0xff]   ;;  %v10809_v57 = vld [vmem:[%s13470_s27 + $0xb8] sm:$0xff]   ;;  %v3392_v1 = vld [vmem:[#allocation2 + $0x30] sm:$0xe] }
 0x27d   : > { %v3078_v17 = vrot.slane %v3076_v10, 4  ;;  %v3081_v36 = vrot.slane %v3079_v53, 5  ;;  %v8651_v37 = vcombine.low %v3060_v5, %v3074_v6  ;;  %v3087_v26 = vrot.slane %v3085_v58, 5  ;;  %v3390_v59 = vld [vmem:[#allocation2 + $0x20] sm:$0xe]  ;;  %v10814_v20 = vld [vmem:[%s13470_s27 + $0xd8] sm:$0xff]  }
 0x27e   : > { %9902 = vmatpush3.bf16.msra.mxu1 %v10791_v44  ;;  %v12212_v32 = vsel %vm12197_vm11, %v8676_v22, %v3427_v9  ;;  %v3102_v33 = vsel %vm11626_vm2, %v3097_v54, %v3101_v29  ;;  %v8662_v41 = vcombine.low %v12122_v27, %v12127_v30  ;;  %v10802_v44 = vld [vmem:[%s13470_s27 + $0x88] sm:$0xff]   ;;  %v8663_v49 = vcombine.low %v12137_v0, %v12149_v12  ;;  %v10804_v27 = vld [vmem:[%s13470_s27 + $0x90] sm:$0xff]   ;;  %v10810_v53 = vld [vmem:[%s13470_s27 + $0xc0] sm:$0xff]  }
 0x27f   : > { %v3082_v8 = vor.u32 %v3081_v36, %v3078_v17  ;;  %9895 = vmatprep.mubr.bf16.mxu1 %v8651_v37  ;;  %9903 = vmatprep.subr.bf16.mxu1 %v10792_v48  ;;  %v8698_v40 = vcombine.low %v12208_v31, %v12212_v32  ;;  %v8673_v42 = vrot.slane %v3386_v38, 9  ;;  %v3415_v43 = vrot.slane %v12052_v45, 5  ;;  %v3393_v5 = vld [vmem:[#allocation2 + $0x38] sm:$0xe]  ;;  %v10812_v54 = vld [vmem:[%s13470_s27 + $0xd0] sm:$0xff]  }
 0x280   : > { %v8674_v46 = vrot.slane %v3387_v39, 9  ;;  %v3419_v51 = vrot.slane %v12106_v13, 5  ;;  %v8664_v45 = vcombine.low %v12182_v55, %v12155_v24  ;;  %v10805_v13 = vld [vmem:[%s13470_s27 + $0x98] sm:$0xff]   ;;  %v10807_v24 = vld [vmem:[%s13470_s27 + $0xa8] sm:$0xff]   ;;  %v3435_v10 = vrot.slane %v12153_v23, 5 }
 0x281   : > { %v3083_v25 = vrot.slane %v3082_v8, 4  ;;  %v3416_v30 = vsel %vm12197_vm11, %v8673_v42, %v3415_v43  ;;  %v3391_v55 = vld [vmem:[#allocation2 + $0x28] sm:$0xe]  ;;  %v8677_v11 = vrot.slane %v3390_v59, 9  ;;  %v3431_v58 = vrot.slane %v12139_v7, 5  ;;  %v10818_v32 = vld [vmem:[%s13470_s27 + $0xf8] sm:$0xff]  }
 0x282   : > { %9904 = vmatpush3.bf16.msra.mxu1 %v10792_v48  ;;  %v3420_v0 = vsel %vm12197_vm11, %v8674_v46, %v3419_v51  ;;  %v10808_v48 = vld [vmem:[%s13470_s27 + $0xb0] sm:$0xff]   ;;  %v8678_v60 = vrot.slane %v3391_v55, 9  ;;  %v10811_v23 = vld [vmem:[%s13470_s27 + $0xc8] sm:$0xff]   ;;  %v8679_v17 = vrot.slane %v3392_v1, 9  ;;  %v3439_v36 = vrot.slane %v12184_v56, 5  ;;  %v10826_v55 = vld [vmem:[%s13470_s27 + $0x120] sm:$0xff]  }
 0x283   : > { %v3088_v28 = vsel %vm11626_vm2, %v3083_v25, %v3087_v26  ;;  %9905 = vmatprep.subr.bf16.mxu1 %v10794_v3  ;;  %v8697_v12 = vcombine.low %v3416_v30, %v3420_v0  ;;  %v3432_v4 = vsel %vm12197_vm11, %v8677_v11, %v3431_v58  ;;  %v8680_v7 = vrot.slane %v3393_v5, 9  ;;  %v10813_v22 = vld [vmem:[#allocation2 + $0x8] ss:$8 sps:$4 sm:$0xff]   ;;  %v10819_v38 = vld [vmem:[#allocation2 + $0x18] ss:$8 sps:$4 sm:$0xff]  }
 0x284   : > { %v8652_v34 = vcombine.low %v3088_v28, %v3102_v33  ;;  %v3436_v63 = vsel %vm12197_vm11, %v8678_v60, %v3435_v10  ;;  %v3443_v37 = vrot.slane %v12177_v50, 5  ;;  %v3440_v8 = vsel %vm12197_vm11, %v8679_v17, %v3439_v36  ;;  %v10815_v50 = vld [vmem:[%s13470_s27 + $0xe0] sm:$0xff]   ;;  %v3771_v9 = vld [vmem:[#allocation2 + $0x10] sm:$0xf]  ;;  %v3769_v26 = vld [vmem:[#allocation2 + $0x8] sm:$0xf] }
 0x285   : > { %v8699_v6 = vcombine.low %v3432_v4, %v3436_v63  ;;  %v10817_v25 = vld [vmem:[%s13470_s27 + $0xf0] sm:$0xff]   ;;  %v3800_v29 = vshrl.u32 %v3771_v9, 16  ;;  %v3803_v31 = vshll.u32 %v3771_v9, 16  ;;  %v3786_v28 = vshrl.u32 %v3769_v26, 16  ;;  %v10822_v39 = vld [vmem:[%s13470_s27 + $0x108] sm:$0xff]  }
 0x286   : > { %9896 = vmatmul.mubr.bf16.gmra.mrb[12].mxu1 %v8652_v34  ;;  %v3444_v56 = vsel %vm12197_vm11, %v8680_v7, %v3443_v37  ;;  %v3789_v33 = vshll.u32 %v3769_v26, 16  ;;  %v10824_v46 = vld [vmem:[%s13470_s27 + $0x110] sm:$0xff]   ;;  %v3777_v10 = vld [vmem:[#allocation2 + $0x28] sm:$0xf]  ;;  %v3783_v7 = vld [vmem:[#allocation2 + $0x40] sm:$0xf] }
 0x287   : > { %9915 = vmatprep.mubr.bf16.mxu1 %v8661_v61  ;;  %9906 = vmatpush3.bf16.msra.mxu1 %v10794_v3  ;;  %v8700_v21 = vcombine.low %v3440_v8, %v3444_v56  ;;  %v10816_v3 = vld [vmem:[%s13470_s27 + $0xe8] sm:$0xff]   ;;  %v3805_v34 = vrot.slane %v3803_v31, 5  ;;  %v3788_v61 = vrot.slane %v3786_v28, 4  ;;  %v3842_v4 = vshrl.u32 %v3777_v10, 16  ;;  %v10828_v37 = vld [vmem:[%s13470_s27 + $0x130] sm:$0xff]  }
 0x288   : > { %9907 = vmatprep.subr.bf16.mxu1 %v10795_v35  ;;  %v10827_v1 = vld [vmem:[%s13470_s27 + $0x128] sm:$0xff]   ;;  %v12340_v56 = vld [vmem:[#allocation2 + $0x24] sm:$0x1]  ;;  %v3884_v9 = vshrl.u32 %v3783_v7, 16  ;;  %v12344_v26 = vld [vmem:[#allocation2 + $0x1c] sm:$0x1] }
 0x289   : > { %v12347_v28 = vld [vmem:[#allocation2 + $0x2c] sm:$0x1] }
 0x28b   : > { %9908 = vmatpush3.bf16.msra.mxu1 %v10795_v35  ;;  %v10820_v35 = vld [vmem:[%s13470_s27 + $0x100] sm:$0xff]  }
 0x28c   : > { %9909 = vmatprep.subr.bf16.mxu1 %v10796_v62 }
 0x28f   : > { %9910 = vmatpush3.bf16.msra.mxu1 %v10796_v62  ;;  %v3791_v62 = vrot.slane %v3789_v33, 5 }
 0x290   : > { %9911 = vmatprep.subr.bf16.mxu1 %v10797_v15 }
 0x293   : > { %9912 = vmatpush3.bf16.msra.mxu1 %v10797_v15  ;;  %v12312_v15 = vld [vmem:[#allocation2 + $0x14] sm:$0x1] }
 0x294   : > { %9913 = vmatprep.subr.bf16.mxu1 %v10798_v18 }
 0x297   : > { %9914 = vmatpush3.bf16.msra.mxu1 %v10798_v18 }
 0x298   : > { %9923 = vmatprep.subr.bf16.mxu1 %v10800_v47 }
 0x29a   : > { %9916 = vmatmul.mubr.bf16.vlgmr.msra.gmra.mrb[8].mxu1 %v8662_v41  ;;  %v3792_v41 = vor.u32 %v3791_v62, %v3788_v61  ;;  %v3823_v62 = vshll.u32 %v12344_v26, 16 }
 0x29b   : > { %9919 = vmatprep.mubr.bf16.mxu1 %v8663_v49  ;;  %9924 = vmatpush3.bf16.msra.mxu1 %v10800_v47  ;;  %v12314_v47 = vld [vmem:[#allocation2 + $0xc] sm:$0x1]  ;;  %v10821_v49 = vld [vmem:[#allocation2 + $0x28] ss:$8 sps:$4 sm:$0xff]  }
 0x29c   : > { %9925 = vmatprep.subr.bf16.mxu1 %v10802_v44  ;;  %v3795_v42 = vshll.u32 %v12314_v47, 16  ;;  %v3793_v51 = vrot.slane %v3792_v41, 4  ;;  %v3851_v41 = vshll.u32 %v12347_v28, 16 }
 0x29e   : > { %v3797_v30 = vrot.slane %v3795_v42, 5 }
 0x29f   : > { %9926 = vmatpush3.bf16.msra.mxu1 %v10802_v44  ;;  %v3809_v44 = vshll.u32 %v12312_v15, 16 }
 0x2a0   : > { %9927 = vmatprep.subr.bf16.mxu1 %v10804_v27 }
 0x2a2   : > { %9920 = vmatmul.mubr.bf16.gmra.mrb[12].mxu1 %v8664_v45  ;;  %v10823_v45 = vld [vmem:[#allocation2 + $0x38] ss:$8 sps:$4 sm:$0xff]  }
 0x2a3   : > { %9928 = vmatpush3.bf16.msra.mxu1 %v10804_v27  ;;  %9939 = vmatprep.mubr.bf16.mxu1 %v8697_v12  ;;  %v3811_v27 = vrot.slane %v3809_v44, 5  ;;  %v10825_v12 = vld [vmem:[%s13470_s27 + $0x118] sm:$0xff]  }
 0x2a4   : > { %9929 = vmatprep.subr.bf16.mxu1 %v10805_v13 }
 0x2a7   : > { %9930 = vmatpush3.bf16.msra.mxu1 %v10805_v13  ;;  %v3798_v13 = vsel %vm11626_vm2, %v3793_v51, %v3797_v30  ;;  %v10830_v51 = vld [vmem:[%s13470_s27 + $0x140] sm:$0xff]  }
 0x2a8   : > { %9931 = vmatprep.subr.bf16.mxu1 %v10806_v52 }
 0x2ab   : > { %9932 = vmatpush3.bf16.msra.mxu1 %v10806_v52 }
 0x2ac   : > { %9933 = vmatprep.subr.bf16.mxu1 %v10807_v24 }
 0x2af   : > { %9934 = vmatpush3.bf16.msra.mxu1 %v10807_v24  ;;  %v3775_v24 = vld [vmem:[#allocation2 + $0x20] sm:$0xf] }
 0x2b0   : > { %9935 = vmatprep.subr.bf16.mxu1 %v10808_v48  ;;  %v3828_v59 = vshrl.u32 %v3775_v24, 16  ;;  %v3831_v60 = vshll.u32 %v3775_v24, 16 }
 0x2b2   : > { %v3830_v5 = vrot.slane %v3828_v59, 4 }
 0x2b3   : > { %9936 = vmatpush3.bf16.msra.mxu1 %v10808_v48  ;;  %v3779_v48 = vld [vmem:[#allocation2 + $0x30] sm:$0xf] }
 0x2b4   : > { %9937 = vmatprep.subr.bf16.mxu1 %v10809_v57  ;;  %v3859_v11 = vshll.u32 %v3779_v48, 16 }
 0x2b6   : > { %v3861_v36 = vrot.slane %v3859_v11, 5  ;;  %v10831_v11 = vld [vmem:[%s13470_s27 + $0x148] sm:$0xff]  }
 0x2b7   : > { %9938 = vmatpush3.bf16.msra.mxu1 %v10809_v57  ;;  %v3773_v57 = vld [vmem:[#allocation2 + $0x18] sm:$0xf] }
 0x2b8   : > { %9947 = vmatprep.subr.bf16.mxu1 %v10810_v53  ;;  %v3814_v58 = vshrl.u32 %v3773_v57, 16  ;;  %v3817_v63 = vshll.u32 %v3773_v57, 16 }
 0x2ba   : > { %9940 = vmatmul.mubr.bf16.vlgmr.msra.gmra.mrb[8].mxu1 %v8698_v40  ;;  %v3802_v40 = vrot.slane %v3800_v29, 4  ;;  %v3819_v8 = vrot.slane %v3817_v63, 5 }
 0x2bb   : > { %9943 = vmatprep.mubr.bf16.mxu1 %v8699_v6  ;;  %9948 = vmatpush3.bf16.msra.mxu1 %v10810_v53  ;;  %v3856_v53 = vshrl.u32 %v3779_v48, 16  ;;  %v3833_v6 = vrot.slane %v3831_v60, 5  ;;  %v12364_v48 = vld [vmem:[#allocation2 + $0x3c] sm:$0x1]  ;;  %v4052_v60 = vld [vmem:[#allocation2 + $0x10] sm:$0xe] }
 0x2bc   : > { %9949 = vmatprep.subr.bf16.mxu1 %v10811_v23  ;;  %v3806_v18 = vor.u32 %v3805_v34, %v3802_v40  ;;  %v10829_v34 = vld [vmem:[%s13470_s27 + $0x138] sm:$0xff]   ;;  %v3879_v63 = vshll.u32 %v12364_v48, 16 }
 0x2bd   : > { %v3858_v17 = vrot.slane %v3856_v53, 4 }
 0x2be   : > { %v3807_v43 = vrot.slane %v3806_v18, 4 }
 0x2bf   : > { %9950 = vmatpush3.bf16.msra.mxu1 %v10811_v23  ;;  %v3845_v23 = vshll.u32 %v3777_v10, 16  ;;  %v3862_v29 = vor.u32 %v3861_v36, %v3858_v17  ;;  %v10832_v36 = vld [vmem:[%s13470_s27 + $0x150] sm:$0xff]  }
 0x2c0   : > { %9951 = vmatprep.subr.bf16.mxu1 %v10812_v54  ;;  %v3812_v0 = vsel %vm11626_vm2, %v3807_v43, %v3811_v27 }
 0x2c1   : > { %v8753_v52 = vcombine.low %v3798_v13, %v3812_v0  ;;  %v3863_v44 = vrot.slane %v3862_v29, 4  ;;  %v12358_v0 = vld [vmem:[#allocation2 + $0x44] sm:$0x1]  ;;  %v10835_v29 = vld [vmem:[%s13470_s27 + $0x168] sm:$0xff]  }
 0x2c2   : > { %9944 = vmatmul.mubr.bf16.gmra.mrb[12].mxu1 %v8700_v21  ;;  %v3844_v21 = vrot.slane %v3842_v4, 4  ;;  %v3893_v59 = vshll.u32 %v12358_v0, 16  ;;  %v4051_v4 = vld [vmem:[#allocation2 + $0x8] sm:$0xe] }
 0x2c3   : > { %9952 = vmatpush3.bf16.msra.mxu1 %v10812_v54  ;;  %9963 = vmatprep.mubr.bf16.mxu1 %v10813_v22  ;;  %v3816_v54 = vrot.slane %v3814_v58, 4  ;;  %v3781_v22 = vld [vmem:[#allocation2 + $0x38] sm:$0xf] }
 0x2c4   : > { %9953 = vmatprep.subr.bf16.mxu1 %v10814_v20  ;;  %v3870_v33 = vshrl.u32 %v3781_v22, 16  ;;  %v3873_v40 = vshll.u32 %v3781_v22, 16  ;;  %v3895_v17 = vrot.slane %v3893_v59, 5 }
 0x2c5   : > { %v3820_v31 = vor.u32 %v3819_v8, %v3816_v54  ;;  %v3881_v54 = vrot.slane %v3879_v63, 5 }
 0x2c6   : > { %v3872_v43 = vrot.slane %v3870_v33, 4  ;;  %v4056_v33 = vld [vmem:[#allocation2 + $0x30] sm:$0xe] }
 0x2c7   : > { %9954 = vmatpush3.bf16.msra.mxu1 %v10814_v20  ;;  %v3847_v20 = vrot.slane %v3845_v23, 5  ;;  %v8766_v23 = vrot.slane %v4052_v60, 9  ;;  %v10841_v60 = vld [vmem:[#allocation2 + $0x10] ss:$8 sps:$4 sm:$0xff]  }
 0x2c8   : > { %9955 = vmatprep.subr.bf16.mxu1 %v10815_v50 }
 0x2cb   : > { %9956 = vmatpush3.bf16.msra.mxu1 %v10815_v50  ;;  %v3834_v50 = vor.u32 %v3833_v6, %v3830_v5  ;;  %v4081_v5 = vrot.slane %v12312_v15, 5 }
 0x2cc   : > { %9957 = vmatprep.subr.bf16.mxu1 %v10816_v3 }
 0x2cd   : > { %v3835_v18 = vrot.slane %v3834_v50, 4 }
 0x2cf   : > { %9958 = vmatpush3.bf16.msra.mxu1 %v10816_v3  ;;  %v12342_v3 = vld [vmem:[#allocation2 + $0x34] sm:$0x1] }
 0x2d0   : > { %9959 = vmatprep.subr.bf16.mxu1 %v10817_v25  ;;  %v3865_v61 = vshll.u32 %v12342_v3, 16 }
 0x2d2   : > { %v3867_v30 = vrot.slane %v3865_v61, 5  ;;  %v4089_v61 = vrot.slane %v12340_v56, 5 }
 0x2d3   : > { %9960 = vmatpush3.bf16.msra.mxu1 %v10817_v25  ;;  %v3887_v25 = vshll.u32 %v3783_v7, 16  ;;  %v8765_v7 = vrot.slane %v4051_v4, 9  ;;  %v10846_v4 = vld [vmem:[%s13470_s27 + $0x1b8] sm:$0xff]  }
 0x2d4   : > { %9961 = vmatprep.subr.bf16.mxu1 %v10818_v32  ;;  %v3868_v24 = vsel %vm11626_vm2, %v3863_v44, %v3867_v30  ;;  %v10838_v44 = vld [vmem:[%s13470_s27 + $0x180] sm:$0xff]  }
 0x2d7   : > { %9962 = vmatpush3.bf16.msra.mxu1 %v10818_v32  ;;  %v3837_v32 = vshll.u32 %v12340_v56, 16 }
 0x2d8   : > { %9971 = vmatprep.subr.bf16.mxu1 %v10820_v35 }
 0x2d9   : > { %v3839_v42 = vrot.slane %v3837_v32, 5  ;;  %v4054_v32 = vld [vmem:[#allocation2 + $0x20] sm:$0xe] }
 0x2da   : > { %9964 = vmatmul.mubr.bf16.vlgmr.msra.gmra.mrb[8].mxu1 %v10819_v38  ;;  %v3886_v38 = vrot.slane %v3884_v9, 4  ;;  %v11193_v9 = vmov 0.0  }
 0x2db   : > { %9967 = vmatprep.mubr.bf16.mxu1 %v10821_v49  ;;  %9972 = vmatpush3.bf16.msra.mxu1 %v10820_v35  ;;  %v3848_v35 = vor.u32 %v3847_v20, %v3844_v21  ;;  %v3821_v49 = vrot.slane %v3820_v31, 4  ;;  %v3840_v13 = vsel %vm11626_vm2, %v3835_v18, %v3839_v42  ;;  %v4082_v21 = vsel %vm12197_vm11, %v8766_v23, %v4081_v5  ;;  %v10836_v31 = vld [vmem:[%s13470_s27 + $0x170] sm:$0xff]  }
 0x2dc   : > { %9973 = vmatprep.subr.bf16.mxu1 %v10822_v39  ;;  %804 = vst [vmem:[#allocation3 + $0x30] sm:$0xff] %v11193_v9  ;;  %805 = vst [vmem:[#allocation3 + $0x38] sm:$0x3] %v11193_v9  ;;  %v8770_v18 = vrot.slane %v4056_v33, 9  ;;  %v4093_v42 = vrot.slane %v12347_v28, 5  ;;  %v10839_v28 = vld [vmem:[%s13470_s27 + $0x188] sm:$0xff]  }
 0x2dd   : > { %v3849_v27 = vrot.slane %v3848_v35, 4  ;;  %798 = vst [vmem:[#allocation3] sm:$0xff] %v11193_v9  ;;  %799 = vst [vmem:[#allocation3 + $0x8] sm:$0x3] %v11193_v9  ;;  %v8768_v35 = vrot.slane %v4054_v32, 9 }
 0x2de   : > { %800 = vst [vmem:[#allocation3 + $0x10] sm:$0xff] %v11193_v9  ;;  %801 = vst [vmem:[#allocation3 + $0x18] sm:$0x3] %v11193_v9 }
 0x2df   : > { %9974 = vmatpush3.bf16.msra.mxu1 %v10822_v39  ;;  %v3889_v39 = vrot.slane %v3887_v25, 5  ;;  %802 = vst [vmem:[#allocation3 + $0x20] sm:$0xff] %v11193_v9  ;;  %803 = vst [vmem:[#allocation3 + $0x28] sm:$0x3] %v11193_v9  ;;  %v10834_v25 = vld [vmem:[%s13470_s27 + $0x160] sm:$0xff]  }
 0x2e0   : > { %9975 = vmatprep.subr.bf16.mxu1 %v10824_v46  ;;  %806 = vst [vmem:[#allocation3 + $0x40] sm:$0xff] %v11193_v9  ;;  %807 = vst [vmem:[#allocation3 + $0x48] sm:$0x3] %v11193_v9 }
 0x2e1   : > { %808 = vst [vmem:[#allocation3 + $0x50] sm:$0xff] %v11193_v9  ;;  %809 = vst [vmem:[#allocation3 + $0x58] sm:$0x3] %v11193_v9 }
 0x2e2   : > { %9968 = vmatmul.mubr.bf16.gmra.mrb[12].mxu1 %v10823_v45  ;;  %v3825_v45 = vrot.slane %v3823_v62, 5  ;;  %810 = vst [vmem:[#allocation3 + $0x60] sm:$0xff] %v11193_v9  ;;  %811 = vst [vmem:[#allocation3 + $0x68] sm:$0x3] %v11193_v9  ;;  %v4055_v62 = vld [vmem:[#allocation2 + $0x28] sm:$0xe] }
 0x2e3   : > { %9976 = vmatpush3.bf16.msra.mxu1 %v10824_v46  ;;  %9987 = vmatprep.mubr.bf16.mxu1 %v8753_v52  ;;  %v3875_v46 = vrot.slane %v3873_v40, 5  ;;  %v3853_v52 = vrot.slane %v3851_v41, 5  ;;  %812 = vst [vmem:[#allocation3 + $0x70] sm:$0xff] %v11193_v9  ;;  %813 = vst [vmem:[#allocation3 + $0x78] sm:$0x3] %v11193_v9  ;;  %v10837_v40 = vld [vmem:[%s13470_s27 + $0x178] sm:$0xff]  }
 0x2e4   : > { %9977 = vmatprep.subr.bf16.mxu1 %v10825_v12  ;;  %814 = vst [vmem:[#allocation3 + $0x80] sm:$0xff] %v11193_v9  ;;  %815 = vst [vmem:[#allocation3 + $0x88] sm:$0x3] %v11193_v9  ;;  %v4085_v41 = vrot.slane %v12344_v26, 5 }
 0x2e5   : > { %v3876_v57 = vor.u32 %v3875_v46, %v3872_v43  ;;  %v3854_v53 = vsel %vm11626_vm2, %v3849_v27, %v3853_v52  ;;  %816 = vst [vmem:[#allocation3 + $0x90] sm:$0xff] %v11193_v9  ;;  %817 = vst [vmem:[#allocation3 + $0x98] sm:$0x3] %v11193_v9  ;;  %v4090_v43 = vsel %vm12197_vm11, %v8768_v35, %v4089_v61  ;;  %v4058_v46 = vld [vmem:[#allocation2 + $0x40] sm:$0xe]  ;;  %v4101_v52 = vrot.slane %v12364_v48, 5 }
 0x2e6   : > { %v8755_v58 = vcombine.low %v3854_v53, %v3868_v24  ;;  %818 = vst [vmem:[#allocation4] sm:$0xff] %v11193_v9  ;;  %819 = vst [vmem:[#allocation4 + $0x8] sm:$0xf] %v11193_v9  ;;  %v4057_v27 = vld [vmem:[#allocation2 + $0x38] sm:$0xe]  ;;  %v10840_v24 = vld [vmem:[%s13470_s27 + $0x190] sm:$0xff]  }
 0x2e7   : > { %9978 = vmatpush3.bf16.msra.mxu1 %v10825_v12  ;;  %v3890_v12 = vor.u32 %v3889_v39, %v3886_v38  ;;  %v3877_v6 = vrot.slane %v3876_v57, 4  ;;  %820 = vst [vmem:[#allocation4 + $0x10] sm:$0xff] %v11193_v9  ;;  %821 = vst [vmem:[#allocation4 + $0x18] sm:$0xf] %v11193_v9  ;;  %v4097_v38 = vrot.slane %v12342_v3, 5  ;;  %v10843_v48 = vld [vmem:[%s13470_s27 + $0x1a0] sm:$0xff]  }
 0x2e8   : > { %9979 = vmatprep.subr.bf16.mxu1 %v10826_v55  ;;  %822 = vst [vmem:[#allocation4 + $0x20] sm:$0xff] %v11193_v9  ;;  %823 = vst [vmem:[#allocation4 + $0x28] sm:$0xf] %v11193_v9  ;;  %v4432_v53 = vld [vmem:[#allocation2 + $0x10] sm:$0xf]  ;;  %v10853_v61 = vld [vmem:[%s13470_s27 + $0x1d8] sm:$0xff]  }
 0x2e9   : > { %v3882_v15 = vsel %vm11626_vm2, %v3877_v6, %v3881_v54  ;;  %824 = vst [vmem:[#allocation4 + $0x30] sm:$0xff] %v11193_v9  ;;  %825 = vst [vmem:[#allocation4 + $0x38] sm:$0xf] %v11193_v9  ;;  %v4098_v56 = vsel %vm12197_vm11, %v8770_v18, %v4097_v38  ;;  %v4449_v63 = vshrl.u32 %v4432_v53, 16  ;;  %v12448_v54 = vld [vmem:[#allocation2 + $0x14] sm:$0x1] }
 0x2ea   : > { %826 = vst [vmem:[#allocation4 + $0x40] sm:$0xff] %v11193_v9  ;;  %827 = vst [vmem:[#allocation4 + $0x48] sm:$0xf] %v11193_v9  ;;  %v4438_v18 = vld [vmem:[#allocation2 + $0x28] sm:$0xf] }
 0x2eb   : > { %9980 = vmatpush3.bf16.msra.mxu1 %v10826_v55  ;;  %v3826_v55 = vsel %vm11626_vm2, %v3821_v49, %v3825_v45  ;;  %828 = vst [vmem:[#allocation4 + $0x50] sm:$0xff] %v11193_v9  ;;  %829 = vst [vmem:[#allocation4 + $0x58] sm:$0xf] %v11193_v9  ;;  %v8769_v49 = vrot.slane %v4055_v62, 9  ;;  %v8772_v45 = vrot.slane %v4058_v46, 9  ;;  %v4451_v6 = vrot.slane %v4449_v63, 4 }
 0x2ec   : > { %9981 = vmatprep.subr.bf16.mxu1 %v10827_v1  ;;  %v8754_v10 = vcombine.low %v3826_v55, %v3840_v13  ;;  %830 = vst [vmem:[#allocation4 + $0x60] sm:$0xff] %v11193_v9  ;;  %831 = vst [vmem:[#allocation4 + $0x68] sm:$0xf] %v11193_v9  ;;  %v4105_v13 = vrot.slane %v12358_v0, 5  ;;  %v10842_v0 = vld [vmem:[%s13470_s27 + $0x198] sm:$0xff]  }
 0x2ed   : > { %832 = vst [vmem:[#allocation4 + $0x70] sm:$0xff] %v11193_v9  ;;  %833 = vst [vmem:[#allocation4 + $0x78] sm:$0xf] %v11193_v9  ;;  %v4440_v38 = vld [vmem:[#allocation2 + $0x30] sm:$0xf] }
 0x2ee   : > { %834 = vst [vmem:[#allocation4 + $0x80] sm:$0xff] %v11193_v9  ;;  %835 = vst [vmem:[#allocation4 + $0x88] sm:$0xf] %v11193_v9  ;;  %v4106_v55 = vsel %vm12197_vm11, %v8772_v45, %v4105_v13 }
 0x2ef   : > { %9982 = vmatpush3.bf16.msra.mxu1 %v10827_v1  ;;  %v3891_v1 = vrot.slane %v3890_v12, 4  ;;  %836 = vst [vmem:[#allocation4 + $0x90] sm:$0xff] %v11193_v9  ;;  %837 = vst [vmem:[#allocation4 + $0x98] sm:$0xf] %v11193_v9  ;;  %v8771_v12 = vrot.slane %v4057_v27, 9 }
 0x2f0   : > { %9983 = vmatprep.subr.bf16.mxu1 %v10828_v37  ;;  %838 = vst [vmem:[#allocation4 + $0xa0] sm:$0xff] %v11193_v9  ;;  %839 = vst [vmem:[#allocation4 + $0xa8] sm:$0xf] %v11193_v9  ;;  %v4446_v27 = vld [vmem:[#allocation2 + $0x48] sm:$0xf] }
 0x2f1   : > { %v3896_v8 = vsel %vm11626_vm2, %v3891_v1, %v3895_v17  ;;  %840 = vst [vmem:[#allocation4 + $0xb0] sm:$0xff] %v11193_v9  ;;  %841 = vst [vmem:[#allocation4 + $0xb8] sm:$0xf] %v11193_v9  ;;  %v4102_v57 = vsel %vm12197_vm11, %v8771_v12, %v4101_v52  ;;  %v4452_v1 = vshll.u32 %v4432_v53, 16  ;;  %v4444_v52 = vld [vmem:[#allocation2 + $0x40] sm:$0xf] }
 0x2f2   : > { %v8756_v20 = vcombine.low %v3882_v15, %v3896_v8  ;;  %v8792_v59 = vcombine.low %v4102_v57, %v4106_v55  ;;  %v10847_v15 = vld [vmem:[#allocation2 + $0x20] ss:$8 sps:$4 sm:$0xff]   ;;  %v4547_v57 = vshrl.u32 %v4446_v27, 16  ;;  %v4536_v63 = vshll.u32 %v4444_v52, 16 }
 0x2f3   : > { %9984 = vmatpush3.bf16.msra.mxu1 %v10828_v37  ;;  %v4077_v37 = vrot.slane %v12314_v47, 5  ;;  %v10833_v47 = vld [vmem:[%s13470_s27 + $0x158] sm:$0xff]   ;;  %v4454_v17 = vrot.slane %v4452_v1, 5  ;;  %v12480_v1 = vld [vmem:[#allocation2 + $0x24] sm:$0x1] }
 0x2f4   : > { %9985 = vmatprep.subr.bf16.mxu1 %v10829_v34 }
 0x2f5   : > { %v4078_v22 = vsel %vm12197_vm11, %v8765_v7, %v4077_v37  ;;  %v4455_v8 = vor.u32 %v4454_v17, %v4451_v6  ;;  %v12483_v6 = vld [vmem:[#allocation2 + $0x3c] sm:$0x1] }
 0x2f6   : > { %v8789_v50 = vcombine.low %v4078_v22, %v4082_v21  ;;  %v12450_v21 = vld [vmem:[#allocation2 + $0x1c] sm:$0x1]  ;;  %v4458_v22 = vshll.u32 %v12448_v54, 16 }
 0x2f7   : > { %9986 = vmatpush3.bf16.msra.mxu1 %v10829_v34  ;;  %v4053_v34 = vld [vmem:[#allocation2 + $0x18] sm:$0xe]  ;;  %v4456_v9 = vrot.slane %v4455_v8, 4 }
 0x2f8   : > { %9995 = vmatprep.subr.bf16.mxu1 %v10830_v51  ;;  %v8767_v39 = vrot.slane %v4053_v34, 9  ;;  %v10851_v34 = vld [vmem:[#allocation2 + $0x40] ss:$8 sps:$4 sm:$0xff]   ;;  %v10857_v17 = vld [vmem:[%s13470_s27 + $0x1f8] sm:$0xff]  }
 0x2fa   : > { %9988 = vmatmul.mubr.bf16.vlgmr.msra.gmra.mrb[8].mxu1 %v8754_v10  ;;  %v4086_v3 = vsel %vm12197_vm11, %v8767_v39, %v4085_v41  ;;  %v10844_v10 = vld [vmem:[%s13470_s27 + $0x1a8] sm:$0xff]   ;;  %v10854_v39 = vld [vmem:[%s13470_s27 + $0x1e0] sm:$0xff]  }
 0x2fb   : > { %9991 = vmatprep.mubr.bf16.mxu1 %v8755_v58  ;;  %9996 = vmatpush3.bf16.msra.mxu1 %v10830_v51  ;;  %v8790_v26 = vcombine.low %v4086_v3, %v4090_v43  ;;  %v4094_v51 = vsel %vm12197_vm11, %v8769_v49, %v4093_v42  ;;  %v4434_v58 = vld [vmem:[#allocation2 + $0x18] sm:$0xf]  ;;  %v4436_v41 = vld [vmem:[#allocation2 + $0x20] sm:$0xf]  ;;  %v4494_v49 = vshll.u32 %v4438_v18, 16  ;;  %v4505_v43 = vshrl.u32 %v4440_v38, 16 }
 0x2fc   : > { %9997 = vmatprep.subr.bf16.mxu1 %v10831_v11  ;;  %v8791_v30 = vcombine.low %v4094_v51, %v4098_v56  ;;  %v4463_v23 = vshrl.u32 %v4434_v58, 16  ;;  %v4466_v5 = vshll.u32 %v4434_v58, 16  ;;  %v4442_v42 = vld [vmem:[#allocation2 + $0x38] sm:$0xf]  ;;  %v4508_v56 = vshll.u32 %v4440_v38, 16 }
 0x2fd   : > { %v4477_v46 = vshrl.u32 %v4436_v41, 16  ;;  %v4480_v3 = vshll.u32 %v4436_v41, 16  ;;  %v4519_v51 = vshrl.u32 %v4442_v42, 16  ;;  %v4496_v45 = vrot.slane %v4494_v49, 5 }
 0x2fe   : > { %v4465_v7 = vrot.slane %v4463_v23, 4  ;;  %v4468_v37 = vrot.slane %v4466_v5, 5  ;;  %v4507_v13 = vrot.slane %v4505_v43, 4  ;;  %v4510_v12 = vrot.slane %v4508_v56, 5 }
 0x2ff   : > { %9998 = vmatpush3.bf16.msra.mxu1 %v10831_v11  ;;  %v10845_v11 = vld [vmem:[%s13470_s27 + $0x1b0] sm:$0xff]   ;;  %v4482_v55 = vrot.slane %v4480_v3, 5  ;;  %v4533_v58 = vshrl.u32 %v4444_v52, 16 }
 0x300   : > { %9999 = vmatprep.subr.bf16.mxu1 %v10832_v36 }
 0x302   : > { %9992 = vmatmul.mubr.bf16.gmra.mrb[12].mxu1 %v8756_v20  ;;  %v10850_v20 = vld [vmem:[%s13470_s27 + $0x1c8] sm:$0xff]  }
 0x303   : > { %10000 = vmatpush3.bf16.msra.mxu1 %v10832_v36  ;;  %10011 = vmatprep.mubr.bf16.mxu1 %v8789_v50  ;;  %v10848_v36 = vld [vmem:[%s13470_s27 + $0x1c0] sm:$0xff]   ;;  %v10849_v50 = vld [vmem:[#allocation2 + $0x30] ss:$8 sps:$4 sm:$0xff]  }
 0x304   : > { %10001 = vmatprep.subr.bf16.mxu1 %v10833_v47 }
 0x307   : > { %10002 = vmatpush3.bf16.msra.mxu1 %v10833_v47  ;;  %v4469_v47 = vor.u32 %v4468_v37, %v4465_v7  ;;  %v4549_v37 = vrot.slane %v4547_v57, 4 }
 0x308   : > { %10003 = vmatprep.subr.bf16.mxu1 %v10834_v25 }
 0x309   : > { %v4470_v32 = vrot.slane %v4469_v47, 4  ;;  %v4538_v47 = vrot.slane %v4536_v63, 5  ;;  %v4718_v63 = vld [vmem:[#allocation2 + $0x30] sm:$0xe] }
 0x30b   : > { %10004 = vmatpush3.bf16.msra.mxu1 %v10834_v25  ;;  %v4472_v25 = vshll.u32 %v12450_v21, 16 }
 0x30c   : > { %10005 = vmatprep.subr.bf16.mxu1 %v10835_v29 }
 0x30f   : > { %10006 = vmatpush3.bf16.msra.mxu1 %v10835_v29  ;;  %v10852_v29 = vld [vmem:[%s13470_s27 + $0x1d0] sm:$0xff]  }
 0x310   : > { %10007 = vmatprep.subr.bf16.mxu1 %v10836_v31 }
 0x313   : > { %10008 = vmatpush3.bf16.msra.mxu1 %v10836_v31  ;;  %v4460_v31 = vrot.slane %v4458_v22, 5  ;;  %v4535_v22 = vrot.slane %v4533_v58, 4  ;;  %v4717_v58 = vld [vmem:[#allocation2 + $0x28] sm:$0xe] }
 0x314   : > { %10009 = vmatprep.subr.bf16.mxu1 %v10837_v40 }
 0x315   : > { %v4461_v33 = vsel %vm11626_vm2, %v4456_v9, %v4460_v31  ;;  %v4528_v9 = vshll.u32 %v12483_v6, 16  ;;  %v12491_v31 = vld [vmem:[#allocation2 + $0x4c] sm:$0x1] }
 0x316   : > { %v4556_v38 = vshll.u32 %v12491_v31, 16 }
 0x317   : > { %10010 = vmatpush3.bf16.msra.mxu1 %v10837_v40  ;;  %v4474_v40 = vrot.slane %v4472_v25, 5  ;;  %v4530_v41 = vrot.slane %v4528_v9, 5 }
 0x318   : > { %10019 = vmatprep.subr.bf16.mxu1 %v10838_v44 }
 0x319   : > { %v4475_v35 = vsel %vm11626_vm2, %v4470_v32, %v4474_v40  ;;  %v10858_v32 = vld [vmem:[%s13470_s27 + $0x200] sm:$0xff]  }
 0x31a   : > { %10012 = vmatmul.mubr.bf16.vlgmr.msra.gmra.mrb[8].mxu1 %v8790_v26  ;;  %v8845_v62 = vcombine.low %v4461_v33, %v4475_v35  ;;  %v10855_v26 = vld [vmem:[%s13470_s27 + $0x1e8] sm:$0xff]  }
 0x31b   : > { %10015 = vmatprep.mubr.bf16.mxu1 %v8791_v30  ;;  %10020 = vmatpush3.bf16.msra.mxu1 %v10838_v44  ;;  %v4491_v44 = vshrl.u32 %v4438_v18, 16  ;;  %v4539_v18 = vor.u32 %v4538_v47, %v4535_v22  ;;  %v4760_v22 = vrot.slane %v12483_v6, 5 }
 0x31c   : > { %10021 = vmatprep.subr.bf16.mxu1 %v10839_v28 }
 0x31d   : > { %v4493_v30 = vrot.slane %v4491_v44, 4 }
 0x31f   : > { %10022 = vmatpush3.bf16.msra.mxu1 %v10839_v28  ;;  %v4522_v28 = vshll.u32 %v4442_v42, 16  ;;  %v4497_v53 = vor.u32 %v4496_v45, %v4493_v30  ;;  %v4714_v42 = vld [vmem:[#allocation2 + $0x10] sm:$0xe]  ;;  %v4740_v45 = vrot.slane %v12448_v54, 5 }
 0x320   : > { %10023 = vmatprep.subr.bf16.mxu1 %v10840_v24  ;;  %v8857_v30 = vrot.slane %v4714_v42, 9 }
 0x322   : > { %10016 = vmatmul.mubr.bf16.gmra.mrb[12].mxu1 %v8792_v59  ;;  %v10856_v59 = vld [vmem:[%s13470_s27 + $0x1f0] sm:$0xff]   ;;  %v4741_v54 = vsel %vm12197_vm11, %v8857_v30, %v4740_v45 }
 0x323   : > { %10024 = vmatpush3.bf16.msra.mxu1 %v10840_v24  ;;  %10035 = vmatprep.mubr.bf16.mxu1 %v10841_v60  ;;  %v4479_v24 = vrot.slane %v4477_v46, 4  ;;  %v4521_v60 = vrot.slane %v4519_v51, 4  ;;  %v10859_v46 = vld [vmem:[%s13470_s27 + $0x208] sm:$0xff]  }
 0x324   : > { %10025 = vmatprep.subr.bf16.mxu1 %v10842_v0 }
 0x325   : > { %v4483_v23 = vor.u32 %v4482_v55, %v4479_v24  ;;  %v4744_v24 = vrot.slane %v12450_v21, 5 }
 0x327   : > { %10026 = vmatpush3.bf16.msra.mxu1 %v10842_v0  ;;  %v12476_v0 = vld [vmem:[#allocation2 + $0x2c] sm:$0x1]  ;;  %v4484_v25 = vrot.slane %v4483_v23, 4  ;;  %v4716_v23 = vld [vmem:[#allocation2 + $0x20] sm:$0xe] }
 0x328   : > { %10027 = vmatprep.subr.bf16.mxu1 %v10843_v48  ;;  %v4500_v5 = vshll.u32 %v12476_v0, 16 }
 0x32b   : > { %10028 = vmatpush3.bf16.msra.mxu1 %v10843_v48  ;;  %v4524_v48 = vrot.slane %v4522_v28, 5  ;;  %v4558_v28 = vrot.slane %v4556_v38, 5  ;;  %v10870_v38 = vld [vmem:[%s13418_s7 + $0x20] sm:$0xff]  }
 0x32c   : > { %10029 = vmatprep.subr.bf16.mxu1 %v10844_v10 }
 0x32d   : > { %v4525_v7 = vor.u32 %v4524_v48, %v4521_v60  ;;  %v10861_v48 = vld [vmem:[%s13470_s27 + $0x218] sm:$0xff]  }
 0x32f   : > { %10030 = vmatpush3.bf16.msra.mxu1 %v10844_v10  ;;  %v4550_v10 = vshll.u32 %v4446_v27, 16  ;;  %v4526_v40 = vrot.slane %v4525_v7, 4  ;;  %v4715_v27 = vld [vmem:[#allocation2 + $0x18] sm:$0xe]  ;;  %v8861_v7 = vrot.slane %v4718_v63, 9 }
 0x330   : > { %10031 = vmatprep.subr.bf16.mxu1 %v10845_v11  ;;  %v8858_v52 = vrot.slane %v4715_v27, 9 }
 0x331   : > { %v4552_v8 = vrot.slane %v4550_v10, 5  ;;  %v4531_v56 = vsel %vm11626_vm2, %v4526_v40, %v4530_v41  ;;  %v10863_v10 = vld [vmem:[%s13470_s27 + $0x228] sm:$0xff]   ;;  %v4768_v40 = vrot.slane %v12491_v31, 5  ;;  %v10868_v31 = vld [vmem:[%s13418_s7 + $0x10] sm:$0xff]  }
 0x332   : > { %v4745_v60 = vsel %vm12197_vm11, %v8858_v52, %v4744_v24  ;;  %v10872_v41 = vld [vmem:[%s13418_s7 + $0x30] sm:$0xff]   ;;  %v12601_v52 = vld [vmem:[%s13479_s4 + $0x2] ss:$0 sm:$0xff] }
 0x333   : > { %10032 = vmatpush3.bf16.msra.mxu1 %v10845_v11  ;;  %v12478_v11 = vld [vmem:[#allocation2 + $0x34] sm:$0x1]  ;;  %v4553_v35 = vor.u32 %v4552_v8, %v4549_v37  ;;  %v8881_v21 = vcombine.low %v4741_v54, %v4745_v60  ;;  %v8859_v8 = vrot.slane %v4716_v23, 9 }
 0x334   : > { %10033 = vmatprep.subr.bf16.mxu1 %v10846_v4  ;;  %v4756_v37 = vrot.slane %v12478_v11, 5 }
 0x335   : > { %v4554_v51 = vrot.slane %v4553_v35, 4 }
 0x336   : > { %v4757_v9 = vsel %vm12197_vm11, %v8861_v7, %v4756_v37 }
 0x337   : > { %10034 = vmatpush3.bf16.msra.mxu1 %v10846_v4  ;;  %v4511_v4 = vor.u32 %v4510_v12, %v4507_v13  ;;  %v10860_v12 = vld [vmem:[%s13470_s27 + $0x210] sm:$0xff]   ;;  %v4559_v57 = vsel %vm11626_vm2, %v4554_v51, %v4558_v28 }
 0x338   : > { %10043 = vmatprep.subr.bf16.mxu1 %v10848_v36 }
 0x33a   : > { %10036 = vmatmul.mubr.bf16.vlgmr.msra.gmra.mrb[8].mxu1 %v10847_v15  ;;  %v4486_v15 = vshll.u32 %v12480_v1, 16 }
 0x33b   : > { %10039 = vmatprep.mubr.bf16.mxu1 %v10849_v50  ;;  %10044 = vmatpush3.bf16.msra.mxu1 %v10848_v36  ;;  %v4514_v36 = vshll.u32 %v12478_v11, 16  ;;  %v4512_v50 = vrot.slane %v4511_v4, 4  ;;  %v10865_v4 = vld [vmem:[%s13470_s27 + $0x238] sm:$0xff]  }
 0x33c   : > { %10045 = vmatprep.subr.bf16.mxu1 %v10850_v20 }
 0x33d   : > { %v4516_v33 = vrot.slane %v4514_v36, 5  ;;  %v4719_v36 = vld [vmem:[#allocation2 + $0x38] sm:$0xe] }
 0x33f   : > { %10046 = vmatpush3.bf16.msra.mxu1 %v10850_v20  ;;  %v4498_v20 = vrot.slane %v4497_v53, 4  ;;  %v10864_v53 = vld [vmem:[%s13470_s27 + $0x230] sm:$0xff]  }
 0x340   : > { %10047 = vmatprep.subr.bf16.mxu1 %v10852_v29 }
 0x342   : > { %10040 = vmatmul.mubr.bf16.gmra.mrb[12].mxu1 %v10851_v34  ;;  %v12496_v34 = vld [vmem:[#allocation2 + $0x44] sm:$0x1] }
 0x343   : > { %10048 = vmatpush3.bf16.msra.mxu1 %v10852_v29  ;;  %10059 = vmatprep.mubr.bf16.mxu1 %v8845_v62  ;;  %v4502_v29 = vrot.slane %v4500_v5, 5  ;;  %v4542_v49 = vshll.u32 %v12496_v34, 16  ;;  %v8860_v5 = vrot.slane %v4717_v58, 9  ;;  %v4764_v6 = vrot.slane %v12496_v34, 5  ;;  %v10867_v34 = vld [vmem:[%s13418_s7 + $0x8] sm:$0xff]  }
 0x344   : > { %10049 = vmatprep.subr.bf16.mxu1 %v10853_v61  ;;  %v5228_v58 = vld [vmem:[%s13480_s5] sm:$0x3]  ;;  %s12868_s5 = scalar_lea.vmem %s13432_s21, %s9217_s3 }
 0x345   : > { %v4503_v62 = vsel %vm11626_vm2, %v4498_v20, %v4502_v29  ;;  %v4544_v13 = vrot.slane %v4542_v49, 5  ;;  %v8862_v20 = vrot.slane %v4719_v36, 9  ;;  %v4924_v49 = vld [vmem:[%s13478_s25] sm:$0x3] }
 0x346   : > { %v4928_v42 = vrot.slane %v4924_v49, %v12023_v14 }
 0x347   : > { %10050 = vmatpush3.bf16.msra.mxu1 %v10853_v61  ;;  %v4488_v61 = vrot.slane %v4486_v15, 5  ;;  %v4748_v15 = vrot.slane %v12480_v1, 5  ;;  %v4761_v1 = vsel %vm12197_vm11, %v8862_v20, %v4760_v22 }
 0x348   : > { %10051 = vmatprep.subr.bf16.mxu1 %v10854_v39 }
 0x349   : > { %v4489_v44 = vsel %vm11626_vm2, %v4484_v25, %v4488_v61  ;;  %v4749_v11 = vsel %vm12197_vm11, %v8859_v8, %v4748_v15  ;;  %v12618_v8 = vrot.slane %v5228_v58, %v12023_v14 }
 0x34a   : > { %v8846_v43 = vcombine.low %v4489_v44, %v4503_v62  ;;  %v10873_v44 = vld [vmem:[%s13418_s7 + $0x38] sm:$0xff]  }
 0x34b   : > { %10052 = vmatpush3.bf16.msra.mxu1 %v10854_v39  ;;  %v4517_v39 = vsel %vm11626_vm2, %v4512_v50, %v4516_v33  ;;  %v4721_v50 = vld [vmem:[#allocation2 + $0x48] sm:$0xe] }
 0x34c   : > { %10053 = vmatprep.subr.bf16.mxu1 %v10855_v26  ;;  %v8847_v3 = vcombine.low %v4517_v39, %v4531_v56  ;;  %v8864_v29 = vrot.slane %v4721_v50, 9  ;;  %v10871_v39 = vld [vmem:[%s13418_s7 + $0x28] sm:$0xff]   ;;  %v4995_v56 = vld [vmem:[#allocation3 + $0x1] sm:$0xff] }
 0x34e   : > { %v4769_v61 = vsel %vm12197_vm11, %v8864_v29, %v4768_v40 }
 0x34f   : > { %10054 = vmatpush3.bf16.msra.mxu1 %v10855_v26  ;;  %v4540_v26 = vrot.slane %v4539_v18, 4  ;;  %v10866_v18 = vld [vmem:[%s13418_s7] sm:$0xff]  }
 0x350   : > { %10055 = vmatprep.subr.bf16.mxu1 %v10856_v59  ;;  %10091 = vmatprep.subr.bf16.mxu0 %v10866_v18 }
 0x351   : > { %v4545_v55 = vsel %vm11626_vm2, %v4540_v26, %v4544_v13  ;;  %10092 = vmatpush3.bf16.msra.mxu0 %v10866_v18  ;;  %v12594_v26 = vld [vmem:[%s13479_s4 + $0x1] ss:$0 sm:$0xff]  ;;  %v12650_v18 = vld [vmem:[%s13479_s4 + $0x8] ss:$0 sm:$0xff] }
 0x352   : > { %10093 = vmatprep.subr.bf16.mxu0 %v10867_v34  ;;  %v5008_v30 = vmul.f32 %v12594_v26, %v4995_v56 }
 0x353   : > { %10056 = vmatpush3.bf16.msra.mxu1 %v10856_v59  ;;  %v8848_v59 = vcombine.low %v4545_v55, %v4559_v57 }
 0x354   : > { %10057 = vmatprep.subr.bf16.mxu1 %v10857_v17 }
 0x355   : > { %10094 = vmatpush3.bf16.msra.mxu0 %v10867_v34 }
 0x356   : > { %10095 = vmatprep.subr.bf16.mxu0 %v10868_v31 }
 0x357   : > { %10058 = vmatpush3.bf16.msra.mxu1 %v10857_v17  ;;  %v4752_v17 = vrot.slane %v12476_v0, 5  ;;  %v4720_v0 = vld [vmem:[#allocation2 + $0x40] sm:$0xe] }
 0x358   : > { %10067 = vmatprep.subr.bf16.mxu1 %v10858_v32  ;;  %v8863_v33 = vrot.slane %v4720_v0, 9 }
 0x359   : > { %v4753_v47 = vsel %vm12197_vm11, %v8860_v5, %v4752_v17  ;;  %10096 = vmatpush3.bf16.msra.mxu0 %v10868_v31  ;;  %v12615_v17 = vld [vmem:[%s13479_s4 + $0x4] ss:$0 sm:$0xff] }
 0x35a   : > { %10060 = vmatmul.mubr.bf16.vlgmr.msra.gmra.mrb[8].mxu1 %v8846_v43  ;;  %v8882_v25 = vcombine.low %v4749_v11, %v4753_v47  ;;  %v4765_v35 = vsel %vm12197_vm11, %v8863_v33, %v4764_v6  ;;  %10097 = vmatprep.subr.bf16.mxu0 %v10869_v19  ;;  %v12588_v43 = vld [vmem:[%s13479_s4] ss:$0 sm:$0xff]  ;;  %v12624_v47 = vrot.slane %v5228_v58, %v12028_v16  ;;  %v12635_v6 = vld [vmem:[%s13479_s4 + $0x6] ss:$0 sm:$0xff] }
 0x35b   : > { %10063 = vmatprep.mubr.bf16.mxu1 %v8847_v3  ;;  %10068 = vmatpush3.bf16.msra.mxu1 %v10858_v32  ;;  %v8883_v32 = vcombine.low %v4757_v9, %v4761_v1  ;;  %v8884_v62 = vcombine.low %v4765_v35, %v4769_v61  ;;  %v4979_v27 = vmul.f32 0.0, %v12588_v43 }
 0x35c   : > { %10069 = vmatprep.subr.bf16.mxu1 %v10859_v46 }
 0x35d   : > { %10098 = vmatpush3.bf16.msra.mxu0 %v10869_v19 }
 0x35e   : > { %10099 = vmatprep.subr.bf16.mxu0 %v10870_v38 }
 0x35f   : > { %10070 = vmatpush3.bf16.msra.mxu1 %v10859_v46  ;;  %v4940_v46 = vrot.slane %v4924_v49, %v12028_v16 }
 0x360   : > { %10071 = vmatprep.subr.bf16.mxu1 %v10860_v12 }
 0x361   : > { %10100 = vmatpush3.bf16.msra.mxu0 %v10870_v38 }
 0x362   : > { %10064 = vmatmul.mubr.bf16.gmra.mrb[12].mxu1 %v8848_v59  ;;  %10101 = vmatprep.subr.bf16.mxu0 %v10871_v39 }
 0x363   : > { %10072 = vmatpush3.bf16.msra.mxu1 %v10860_v12  ;;  %10083 = vmatprep.mubr.bf16.mxu1 %v8881_v21  ;;  %v5024_v12 = vld [vmem:[#allocation3 + $0x2] sm:$0xff]  ;;  %v5016_v21 = vadd.f32 %v5008_v30, %v4979_v27 }
 0x364   : > { %10073 = vmatprep.subr.bf16.mxu1 %v10861_v48 }
 0x365   : > { %10102 = vmatpush3.bf16.msra.mxu0 %v10871_v39 }
 0x366   : > { %10103 = vmatprep.subr.bf16.mxu0 %v10872_v41 }
 0x367   : > { %10074 = vmatpush3.bf16.msra.mxu1 %v10861_v48 }
 0x368   : > { %10075 = vmatprep.subr.bf16.mxu1 %v10862_v2 }
 0x369   : > { %10104 = vmatpush3.bf16.msra.mxu0 %v10872_v41  ;;  %v12664_v41 = vld [vmem:[%s13479_s4 + $0x5] ss:$0 sm:$0xff] }
 0x36a   : > { %10105 = vmatprep.subr.bf16.mxu0 %v10873_v44 }
 0x36b   : > { %10076 = vmatpush3.bf16.msra.mxu1 %v10862_v2  ;;  %v5037_v2 = vmul.f32 %v12601_v52, %v5024_v12 }
 0x36c   : > { %10077 = vmatprep.subr.bf16.mxu1 %v10863_v10 }
 0x36d   : > { %10106 = vmatpush3.bf16.msra.mxu0 %v10873_v44  ;;  %v5045_v37 = vadd.f32 %v5037_v2, %v5016_v21 }
 0x36f   : > { %10078 = vmatpush3.bf16.msra.mxu1 %v10863_v10 }
 0x370   : > { %10079 = vmatprep.subr.bf16.mxu1 %v10864_v53 }
 0x373   : > { %10080 = vmatpush3.bf16.msra.mxu1 %v10864_v53 }
 0x374   : > { %10081 = vmatprep.subr.bf16.mxu1 %v10865_v4 }
 0x377   : > { %10082 = vmatpush3.bf16.msra.mxu1 %v10865_v4  ;;  %v12610_v4 = vld [vmem:[%s13479_s4 + $0x7] ss:$0 sm:$0xff] }
 0x37a   : > { %10084 = vmatmul.mubr.bf16.vlgmr.msra.gmra.mrb[8].mxu1 %v8882_v25 }
 0x37b   : > { %10087 = vmatprep.mubr.bf16.mxu1 %v8883_v32 }
 0x382   : > { %10088 = vmatmul.mubr.bf16.gmra.mrb[12].mxu1 %v8884_v62  ;;  %v12645_v62 = vld [vmem:[%s13479_s4 + $0x3] ss:$0 sm:$0xff] }
 0x44d   : > { %v10085_v3 = vpop.f32.mrb[8].mxu1 }
 0x44e   : > { %v4931_v51 = vmul.f32 %v10085_v3, %v4928_v42  ;;  %v4885_v28 = vpop.f32.mrb[9].mxu1 }
 0x44f   : > { %v4929_v45 = vmul.f32 %v4928_v42, %v4885_v28  ;;  %v10086_v13 = vpop.f32.mrb[10].mxu1 }
 0x450   : > { %v4943_v24 = vadd.f32 %v4940_v46, %v4931_v51  ;;  %v4932_v55 = vmul.f32 %v10086_v13, %v4928_v42  ;;  %v4888_v57 = vpop.f32.mrb[11].mxu1 }
 0x451   : > { %v4941_v54 = vadd.f32 %v4940_v46, %v4929_v45  ;;  %v4930_v59 = vmul.f32 %v4928_v42, %v4888_v57 }
 0x452   : > { %v4951_v60 = vmax.f32 %v4943_v24, 0.0  ;;  %v4944_v48 = vadd.f32 %v4940_v46, %v4932_v55 }
 0x453   : > { %v4949_v10 = vmax.f32 %v4941_v54, 0.0  ;;  %v4942_v53 = vadd.f32 %v4940_v46, %v4930_v59 }
 0x454   : > { %4960 = vst [vmem:[#allocation3 + $0x31] sm:$0xff] %v4951_v60  ;;  %v4952_v63 = vmax.f32 %v4944_v48, 0.0  ;;  %v12621_v22 = vmul.f32 %v12610_v4, %v4951_v60  ;;  %v5011_v50 = vmul.f32 %v12594_v26, %v4951_v60  ;;  %v12629_v1 = vmul.f32 %v12615_v17, %v4951_v60 }
 0x455   : > { %4958 = vst [vmem:[#allocation3 + $0x11] sm:$0xff] %v4949_v10  ;;  %v4950_v23 = vmax.f32 %v4942_v53, 0.0  ;;  %v10089_v5 = vpop.f32.mrb[12].mxu1  ;;  %v5009_v25 = vmul.f32 %v12594_v26, %v4949_v10  ;;  %v5095_v33 = vmul.f32 %v12615_v17, %v4949_v10 }
 0x456   : > { %4961 = vst [vmem:[#allocation3 + $0x41] sm:$0xff] %v4952_v63  ;;  %v4935_v36 = vmul.f32 %v10089_v5, %v4928_v42  ;;  %v4901_v7 = vpop.f32.mrb[13].mxu1  ;;  %v12638_v40 = vmul.f32 %v12615_v17, %v4952_v63  ;;  %v12653_v34 = vmul.f32 %v12610_v4, %v4952_v63  ;;  %v12656_v31 = vmul.f32 %v12594_v26, %v4952_v63 }
 0x457   : > { %4959 = vst [vmem:[#allocation3 + $0x21] sm:$0xff] %v4950_v23  ;;  %v4933_v15 = vmul.f32 %v4928_v42, %v4901_v7  ;;  %v10090_v20 = vpop.f32.mrb[14].mxu1  ;;  %v5096_v39 = vmul.f32 %v12615_v17, %v4950_v23  ;;  %v5183_v49 = vmul.f32 %v12610_v4, %v4950_v23  ;;  %v5010_v27 = vmul.f32 %v12594_v26, %v4950_v23 }
 0x458   : > { %v4947_v9 = vadd.f32 %v4940_v46, %v4935_v36  ;;  %v4936_v0 = vmul.f32 %v10090_v20, %v4928_v42  ;;  %v4904_v11 = vpop.f32.mrb[15].mxu1 }
 0x459   : > { %v4945_v29 = vadd.f32 %v4940_v46, %v4933_v15  ;;  %v4934_v32 = vmul.f32 %v4928_v42, %v4904_v11 }
 0x45a   : > { %v12640_v35 = vmax.f32 %v4947_v9, 0.0  ;;  %v4948_v61 = vadd.f32 %v4940_v46, %v4936_v0 }
 0x45b   : > { %v12658_v19 = vmax.f32 %v4945_v29, 0.0  ;;  %v4946_v38 = vadd.f32 %v4940_v46, %v4934_v32  ;;  %v5142_v44 = vld [vmem:[#allocation3 + $0x30] sm:$0xff] }
 0x45c   : > { %v5200_v42 = vld [vmem:[#allocation3 + $0x32] sm:$0xff]  ;;  %4964 = vst [vmem:[#allocation3 + $0x71] sm:$0xff] %v12640_v35  ;;  %v12668_v56 = vmax.f32 %v4948_v61, 0.0  ;;  %v5155_v28 = vmul.f32 %v12635_v6, %v5142_v44  ;;  %v4982_v46 = vmul.f32 %v12588_v43, %v5142_v44  ;;  %v5068_v53 = vmul.f32 %v12645_v62, %v5142_v44 }
 0x45d   : > { %v4967_v3 = vld [vmem:[#allocation3 + $0x10] sm:$0xff]  ;;  %4962 = vst [vmem:[#allocation3 + $0x51] sm:$0xff] %v12658_v19  ;;  %v12674_v30 = vmax.f32 %v4946_v38, 0.0  ;;  %v12679_v12 = vmul.f32 %v12650_v18, %v5200_v42  ;;  %v5040_v60 = vmul.f32 %v12601_v52, %v5200_v42  ;;  %v5056_v48 = vld [vmem:[#allocation3 + $0x40] sm:$0xff] }
 0x45e   : > { %v5025_v51 = vld [vmem:[#allocation3 + $0x12] sm:$0xff]  ;;  %v4980_v45 = vmul.f32 %v12588_v43, %v4967_v3  ;;  %v5066_v13 = vmul.f32 %v12645_v62, %v4967_v3  ;;  %4965 = vst [vmem:[#allocation3 + $0x81] sm:$0xff] %v12668_v56  ;;  %v5054_v55 = vld [vmem:[#allocation3 + $0x20] sm:$0xff]  ;;  %v5019_v59 = vadd.f32 %v5011_v50, %v4982_v46  ;;  %v5069_v50 = vmul.f32 %v12645_v62, %v5056_v48 }
 0x45f   : > { %v5038_v24 = vmul.f32 %v12601_v52, %v5025_v51  ;;  %v5112_v57 = vld [vmem:[#allocation3 + $0x22] sm:$0xff]  ;;  %v5124_v54 = vmul.f32 %v12664_v41, %v5025_v51  ;;  %4963 = vst [vmem:[#allocation3 + $0x61] sm:$0xff] %v12674_v30  ;;  %v5067_v2 = vmul.f32 %v12645_v62, %v5054_v55  ;;  %v5154_v23 = vmul.f32 %v12635_v6, %v5054_v55 }
 0x460   : > { %v5017_v21 = vadd.f32 %v5009_v25, %v4980_v45  ;;  %v5074_v10 = vadd.f32 %v5066_v13, %v5045_v37  ;;  %v5114_v58 = vld [vmem:[#allocation3 + $0x42] sm:$0xff]  ;;  %v5125_v63 = vmul.f32 %v12664_v41, %v5112_v57  ;;  %v5212_v5 = vmul.f32 %v12650_v18, %v5112_v57 }
 0x461   : > { %v4981_v36 = vmul.f32 %v12588_v43, %v5054_v55  ;;  %v5048_v20 = vadd.f32 %v5040_v60, %v5019_v59  ;;  %v5039_v0 = vmul.f32 %v12601_v52, %v5112_v57  ;;  %v5126_v37 = vmul.f32 %v12664_v41, %v5200_v42 }
 0x462   : > { %v5046_v7 = vadd.f32 %v5038_v24, %v5017_v21  ;;  %v5103_v15 = vadd.f32 %v5095_v33, %v5074_v10  ;;  %v5127_v11 = vmul.f32 %v12664_v41, %v5114_v58  ;;  %v5156_v61 = vmul.f32 %v12635_v6, %v5056_v48 }
 0x463   : > { %v5018_v9 = vadd.f32 %v5010_v27, %v4981_v36  ;;  %v5077_v32 = vadd.f32 %v5069_v50, %v5048_v20  ;;  %v5186_v33 = vmul.f32 %v12610_v4, %v12658_v19  ;;  %v4983_v51 = vmul.f32 %v12588_v43, %v5056_v48 }
 0x464   : > { %v5075_v25 = vadd.f32 %v5067_v2, %v5046_v7  ;;  %v5132_v29 = vadd.f32 %v5124_v54, %v5103_v15  ;;  %v5144_v44 = vld [vmem:[#allocation3 + $0x50] sm:$0xff]  ;;  %v5013_v46 = vmul.f32 %v12594_v26, %v12658_v19  ;;  %v5041_v48 = vmul.f32 %v12601_v52, %v5114_v58 }
 0x465   : > { %v5047_v38 = vadd.f32 %v5039_v0, %v5018_v9  ;;  %v5202_v3 = vld [vmem:[#allocation3 + $0x52] sm:$0xff]  ;;  %v5106_v45 = vadd.f32 %v12638_v40, %v5077_v32  ;;  %v5157_v13 = vmul.f32 %v12635_v6, %v5144_v44  ;;  %v4984_v57 = vmul.f32 %v12588_v43, %v5144_v44 }
 0x466   : > { %v5104_v27 = vadd.f32 %v5096_v39, %v5075_v25  ;;  %v5162_v42 = vadd.f32 %v5154_v23, %v5132_v29  ;;  %v5215_v55 = vmul.f32 %v12650_v18, %v5202_v3  ;;  %v5020_v54 = vadd.f32 %v12656_v31, %v4983_v51  ;;  %v5058_v2 = vld [vmem:[#allocation3 + $0x60] sm:$0xff] }
 0x467   : > { %v5076_v24 = vadd.f32 %v5068_v53, %v5047_v38  ;;  %v5135_v21 = vadd.f32 %v5127_v11, %v5106_v45  ;;  %v5021_v10 = vadd.f32 %v5013_v46, %v4984_v57  ;;  %v5042_v40 = vmul.f32 %v12601_v52, %v5202_v3  ;;  %v5116_v11 = vld [vmem:[#allocation3 + $0x62] sm:$0xff] }
 0x468   : > { %v5133_v59 = vadd.f32 %v5125_v63, %v5104_v27  ;;  %v5191_v60 = vadd.f32 %v5183_v49, %v5162_v42  ;;  %v5070_v23 = vmul.f32 %v12645_v62, %v5144_v44  ;;  %v5049_v15 = vadd.f32 %v5041_v48, %v5020_v54  ;;  %v5146_v44 = vld [vmem:[#allocation3 + $0x70] sm:$0xff] }
 0x469   : > { %v5105_v39 = vadd.f32 %v12629_v1, %v5076_v24  ;;  %v5165_v7 = vadd.f32 %v5157_v13, %v5135_v21  ;;  %v5050_v50 = vadd.f32 %v5042_v40, %v5021_v10  ;;  %v5071_v31 = vmul.f32 %v12645_v62, %v5058_v2  ;;  %v5204_v54 = vld [vmem:[#allocation3 + $0x72] sm:$0xff] }
 0x46a   : > { %v5163_v53 = vadd.f32 %v5155_v28, %v5133_v59  ;;  %v5220_v36 = vadd.f32 %v5212_v5, %v5191_v60  ;;  %v5099_v49 = vmul.f32 %v12615_v17, %v12658_v19  ;;  %v5078_v0 = vadd.f32 %v5070_v23, %v5049_v15 }
 0x46b   : > { %v5134_v20 = vadd.f32 %v5126_v37, %v5105_v39  ;;  %v5194_v9 = vadd.f32 %v5186_v33, %v5165_v7  ;;  %v5214_v28 = vmul.f32 %v12650_v18, %v5114_v58  ;;  %v5079_v5 = vadd.f32 %v5071_v31, %v5050_v50  ;;  %v5060_v31 = vld [vmem:[#allocation3 + $0x80] sm:$0xff] }
 0x46c   : > { %v5192_v63 = vadd.f32 %v12621_v22, %v5163_v53  ;;  %v5233_v1 = vmul.f32 %v12618_v8, %v5220_v36  ;;  %v5100_v37 = vmul.f32 %v12615_v17, %v12674_v30  ;;  %v5107_v38 = vadd.f32 %v5099_v49, %v5078_v0 }
 0x46d   : > { %v5164_v25 = vadd.f32 %v5156_v61, %v5134_v20  ;;  %v5223_v32 = vadd.f32 %v5215_v55, %v5194_v9  ;;  %v5128_v19 = vmul.f32 %v12664_v41, %v5202_v3  ;;  %v5129_v61 = vmul.f32 %v12664_v41, %v5116_v11 }
 0x46e   : > { %v5221_v29 = vadd.f32 %v12679_v12, %v5192_v63  ;;  %v5245_v22 = vadd.f32 %v12624_v47, %v5233_v1  ;;  %v5108_v51 = vadd.f32 %v5100_v37, %v5079_v5  ;;  %v5158_v42 = vmul.f32 %v12635_v6, %v5058_v2  ;;  %v5118_v37 = vld [vmem:[#allocation3 + $0x82] sm:$0xff] }
 0x46f   : > { %v5193_v33 = vadd.f32 %v12653_v34, %v5164_v25  ;;  %v5236_v46 = vmul.f32 %v12618_v8, %v5223_v32  ;;  %v5136_v27 = vadd.f32 %v5128_v19, %v5107_v38  ;;  %v5159_v13 = vmul.f32 %v12635_v6, %v5146_v44 }
 0x470   : > { %v5234_v58 = vmul.f32 %v12618_v8, %v5221_v29  ;;  %v5137_v45 = vadd.f32 %v5129_v61, %v5108_v51  ;;  %v5187_v3 = vmul.f32 %v12610_v4, %v12674_v30  ;;  %v5188_v57 = vmul.f32 %v12610_v4, %v12640_v35  ;;  %v12758_v61 = vld [vmem:[#allocation3] sm:$0xff] }
 0x471   : > { %v5222_v12 = vadd.f32 %v5214_v28, %v5193_v33  ;;  %v5248_v34 = vadd.f32 %v12624_v47, %v5236_v46  ;;  %v5166_v55 = vadd.f32 %v5158_v42, %v5136_v27  ;;  %v5216_v21 = vmul.f32 %v12650_v18, %v5116_v11  ;;  %v5206_v27 = vld [vmem:[#allocation3 + $0x92] sm:$0xff] }
 0x472   : > { %v5246_v24 = vadd.f32 %v12624_v47, %v5234_v58  ;;  %v5167_v60 = vadd.f32 %v5159_v13, %v5137_v45  ;;  %v4985_v48 = vmul.f32 %v12588_v43, %v5058_v2  ;;  %v4986_v40 = vmul.f32 %v12588_v43, %v5146_v44 }
 0x473   : > { %v5235_v59 = vmul.f32 %v12618_v8, %v5222_v12  ;;  %v5195_v10 = vadd.f32 %v5187_v3, %v5166_v55  ;;  %v5014_v23 = vmul.f32 %v12594_v26, %v12674_v30  ;;  %v5217_v7 = vmul.f32 %v12650_v18, %v5204_v54 }
 0x474   : > { %v5253_v39 = vpack.c.bf16 %v5246_v24, %v5245_v22  ;;  %v5196_v36 = vadd.f32 %v5188_v57, %v5167_v60  ;;  %v5015_v15 = vmul.f32 %v12594_v26, %v12640_v35  ;;  %v5043_v2 = vmul.f32 %v12601_v52, %v5116_v11  ;;  %v5177_v22 = vld [vmem:[#allocation3 + $0x91] sm:$0xff] }
 0x475   : > { %v5247_v53 = vadd.f32 %v12624_v47, %v5235_v59  ;;  %v5224_v20 = vadd.f32 %v5216_v21, %v5195_v10  ;;  %v5022_v50 = vadd.f32 %v5014_v23, %v4985_v48  ;;  %v5044_v1 = vmul.f32 %v12601_v52, %v5204_v54  ;;  %v10879_v48 = vld [vmem:[%s13422_s11 + $0x28] sm:$0xff]   ;;  %v10881_v10 = vld [vmem:[%s13422_s11 + $0x38] sm:$0xff]  }
 0x476   : > { %10107 = vmatprep.mubr.bf16.mxu0 %v5253_v39  ;;  %v5225_v63 = vadd.f32 %v5217_v7, %v5196_v36  ;;  %v5023_v43 = vadd.f32 %v5015_v15, %v4986_v40  ;;  %v5072_v0 = vmul.f32 %v12645_v62, %v5146_v44  ;;  %v5073_v28 = vmul.f32 %v12645_v62, %v5060_v31  ;;  %v10880_v39 = vld [vmem:[%s13422_s11 + $0x30] sm:$0xff]   ;;  %v10882_v40 = vld [vmem:[%s13425_s14] sm:$0xff]   ;;  %v10883_v23 = vld [vmem:[%s13425_s14 + $0x8] sm:$0xff]  }
 0x477   : > { %v5254_v49 = vpack.c.bf16 %v5248_v34, %v5247_v53  ;;  %v5237_v30 = vmul.f32 %v12618_v8, %v5224_v20  ;;  %v5051_v9 = vadd.f32 %v5043_v2, %v5022_v50  ;;  %v5101_v11 = vmul.f32 %v12615_v17, %v12640_v35  ;;  %10139 = vmatprep.subr.bf16.mxu0 %v10882_v40  ;;  %v10890_v53 = vld [vmem:[#allocation5] ss:$12 sps:$4 sm:$0xff]   ;;  %v10886_v15 = vld [vmem:[%s13425_s14 + $0x20] sm:$0xff]   ;;  %v10887_v20 = vld [vmem:[%s13425_s14 + $0x28] sm:$0xff]  }
 0x478   : > { %v5238_v25 = vmul.f32 %v12618_v8, %v5225_v63  ;;  %v5052_v26 = vadd.f32 %v5044_v1, %v5023_v43  ;;  %v5102_v38 = vmul.f32 %v12615_v17, %v12668_v56  ;;  %v5130_v44 = vmul.f32 %v12664_v41, %v5204_v54  ;;  %v10884_v36 = vld [vmem:[%s13425_s14 + $0x10] sm:$0xff]   ;;  %v10885_v7 = vld [vmem:[%s13425_s14 + $0x18] sm:$0xff]  }
 0x479   : > { %10108 = vmatmul.mubr.bf16.vlgmr.msra.gmra.mrb[8].mxu0 %v5254_v49  ;;  %v5080_v5 = vadd.f32 %v5072_v0, %v5051_v9  ;;  %v5249_v29 = vadd.f32 %v12624_v47, %v5237_v30  ;;  %v5131_v62 = vmul.f32 %v12664_v41, %v5118_v37  ;;  %v5161_v35 = vmul.f32 %v12758_v61, %v12635_v6  ;;  %v10888_v50 = vld [vmem:[%s13425_s14 + $0x30] sm:$0xff]   ;;  %v10889_v2 = vld [vmem:[%s13425_s14 + $0x38] sm:$0xff]   ;;  %v5386_v49 = vld [vmem:[#allocation6] sm:$0x3] }
 0x47a   : > { %v5250_v52 = vadd.f32 %v12624_v47, %v5238_v25  ;;  %v5081_v32 = vadd.f32 %v5073_v28, %v5052_v26  ;;  %v5160_v46 = vmul.f32 %v12635_v6, %v5060_v31  ;;  %v5190_v17 = vmul.f32 %v12610_v4, %v5177_v22  ;;  %10140 = vmatpush3.bf16.msra.mxu0 %v10882_v40  ;;  %v12824_v31 = vld [vmem:[%s13424_s13] sm:$0xff]  }
 0x47b   : > { %v5109_v19 = vadd.f32 %v5101_v11, %v5080_v5  ;;  %v5189_v45 = vmul.f32 %v12610_v4, %v12668_v56  ;;  %v5219_v41 = vmul.f32 %v12650_v18, %v5206_v27  ;;  %v5218_v24 = vmul.f32 %v12650_v18, %v5118_v37  ;;  %v10874_v4 = vld [vmem:[%s13422_s11] sm:$0xff]   ;;  %v10875_v18 = vld [vmem:[%s13422_s11 + $0x8] sm:$0xff]   ;;  %10141 = vmatprep.subr.bf16.mxu0 %v10883_v23  ;;  %v5473_v37 = vld [vmem:[#allocation4 + $0x2] sm:$0xff] }
 0x47c   : > { %v5255_v33 = vpack.c.bf16 %v5250_v52, %v5249_v29  ;;  %v5110_v51 = vadd.f32 %v5102_v38, %v5081_v32  ;;  %10115 = vmatprep.subr.bf16.mxu1 %v10874_v4  ;;  %v10878_v56 = vld [vmem:[%s13422_s11 + $0x20] sm:$0xff]   ;;  %v12828_v63 = vrot.slane %v5386_v49, %v12023_v14  ;;  %v12831_v43 = vrot.slane %v5386_v49, %v12028_v16 }
 0x47d   : > { %v5138_v58 = vadd.f32 %v5130_v44, %v5109_v19  ;;  %10116 = vmatpush3.bf16.msra.mxu1 %v10874_v4  ;;  %v12838_v26 = vld [vmem:[%s13420_s9] ss:$0 sm:$0xff]  ;;  %v5474_v29 = vld [vmem:[#allocation4 + $0x12] sm:$0xff]  ;;  %v12851_v22 = vld [vmem:[%s13420_s9 + $0x1] ss:$0 sm:$0xff] }
 0x47e   : > { %10111 = vmatprep.mubr.bf16.mxu0 %v5255_v33  ;;  %v5139_v42 = vadd.f32 %v5131_v62, %v5110_v51  ;;  %10117 = vmatprep.subr.bf16.mxu1 %v10875_v18  ;;  %v5457_v44 = vmul.f32 %v12758_v61, %v12838_v26  ;;  %v5486_v62 = vmul.f32 %v12851_v22, %v5473_v37  ;;  %v12918_v40 = vld [vmem:[%s13420_s9 + $0x5] ss:$0 sm:$0xff] }
 0x47f   : > { %v5168_v12 = vadd.f32 %v5160_v46, %v5138_v58  ;;  %10142 = vmatpush3.bf16.msra.mxu0 %v10883_v23  ;;  %v5502_v58 = vld [vmem:[#allocation4 + $0x4] sm:$0xff]  ;;  %v12859_v46 = vld [vmem:[%s13420_s9 + $0x2] ss:$0 sm:$0xff] }
 0x480   : > { %v5169_v13 = vadd.f32 %v5161_v35, %v5139_v42  ;;  %10143 = vmatprep.subr.bf16.mxu0 %v10884_v36  ;;  %v5487_v35 = vmul.f32 %v12851_v22, %v5474_v29  ;;  %v5503_v42 = vld [vmem:[#allocation4 + $0x14] sm:$0xff] }
 0x481   : > { %v5197_v3 = vadd.f32 %v5189_v45, %v5168_v12  ;;  %10118 = vmatpush3.bf16.msra.mxu1 %v10875_v18  ;;  %v5515_v45 = vmul.f32 %v12859_v46, %v5502_v58 }
 0x482   : > { %v5198_v34 = vadd.f32 %v5190_v17, %v5169_v13 }
 0x483   : > { %v5226_v55 = vadd.f32 %v5218_v24, %v5197_v3  ;;  %10144 = vmatpush3.bf16.msra.mxu0 %v10884_v36  ;;  %v5495_v3 = vadd.f32 %v5487_v35, %v5457_v44  ;;  %v5516_v24 = vmul.f32 %v12859_v46, %v5503_v42 }
 0x484   : > { %v5227_v57 = vadd.f32 %v5219_v41, %v5198_v34  ;;  %10145 = vmatprep.subr.bf16.mxu0 %v10885_v7  ;;  %v5494_v41 = vadd.f32 %v5486_v62, %v5457_v44  ;;  %v12877_v34 = vld [vmem:[%s13421_s10] sm:$0x3] }
 0x485   : > { %v5239_v6 = vmul.f32 %v12618_v8, %v5226_v55  ;;  %v12883_v55 = vld [vmem:[%s13420_s9 + $0x4] ss:$0 sm:$0xff] }
 0x486   : > { %v5240_v54 = vmul.f32 %v12618_v8, %v5227_v57  ;;  %v10876_v8 = vld [vmem:[%s13422_s11 + $0x10] sm:$0xff]   ;;  %v12888_v57 = vld [vmem:[%s13420_s9 + $0x7] ss:$0 sm:$0xff] }
 0x487   : > { %v5251_v59 = vadd.f32 %v12624_v47, %v5239_v6  ;;  %10119 = vmatprep.subr.bf16.mxu1 %v10876_v8  ;;  %10146 = vmatpush3.bf16.msra.mxu0 %v10885_v7  ;;  %v12894_v6 = vld [vmem:[%s13420_s9 + $0x3] ss:$0 sm:$0xff] }
 0x488   : > { %v5252_v60 = vadd.f32 %v12624_v47, %v5240_v54  ;;  %v10877_v47 = vld [vmem:[%s13422_s11 + $0x18] sm:$0xff]   ;;  %10120 = vmatpush3.bf16.msra.mxu1 %v10876_v8  ;;  %10147 = vmatprep.subr.bf16.mxu0 %v10886_v15  ;;  %v12899_v54 = vld [vmem:[%s13420_s9 + $0x6] ss:$0 sm:$0xff] }
 0x489   : > { %10121 = vmatprep.subr.bf16.mxu1 %v10877_v47 }
 0x48a   : > { %v5256_v21 = vpack.c.bf16 %v5252_v60, %v5251_v59  ;;  %v12903_v59 = vrot.slane %v12877_v34, %v12023_v14  ;;  %v5523_v60 = vadd.f32 %v5515_v45, %v5494_v41 }
 0x48b   : > { %10148 = vmatpush3.bf16.msra.mxu0 %v10886_v15 }
 0x48c   : > { %10112 = vmatmul.mubr.bf16.gmra.mrb[12].mxu0 %v5256_v21  ;;  %10122 = vmatpush3.bf16.msra.mxu1 %v10877_v47  ;;  %v5524_v21 = vadd.f32 %v5516_v24, %v5495_v3  ;;  %v12911_v47 = vld [vmem:[%s13420_s9 + $0x8] ss:$0 sm:$0xff] }
 0x48d   : > { %10123 = vmatprep.subr.bf16.mxu1 %v10878_v56  ;;  %10155 = vmatprep.mubr.bf16.mxu0 %v10890_v53 }
 0x48e   : > { %10149 = vmatprep.subr.bf16.mxu0 %v10887_v20 }
 0x48f   : > { %10150 = vmatpush3.bf16.msra.mxu0 %v10887_v20 }
 0x490   : > { %10124 = vmatpush3.bf16.msra.mxu1 %v10878_v56  ;;  %10151 = vmatprep.subr.bf16.mxu0 %v10888_v50 }
 0x491   : > { %10125 = vmatprep.subr.bf16.mxu1 %v10879_v48 }
 0x493   : > { %10152 = vmatpush3.bf16.msra.mxu0 %v10888_v50 }
 0x494   : > { %10126 = vmatpush3.bf16.msra.mxu1 %v10879_v48  ;;  %10153 = vmatprep.subr.bf16.mxu0 %v10889_v2 }
 0x495   : > { %10127 = vmatprep.subr.bf16.mxu1 %v10880_v39 }
 0x497   : > { %10154 = vmatpush3.bf16.msra.mxu0 %v10889_v2 }
 0x498   : > { %10128 = vmatpush3.bf16.msra.mxu1 %v10880_v39  ;;  %10163 = vmatprep.subr.bf16.mxu0 %v12824_v31 }
 0x499   : > { %10129 = vmatprep.subr.bf16.mxu1 %v10881_v10 }
 0x49c   : > { %10130 = vmatpush3.bf16.msra.mxu1 %v10881_v10 }
 0x49d   : > { %10355 = vmatprep.subr.bf16.mxu1 %v12758_v61 }
 0x54c   : > { %v10109_v1 = vpop.f32.mrb[8].mxu0 }
 0x54d   : > { %v5393_v30 = vmul.f32 %v10109_v1, %v12828_v63  ;;  %v5355_v9 = vpop.f32.mrb[9].mxu0 }
 0x54e   : > { %v5391_v0 = vmul.f32 %v12828_v63, %v5355_v9  ;;  %v10110_v25 = vpop.f32.mrb[10].mxu0 }
 0x54f   : > { %v5405_v28 = vadd.f32 %v12831_v43, %v5393_v30  ;;  %v5394_v5 = vmul.f32 %v10110_v25, %v12828_v63  ;;  %v5358_v11 = vpop.f32.mrb[11].mxu0 }
 0x550   : > { %v5403_v52 = vadd.f32 %v12831_v43, %v5391_v0  ;;  %v5392_v32 = vmul.f32 %v12828_v63, %v5358_v11 }
 0x551   : > { %v5413_v38 = vmax.f32 %v5405_v28, 0.0  ;;  %v5406_v19 = vadd.f32 %v12831_v43, %v5394_v5 }
 0x552   : > { %v5411_v33 = vmax.f32 %v5403_v52, 0.0  ;;  %v5404_v51 = vadd.f32 %v12831_v43, %v5392_v32 }
 0x553   : > { %5422 = vst [vmem:[#allocation4 + $0x42] sm:$0xff] %v5413_v38  ;;  %v12861_v27 = vmax.f32 %v5406_v19, 0.0  ;;  %v5661_v18 = vmul.f32 %v12888_v57, %v5413_v38  ;;  %v5575_v56 = vmul.f32 %v12883_v55, %v5413_v38  ;;  %v5490_v36 = vmul.f32 %v12851_v22, %v5413_v38 }
 0x554   : > { %5420 = vst [vmem:[#allocation4 + $0x22] sm:$0xff] %v5411_v33  ;;  %v5412_v17 = vmax.f32 %v5404_v51, 0.0  ;;  %v5573_v39 = vmul.f32 %v12883_v55, %v5411_v33  ;;  %v5488_v53 = vmul.f32 %v12851_v22, %v5411_v33 }
 0x555   : > { %5423 = vst [vmem:[#allocation4 + $0x52] sm:$0xff] %v12861_v27  ;;  %v9243_v12 = vpack.c.bf16 %v12861_v27, %v5413_v38  ;;  %v5662_v23 = vmul.f32 %v12888_v57, %v12861_v27  ;;  %v5576_v2 = vmul.f32 %v12883_v55, %v12861_v27 }
 0x556   : > { %5421 = vst [vmem:[#allocation4 + $0x32] sm:$0xff] %v5412_v17  ;;  %v9238_v13 = vpack.c.bf16 %v5412_v17, %v5411_v33  ;;  %v5574_v15 = vmul.f32 %v12883_v55, %v5412_v17  ;;  %v5489_v0 = vmul.f32 %v12851_v22, %v5412_v17 }
 0x557   : > { %9275 = vst [vmem:[%s12868_s5 + $0x8] sm:$0xff] %v9243_v12  }
 0x558   : > { %9239 = vst [vmem:[%s12868_s5] sm:$0xff] %v9238_v13  }
 0x55a   : > { %v5619_v4 = vld [vmem:[#allocation4 + $0x40] sm:$0xff] }
 0x55b   : > { %v12906_v8 = vld [vmem:[#allocation4 + $0x44] sm:$0xff]  ;;  %v5632_v30 = vmul.f32 %v12899_v54, %v5619_v4  ;;  %v5546_v25 = vmul.f32 %v12894_v6, %v5619_v4  ;;  %v5461_v12 = vmul.f32 %v12838_v26, %v5619_v4 }
 0x55c   : > { %v5531_v48 = vld [vmem:[#allocation4 + $0x20] sm:$0xff]  ;;  %v5620_v20 = vld [vmem:[#allocation4 + $0x50] sm:$0xff]  ;;  %v5690_v9 = vmul.f32 %v12911_v47, %v12906_v8 }
 0x55d   : > { %v5589_v10 = vld [vmem:[#allocation4 + $0x24] sm:$0xff]  ;;  %v5544_v7 = vmul.f32 %v12894_v6, %v5531_v48  ;;  %v5459_v50 = vmul.f32 %v12838_v26, %v5531_v48  ;;  %v5532_v49 = vld [vmem:[#allocation4 + $0x30] sm:$0xff]  ;;  %v5633_v29 = vmul.f32 %v12899_v54, %v5620_v20  ;;  %v5547_v38 = vmul.f32 %v12894_v6, %v5620_v20 }
 0x55e   : > { %v5590_v1 = vld [vmem:[#allocation4 + $0x34] sm:$0xff]  ;;  %v5545_v28 = vmul.f32 %v12894_v6, %v5532_v49  ;;  %v5602_v11 = vmul.f32 %v12918_v40, %v5589_v10  ;;  %v5460_v37 = vmul.f32 %v12838_v26, %v5532_v49  ;;  %v5517_v32 = vmul.f32 %v12859_v46, %v5589_v10 }
 0x55f   : > { %v5552_v5 = vadd.f32 %v5544_v7, %v5523_v60  ;;  %v5496_v52 = vadd.f32 %v5488_v53, %v5459_v50  ;;  %v10113_v19 = vpop.f32.mrb[12].mxu0  ;;  %v5518_v62 = vmul.f32 %v12859_v46, %v5590_v1  ;;  %v5603_v42 = vmul.f32 %v12918_v40, %v5590_v1  ;;  %v5678_v49 = vld [vmem:[#allocation4 + $0x54] sm:$0xff] }
 0x560   : > { %v5553_v44 = vadd.f32 %v5545_v28, %v5524_v21  ;;  %v5497_v51 = vadd.f32 %v5489_v0, %v5460_v37  ;;  %v5397_v35 = vmul.f32 %v10113_v19, %v12828_v63  ;;  %v5371_v58 = vpop.f32.mrb[13].mxu0  ;;  %v5462_v10 = vmul.f32 %v12838_v26, %v5620_v20 }
 0x561   : > { %v5581_v33 = vadd.f32 %v5573_v39, %v5552_v5  ;;  %v5525_v17 = vadd.f32 %v5517_v32, %v5496_v52  ;;  %v5395_v45 = vmul.f32 %v12828_v63, %v5371_v58  ;;  %v10114_v13 = vpop.f32.mrb[14].mxu0  ;;  %v5691_v20 = vmul.f32 %v12911_v47, %v5678_v49 }
 0x562   : > { %v5582_v41 = vadd.f32 %v5574_v15, %v5553_v44  ;;  %v5526_v24 = vadd.f32 %v5518_v62, %v5497_v51  ;;  %v5409_v60 = vadd.f32 %v12831_v43, %v5397_v35  ;;  %v5398_v21 = vmul.f32 %v10114_v13, %v12828_v63  ;;  %v5374_v48 = vpop.f32.mrb[15].mxu0 }
 0x563   : > { %v5610_v3 = vadd.f32 %v5602_v11, %v5581_v33  ;;  %v5554_v39 = vadd.f32 %v5546_v25, %v5525_v17  ;;  %v5407_v53 = vadd.f32 %v12831_v43, %v5395_v45  ;;  %v5396_v7 = vmul.f32 %v12828_v63, %v5374_v48 }
 0x564   : > { %v5611_v50 = vadd.f32 %v5603_v42, %v5582_v41  ;;  %v5417_v1 = vmax.f32 %v5409_v60, 0.0  ;;  %v5410_v15 = vadd.f32 %v12831_v43, %v5398_v21  ;;  %v5555_v0 = vadd.f32 %v5547_v38, %v5526_v24 }
 0x565   : > { %v5640_v4 = vadd.f32 %v5632_v30, %v5610_v3  ;;  %v5583_v28 = vadd.f32 %v5575_v56, %v5554_v39  ;;  %v5415_v5 = vmax.f32 %v5407_v53, 0.0  ;;  %v5408_v11 = vadd.f32 %v12831_v43, %v5396_v7 }
 0x566   : > { %v5641_v37 = vadd.f32 %v5633_v29, %v5611_v50  ;;  %5426 = vst [vmem:[#allocation4 + $0x82] sm:$0xff] %v5417_v1  ;;  %v12952_v25 = vmax.f32 %v5410_v15, 0.0  ;;  %v5584_v32 = vadd.f32 %v5576_v2, %v5555_v0  ;;  %v5491_v63 = vmul.f32 %v12851_v22, %v12861_v27  ;;  %v5654_v27 = vld [vmem:[#allocation4 + $0xa2] sm:$0xff] }
 0x567   : > { %v5669_v52 = vadd.f32 %v5661_v18, %v5640_v4  ;;  %5424 = vst [vmem:[#allocation4 + $0x62] sm:$0xff] %v5415_v5  ;;  %v5416_v30 = vmax.f32 %v5408_v11, 0.0  ;;  %v5498_v56 = vadd.f32 %v5490_v36, %v5461_v12  ;;  %v12961_v18 = vrot.slane %v12877_v34, %v12028_v16 }
 0x568   : > { %v5670_v19 = vadd.f32 %v5662_v23, %v5641_v37  ;;  %5427 = vst [vmem:[#allocation4 + $0x92] sm:$0xff] %v12952_v25  ;;  %v9253_v43 = vpack.c.bf16 %v12952_v25, %v5417_v1  ;;  %v5604_v2 = vmul.f32 %v12918_v40, %v12906_v8  ;;  %v5499_v29 = vadd.f32 %v5491_v63, %v5462_v10 }
 0x569   : > { %v5698_v38 = vadd.f32 %v5690_v9, %v5669_v52  ;;  %5425 = vst [vmem:[#allocation4 + $0x72] sm:$0xff] %v5416_v30  ;;  %v9248_v44 = vpack.c.bf16 %v5416_v30, %v5415_v5  ;;  %v5519_v36 = vmul.f32 %v12859_v46, %v12906_v8  ;;  %v5605_v9 = vmul.f32 %v12918_v40, %v5678_v49 }
 0x56a   : > { %v5699_v33 = vadd.f32 %v5691_v20, %v5670_v19  ;;  %9277 = vst [vmem:[%s12868_s5 + $0x18] sm:$0xff] %v9253_v43   ;;  %v5520_v51 = vmul.f32 %v12859_v46, %v5678_v49  ;;  %v12973_v34 = vmul.f32 %v12758_v61, %v12899_v54  ;;  %v5612_v35 = vadd.f32 %v5604_v2, %v5583_v28 }
 0x56b   : > { %v5711_v23 = vmul.f32 %v12903_v59, %v5698_v38  ;;  %9276 = vst [vmem:[%s12868_s5 + $0x10] sm:$0xff] %v9248_v44   ;;  %v5527_v58 = vadd.f32 %v5519_v36, %v5498_v56  ;;  %v12978_v42 = vmul.f32 %v12888_v57, %v5654_v27  ;;  %v5613_v17 = vadd.f32 %v5605_v9, %v5584_v32 }
 0x56c   : > { %v5712_v62 = vmul.f32 %v12903_v59, %v5699_v33  ;;  %v5663_v8 = vmul.f32 %v12888_v57, %v5415_v5  ;;  %v5528_v12 = vadd.f32 %v5520_v51, %v5499_v29  ;;  %v5577_v45 = vmul.f32 %v12883_v55, %v5415_v5 }
 0x56d   : > { %v5723_v13 = vadd.f32 %v12961_v18, %v5711_v23  ;;  %v5664_v3 = vmul.f32 %v12888_v57, %v5416_v30  ;;  %v5578_v24 = vmul.f32 %v12883_v55, %v5416_v30  ;;  %v5623_v60 = vld [vmem:[#allocation4 + $0x80] sm:$0xff]  ;;  %v5665_v39 = vmul.f32 %v12888_v57, %v5417_v1 }
 0x56e   : > { %v5724_v41 = vadd.f32 %v12961_v18, %v5712_v62  ;;  %v5621_v21 = vld [vmem:[#allocation4 + $0x60] sm:$0xff]  ;;  %v5666_v10 = vmul.f32 %v12888_v57, %v12952_v25  ;;  %v5492_v53 = vmul.f32 %v12851_v22, %v5415_v5  ;;  %v5493_v7 = vmul.f32 %v12851_v22, %v5416_v30 }
 0x56f   : > { %v5679_v48 = vld [vmem:[#allocation4 + $0x64] sm:$0xff]  ;;  %v5634_v4 = vmul.f32 %v12899_v54, %v5621_v21  ;;  %v5548_v49 = vmul.f32 %v12894_v6, %v5621_v21  ;;  %v5579_v15 = vmul.f32 %v12883_v55, %v5417_v1  ;;  %v5636_v37 = vmul.f32 %v12899_v54, %v5623_v60  ;;  %v5624_v29 = vld [vmem:[#allocation4 + $0x90] sm:$0xff] }
 0x570   : > { %v5731_v50 = vpack.c.bf16 %v5724_v41, %v5723_v13  ;;  %v5622_v0 = vld [vmem:[#allocation4 + $0x70] sm:$0xff]  ;;  %v5692_v11 = vmul.f32 %v12911_v47, %v5679_v48  ;;  %v5463_v52 = vmul.f32 %v12838_v26, %v5621_v21  ;;  %v5550_v20 = vmul.f32 %v12894_v6, %v5623_v60 }
 0x571   : > { %v5680_v28 = vld [vmem:[#allocation4 + $0x74] sm:$0xff]  ;;  %v5635_v22 = vmul.f32 %v12899_v54, %v5622_v0  ;;  %v5642_v5 = vadd.f32 %v5634_v4, %v5612_v35  ;;  %v5549_v32 = vmul.f32 %v12894_v6, %v5622_v0  ;;  %v5606_v63 = vmul.f32 %v12918_v40, %v5679_v48  ;;  %v5681_v35 = vld [vmem:[#allocation4 + $0x84] sm:$0xff] }
 0x572   : > { %10131 = vmatprep.mubr.bf16.mxu1 %v5731_v50  ;;  %v5693_v1 = vmul.f32 %v12911_v47, %v5680_v28  ;;  %v5556_v30 = vadd.f32 %v5548_v49, %v5527_v58  ;;  %v5464_v19 = vmul.f32 %v12838_v26, %v5622_v0  ;;  %v5500_v38 = vadd.f32 %v5492_v53, %v5463_v52  ;;  %v5682_v60 = vld [vmem:[#allocation4 + $0x94] sm:$0xff] }
 0x573   : > { %v5643_v56 = vadd.f32 %v5635_v22, %v5613_v17  ;;  %v5671_v43 = vadd.f32 %v5663_v8, %v5642_v5  ;;  %v5557_v2 = vadd.f32 %v5549_v32, %v5528_v12  ;;  %v5521_v27 = vmul.f32 %v12859_v46, %v5679_v48 }
 0x574   : > { %v5585_v44 = vadd.f32 %v5577_v45, %v5556_v30  ;;  %v5607_v33 = vmul.f32 %v12918_v40, %v5680_v28  ;;  %v5501_v23 = vadd.f32 %v5493_v7, %v5464_v19  ;;  %v5522_v36 = vmul.f32 %v12859_v46, %v5680_v28 }
 0x575   : > { %v5672_v9 = vadd.f32 %v5664_v3, %v5643_v56  ;;  %v5700_v51 = vadd.f32 %v5692_v11, %v5671_v43  ;;  %v5586_v62 = vadd.f32 %v5578_v24, %v5557_v2  ;;  %v5529_v58 = vadd.f32 %v5521_v27, %v5500_v38  ;;  %v5683_v11 = vld [vmem:[#allocation4 + $0xa4] sm:$0xff] }
 0x576   : > { %v5614_v13 = vadd.f32 %v5606_v63, %v5585_v44  ;;  %v5637_v26 = vmul.f32 %v12899_v54, %v5624_v29  ;;  %v5530_v17 = vadd.f32 %v5522_v36, %v5501_v23  ;;  %v5551_v8 = vmul.f32 %v12894_v6, %v5624_v29  ;;  %v5655_v6 = vld [vmem:[#allocation4 + $0xb2] sm:$0xff] }
 0x577   : > { %v5701_v12 = vadd.f32 %v5693_v1, %v5672_v9  ;;  %v5713_v41 = vmul.f32 %v12903_v59, %v5700_v51  ;;  %v5615_v45 = vadd.f32 %v5607_v33, %v5586_v62  ;;  %v5558_v21 = vadd.f32 %v5550_v20, %v5529_v58  ;;  %v10893_v36 = vld [vmem:[%s13424_s13 + $0x8] sm:$0xff]   ;;  %v10894_v9 = vld [vmem:[%s13424_s13 + $0x10] sm:$0xff]   ;;  %v10898_v51 = vld [vmem:[%s13424_s13 + $0x20] sm:$0xff]  }
 0x578   : > { %v5644_v48 = vadd.f32 %v5636_v37, %v5614_v13  ;;  %v5694_v46 = vmul.f32 %v12911_v47, %v5681_v35  ;;  %v5559_v3 = vadd.f32 %v5551_v8, %v5530_v17  ;;  %v5580_v24 = vmul.f32 %v12883_v55, %v12952_v25  ;;  %v5684_v25 = vld [vmem:[#allocation4 + $0xb4] sm:$0xff]  ;;  %v10899_v62 = vld [vmem:[%s13426_s15 + $0x10] sm:$0xff]   ;;  %v10901_v13 = vld [vmem:[%s13426_s15 + $0x18] sm:$0xff]  }
 0x579   : > { %v5714_v53 = vmul.f32 %v12903_v59, %v5701_v12  ;;  %v5645_v7 = vadd.f32 %v5637_v26, %v5615_v45  ;;  %v5587_v54 = vadd.f32 %v5579_v15, %v5558_v21  ;;  %v5608_v50 = vmul.f32 %v12918_v40, %v5681_v35  ;;  %v10902_v35 = vld [vmem:[#allocation5 + $0x30] ss:$12 sps:$4 sm:$0xff]   ;;  %v10903_v26 = vld [vmem:[%s13424_s13 + $0x30] sm:$0xff]   ;;  %v10906_v8 = vld [vmem:[%s13424_s13 + $0x38] sm:$0xff]  }
 0x57a   : > { %v5673_v4 = vadd.f32 %v5665_v39, %v5644_v48  ;;  %v5695_v49 = vmul.f32 %v12911_v47, %v5682_v60  ;;  %v5588_v0 = vadd.f32 %v5580_v24, %v5559_v3  ;;  %v5609_v28 = vmul.f32 %v12918_v40, %v5682_v60  ;;  %v10900_v58 = vld [vmem:[%s13424_s13 + $0x28] sm:$0xff]   ;;  %v10905_v17 = vld [vmem:[%s13426_s15 + $0x20] sm:$0xff]   ;;  %v10909_v45 = vld [vmem:[%s13426_s15 + $0x30] sm:$0xff]  }
 0x57b   : > { %v5725_v37 = vadd.f32 %v12961_v18, %v5713_v41  ;;  %v5726_v52 = vadd.f32 %v12961_v18, %v5714_v53  ;;  %v5674_v20 = vadd.f32 %v5666_v10, %v5645_v7  ;;  %v5616_v55 = vadd.f32 %v5608_v50, %v5587_v54  ;;  %v10907_v12 = vld [vmem:[%s13426_s15 + $0x28] sm:$0xff]   ;;  %v13082_v41 = vld [vmem:[%s13425_s14 + $0x40] sm:$0xff]   ;;  %v10911_v60 = vld [vmem:[%s13426_s15 + $0x38] sm:$0xff]  }
 0x57c   : > { %v5702_v22 = vadd.f32 %v5694_v46, %v5673_v4  ;;  %v5617_v5 = vadd.f32 %v5609_v28, %v5588_v0  ;;  %v5668_v15 = vmul.f32 %v12888_v57, %v5655_v6  ;;  %v5696_v1 = vmul.f32 %v12911_v47, %v5683_v11  ;;  %v5864_v21 = vld [vmem:[%s13481_s2] sm:$0x3] }
 0x57d   : > { %v5732_v32 = vpack.c.bf16 %v5726_v52, %v5725_v37  ;;  %v5703_v63 = vadd.f32 %v5695_v49, %v5674_v20  ;;  %v5646_v39 = vadd.f32 %v12973_v34, %v5616_v55  ;;  %v5697_v19 = vmul.f32 %v12911_v47, %v5684_v25 }
 0x57e   : > { %v5715_v40 = vmul.f32 %v12903_v59, %v5702_v22  ;;  %v5647_v30 = vadd.f32 %v12973_v34, %v5617_v5  ;;  %v5868_v48 = vrot.slane %v5864_v21, %v12023_v14  ;;  %v5880_v46 = vrot.slane %v5864_v21, %v12028_v16 }
 0x57f   : > { %10132 = vmatmul.mubr.bf16.vlgmr.msra.gmra.mrb[16].mxu1 %v5732_v32  ;;  %v5716_v10 = vmul.f32 %v12903_v59, %v5703_v63  ;;  %v5675_v38 = vadd.f32 %v12978_v42, %v5646_v39  ;;  %v10892_v42 = vld [vmem:[#allocation5 + $0x18] ss:$12 sps:$4 sm:$0xff]  }
 0x580   : > { %v5676_v56 = vadd.f32 %v5668_v15, %v5647_v30  ;;  %v5727_v57 = vadd.f32 %v12961_v18, %v5715_v40  ;;  %10156 = vmatmul.mubr.bf16.vlgmr.msra.gmra.mrb[16].mxu0 %v10892_v42 }
 0x581   : > { %v5728_v43 = vadd.f32 %v12961_v18, %v5716_v10  ;;  %v5704_v2 = vadd.f32 %v5696_v1, %v5675_v38  ;;  %10164 = vmatpush3.bf16.msra.mxu0 %v12824_v31  ;;  %v10896_v31 = vld [vmem:[%s13424_s13 + $0x18] sm:$0xff]   ;;  %10159 = vmatprep.mubr.bf16.mxu0 %v10902_v35 }
 0x582   : > { %v5705_v29 = vadd.f32 %v5697_v19, %v5676_v56  ;;  %10165 = vmatprep.subr.bf16.mxu0 %v10893_v36 }
 0x583   : > { %v5733_v27 = vpack.c.bf16 %v5728_v43, %v5727_v57  ;;  %v5717_v44 = vmul.f32 %v12903_v59, %v5704_v2 }
 0x584   : > { %v5718_v33 = vmul.f32 %v12903_v59, %v5705_v29  ;;  %v10895_v59 = vld [vmem:[%s13426_s15] sm:$0xff]  }
 0x585   : > { %10135 = vmatprep.mubr.bf16.mxu1 %v5733_v27  ;;  %v5729_v47 = vadd.f32 %v12961_v18, %v5717_v44  ;;  %10166 = vmatpush3.bf16.msra.mxu0 %v10893_v36 }
 0x586   : > { %v5730_v34 = vadd.f32 %v12961_v18, %v5718_v33  ;;  %10167 = vmatprep.subr.bf16.mxu0 %v10894_v9  ;;  %10356 = vmatpush3.bf16.msra.mxu1 %v10895_v59  ;;  %v10897_v18 = vld [vmem:[%s13426_s15 + $0x8] sm:$0xff]  }
 0x587   : > { %10357 = vmatprep.subr.bf16.mxu1 %v12758_v61 }
 0x588   : > { %v5734_v23 = vpack.c.bf16 %v5730_v34, %v5729_v47 }
 0x589   : > { %10168 = vmatpush3.bf16.msra.mxu0 %v10894_v9 }
 0x58a   : > { %10136 = vmatmul.mubr.bf16.gmra.mrb[20].mxu1 %v5734_v23  ;;  %10169 = vmatprep.subr.bf16.mxu0 %v10896_v31 }
 0x58b   : > { %10358 = vmatpush3.bf16.msra.mxu1 %v10897_v18  ;;  %10371 = vmatprep.mubr.msk.bf16.mxu1 %vm11194_vm12, %v12758_v61 }
 0x58c   : > { %10359 = vmatprep.subr.bf16.mxu1 %v12758_v61 }
 0x58d   : > { %10170 = vmatpush3.bf16.msra.mxu0 %v10896_v31 }
 0x58e   : > { %10171 = vmatprep.subr.bf16.mxu0 %v10898_v51 }
 0x58f   : > { %10360 = vmatpush3.bf16.msra.mxu1 %v10899_v62 }
 0x590   : > { %10361 = vmatprep.subr.bf16.mxu1 %v12758_v61 }
 0x591   : > { %10172 = vmatpush3.bf16.msra.mxu0 %v10898_v51 }
 0x592   : > { %10173 = vmatprep.subr.bf16.mxu0 %v10900_v58 }
 0x593   : > { %10362 = vmatpush3.bf16.msra.mxu1 %v10901_v13 }
 0x594   : > { %10363 = vmatprep.subr.bf16.mxu1 %v12758_v61 }
 0x595   : > { %10174 = vmatpush3.bf16.msra.mxu0 %v10900_v58 }
 0x596   : > { %10175 = vmatprep.subr.bf16.mxu0 %v10903_v26 }
 0x597   : > { %10364 = vmatpush3.bf16.msra.mxu1 %v10905_v17 }
 0x598   : > { %10365 = vmatprep.subr.bf16.mxu1 %v12758_v61 }
 0x599   : > { %10176 = vmatpush3.bf16.msra.mxu0 %v10903_v26 }
 0x59a   : > { %10177 = vmatprep.subr.bf16.mxu0 %v10906_v8 }
 0x59b   : > { %10366 = vmatpush3.bf16.msra.mxu1 %v10907_v12 }
 0x59c   : > { %10367 = vmatprep.subr.bf16.mxu1 %v12758_v61 }
 0x59d   : > { %10178 = vmatpush3.bf16.msra.mxu0 %v10906_v8 }
 0x59e   : > { %10187 = vmatprep.subr.bf16.mxu0 %v13082_v41 }
 0x59f   : > { %10368 = vmatpush3.bf16.msra.mxu1 %v10909_v45 }
 0x5a0   : > { %10369 = vmatprep.subr.bf16.mxu1 %v12758_v61 }
 0x5a3   : > { %10370 = vmatpush3.bf16.msra.mxu1 %v10911_v60 }
 0x5a4   : > { %10375 = vmatprep.subr.bf16.mxu1 %v12758_v61 }
 0x652   : > { %v10133_v3 = vpop.f32.mrb[16].mxu1 }
 0x653   : > { %v5871_v24 = vmul.f32 %v10133_v3, %v5868_v48  ;;  %v5833_v53 = vpop.f32.mrb[17].mxu1 }
 0x654   : > { %v5869_v7 = vmul.f32 %v5868_v48, %v5833_v53  ;;  %v10134_v54 = vpop.f32.mrb[18].mxu1 }
 0x655   : > { %v5883_v50 = vadd.f32 %v5880_v46, %v5871_v24  ;;  %v5872_v6 = vmul.f32 %v10134_v54, %v5868_v48  ;;  %v5836_v4 = vpop.f32.mrb[19].mxu1 }
 0x656   : > { %v5881_v49 = vadd.f32 %v5880_v46, %v5869_v7  ;;  %v5870_v0 = vmul.f32 %v5868_v48, %v5836_v4 }
 0x657   : > { %v13099_v28 = vmax.f32 %v5883_v50, 0.0  ;;  %v5884_v61 = vadd.f32 %v5880_v46, %v5872_v6  ;;  %v6260_v50 = vld [vmem:[#allocation5] sm:$0x8] }
 0x658   : > { %v13101_v11 = vmax.f32 %v5881_v49, 0.0  ;;  %v5882_v37 = vadd.f32 %v5880_v46, %v5870_v0  ;;  %v6261_v49 = vld [vmem:[#allocation5 + $0x4] sm:$0x7]  ;;  %v6262_v0 = vld [vmem:[#allocation5 + $0xc] sm:$0x8] }
 0x659   : > { %v9229_v52 = vpack.c.bf16 %v13099_v28, %v13099_v28  ;;  %v13105_v20 = vmax.f32 %v5884_v61, 0.0  ;;  %v6263_v61 = vld [vmem:[#allocation5 + $0x10] sm:$0x7] }
 0x65a   : > { %v9227_v55 = vpack.c.bf16 %v13101_v11, %v13101_v11  ;;  %v5890_v25 = vmax.f32 %v5882_v37, 0.0  ;;  %v10910_v37 = vld [vmem:[%s13425_s14 + $0x48] sm:$0xff]  }
 0x65b   : > { %v5925_v22 = vrot.slane %v9229_v52, 5  ;;  %v5898_v5 = vpack.c.bf16 %v13105_v20, %v13099_v28  ;;  %v9230_v15 = vpack.c.bf16 %v13105_v20, %v13105_v20  ;;  %v8955_v52 = vrot.slane %v6260_v50, 11 }
 0x65c   : > { %v5921_v32 = vrot.slane %v9227_v55, 5  ;;  %v9228_v63 = vpack.c.bf16 %v5890_v25, %v5890_v25  ;;  %v7729_v39 = vadd.f32 %v5890_v25, %v13101_v11  ;;  %v5897_v1 = vpack.c.bf16 %v5890_v25, %v13101_v11 }
 0x65d   : > { %v5926_v40 = vrot.slane %v5925_v22, 4  ;;  %5958 = vst [vmem:[#allocation5 + $0x60] sm:$0x8] %v5925_v22  ;;  %v5927_v30 = vrot.slane %v9230_v15, 5  ;;  %v10137_v19 = vpop.f32.mrb[20].mxu1  ;;  %v6296_v55 = vrot.slane %v6261_v49, 7 }
 0x65e   : > { %v5922_v10 = vrot.slane %v5921_v32, 4  ;;  %5954 = vst [vmem:[#allocation5 + $0x48] sm:$0x8] %v5921_v32  ;;  %v5923_v38 = vrot.slane %v9228_v63, 5  ;;  %v7730_v56 = vadd.f32 %v7729_v39, %v13099_v28  ;;  %v5875_v57 = vmul.f32 %v10137_v19, %v5868_v48  ;;  %v5849_v43 = vpop.f32.mrb[21].mxu1  ;;  %v10912_v39 = vld [vmem:[%s13425_s14 + $0x50] sm:$0xff]  }
 0x65f   : > { %5959 = vst [vmem:[#allocation5 + $0x64] sm:$0x7] %v5926_v40  ;;  %v5928_v2 = vrot.slane %v5927_v30, 4  ;;  %5960 = vst [vmem:[#allocation5 + $0x6c] sm:$0x8] %v5927_v30  ;;  %v5873_v29 = vmul.f32 %v5868_v48, %v5849_v43  ;;  %v10138_v27 = vpop.f32.mrb[22].mxu1  ;;  %v6297_v40 = vsel %vm13130_vm14, %v8955_v52, %v6296_v55 }
 0x660   : > { %5955 = vst [vmem:[#allocation5 + $0x4c] sm:$0x7] %v5922_v10  ;;  %v5924_v44 = vrot.slane %v5923_v38, 4  ;;  %5956 = vst [vmem:[#allocation5 + $0x54] sm:$0x8] %v5923_v38  ;;  %v5887_v33 = vadd.f32 %v5880_v46, %v5875_v57  ;;  %v7731_v47 = vadd.f32 %v7730_v56, %v13105_v20  ;;  %v5876_v34 = vmul.f32 %v10138_v27, %v5868_v48  ;;  %v5852_v23 = vpop.f32.mrb[23].mxu1 }
 0x661   : > { %5961 = vst [vmem:[#allocation5 + $0x70] sm:$0x7] %v5928_v2  ;;  %v5885_v42 = vadd.f32 %v5880_v46, %v5873_v29  ;;  %v5874_v36 = vmul.f32 %v5868_v48, %v5852_v23  ;;  %v8956_v22 = vrot.slane %v6262_v0, 11  ;;  %v6300_v15 = vrot.slane %v6263_v61, 7  ;;  %v10914_v38 = vld [vmem:[%s13425_s14 + $0x60] sm:$0xff]   ;;  %v13148_v56 = vld [vmem:[#allocation3] sm:$0xff] }
 0x662   : > { %5957 = vst [vmem:[#allocation5 + $0x58] sm:$0x7] %v5924_v44  ;;  %v13117_v9 = vmax.f32 %v5887_v33, 0.0  ;;  %v5888_v59 = vadd.f32 %v5880_v46, %v5876_v34  ;;  %v10915_v57 = vld [vmem:[%s13425_s14 + $0x68] sm:$0xff]   ;;  %v10916_v43 = vld [vmem:[%s13425_s14 + $0x70] sm:$0xff]   ;;  %v10971_v63 = vld [vmem:[%s13425_s14 + $0x1d8] sm:$0xff]  }
 0x663   : > { %v5893_v31 = vmax.f32 %v5885_v42, 0.0  ;;  %v5886_v18 = vadd.f32 %v5880_v46, %v5874_v36  ;;  %v6301_v28 = vsel %vm13130_vm14, %v8956_v22, %v6300_v15  ;;  %v6264_v2 = vld [vmem:[#allocation5 + $0x18] sm:$0x8]  ;;  %v6265_v29 = vld [vmem:[#allocation5 + $0x1c] sm:$0x7]  ;;  %v10920_v52 = vld [vmem:[%s13425_s14 + $0x90] sm:$0xff]  }
 0x664   : > { %v9233_v51 = vpack.c.bf16 %v13117_v9, %v13117_v9  ;;  %v5896_v62 = vmax.f32 %v5888_v59, 0.0  ;;  %v6266_v27 = vld [vmem:[#allocation5 + $0x24] sm:$0x8]  ;;  %v6267_v44 = vld [vmem:[#allocation5 + $0x28] sm:$0x7]  ;;  %v8957_v42 = vrot.slane %v6264_v2, 11 }
 0x665   : > { %v9231_v35 = vpack.c.bf16 %v5893_v31, %v5893_v31  ;;  %v7732_v58 = vadd.f32 %v7731_v47, %v5893_v31  ;;  %v5894_v13 = vmax.f32 %v5886_v18, 0.0  ;;  %v6268_v33 = vld [vmem:[#allocation5 + $0x30] sm:$0x8]  ;;  %v6269_v47 = vld [vmem:[#allocation5 + $0x34] sm:$0x7]  ;;  %v6304_v36 = vrot.slane %v6265_v29, 7 }
 0x666   : > { %v5933_v26 = vrot.slane %v9233_v51, 5  ;;  %v9234_v17 = vpack.c.bf16 %v5896_v62, %v5896_v62  ;;  %v5900_v8 = vpack.c.bf16 %v5896_v62, %v13117_v9  ;;  %v6270_v34 = vld [vmem:[#allocation5 + $0x3c] sm:$0x8]  ;;  %v6271_v23 = vld [vmem:[#allocation5 + $0x40] sm:$0x7]  ;;  %v6308_v59 = vrot.slane %v6267_v44, 7 }
 0x667   : > { %v5929_v12 = vrot.slane %v9231_v35, 5  ;;  %v9232_v45 = vpack.c.bf16 %v5894_v13, %v5894_v13  ;;  %v7733_v60 = vadd.f32 %v7732_v58, %v5894_v13  ;;  %v10904_v21 = vld [vmem:[#allocation5 + $0x48] ss:$12 sps:$4 sm:$0xff]   ;;  %v5899_v48 = vpack.c.bf16 %v5894_v13, %v5893_v31  ;;  %v6491_v2 = vld [vmem:[#allocation5 + $0x44] sm:$0x3] }
 0x668   : > { %v5934_v3 = vrot.slane %v5933_v26, 4  ;;  %5966 = vst [vmem:[#allocation5 + $0x90] sm:$0x8] %v5933_v26  ;;  %v5935_v24 = vrot.slane %v9234_v17, 5  ;;  %10160 = vmatmul.mubr.bf16.gmra.mrb[20].mxu0 %v10904_v21  ;;  %v8959_v31 = vrot.slane %v6268_v33, 11  ;;  %v6312_v18 = vrot.slane %v6269_v47, 7 }
 0x669   : > { %v5930_v46 = vrot.slane %v5929_v12, 4  ;;  %5962 = vst [vmem:[#allocation5 + $0x78] sm:$0x8] %v5929_v12  ;;  %v5931_v53 = vrot.slane %v9232_v45, 5  ;;  %v7734_v7 = vadd.f32 %v7733_v60, %v13117_v9  ;;  %10179 = vmatprep.mubr.bf16.mxu0 %v5897_v1  ;;  %v8958_v9 = vrot.slane %v6266_v27, 11  ;;  %v10917_v35 = vld [vmem:[%s13425_s14 + $0x78] sm:$0xff]  }
 0x66a   : > { %5967 = vst [vmem:[#allocation5 + $0x94] sm:$0x7] %v5934_v3  ;;  %v5936_v54 = vrot.slane %v5935_v24, 4  ;;  %5968 = vst [vmem:[#allocation5 + $0x9c] sm:$0x8] %v5935_v24  ;;  %v8960_v51 = vrot.slane %v6270_v34, 11  ;;  %v6305_v58 = vsel %vm13130_vm14, %v8957_v42, %v6304_v36  ;;  %v6313_v26 = vsel %vm13130_vm14, %v8959_v31, %v6312_v18 }
 0x66b   : > { %5963 = vst [vmem:[#allocation5 + $0x7c] sm:$0x7] %v5930_v46  ;;  %v5932_v6 = vrot.slane %v5931_v53, 4  ;;  %5964 = vst [vmem:[#allocation5 + $0x84] sm:$0x8] %v5931_v53  ;;  %v7735_v4 = vadd.f32 %v7734_v7, %v5896_v62  ;;  %v6316_v62 = vrot.slane %v6271_v23, 7  ;;  %v6309_v13 = vsel %vm13130_vm14, %v8958_v9, %v6308_v59 }
 0x66c   : > { %5969 = vst [vmem:[#allocation5 + $0xa0] sm:$0x7] %v5936_v54  ;;  %v6480_v12 = vld [vmem:[#allocation5 + $0x4] sm:$0xc]  ;;  %v6481_v45 = vld [vmem:[#allocation5 + $0x8] sm:$0x3] }
 0x66d   : > { %5965 = vst [vmem:[#allocation5 + $0x88] sm:$0x7] %v5932_v6  ;;  %v7736_v11 = vrot.slane %v7735_v4, 4  ;;  %v6317_v17 = vsel %vm13130_vm14, %v8960_v51, %v6316_v62  ;;  %v6482_v60 = vld [vmem:[#allocation5 + $0x10] sm:$0xc]  ;;  %v10919_v46 = vld [vmem:[%s13425_s14 + $0x88] sm:$0xff]  }
 0x66e   : > { %v6483_v21 = vld [vmem:[#allocation5 + $0x14] sm:$0x3]  ;;  %v8981_v3 = vcombine.low %v6313_v26, %v6317_v17  ;;  %v6275_v24 = vld [vmem:[#allocation5 + $0x58] sm:$0x7]  ;;  %v8991_v53 = vrot.slane %v6480_v12, 10  ;;  %v6517_v7 = vrot.slane %v6481_v45, 6 }
 0x66f   : > { %v7737_v25 = vadd.f32 %v7736_v11, %v7735_v4  ;;  %v6273_v54 = vld [vmem:[#allocation5 + $0x4c] sm:$0x7]  ;;  %v6274_v50 = vld [vmem:[#allocation5 + $0x54] sm:$0x8]  ;;  %v8992_v6 = vrot.slane %v6482_v60, 10  ;;  %v6521_v4 = vrot.slane %v6483_v21, 6 }
 0x670   : > { %10180 = vmatmul.mubr.bf16.vlgmr.msra.gmra.mrb[16].mxu0 %v5898_v5  ;;  %v8979_v5 = vcombine.low %v6297_v40, %v6301_v28  ;;  %v6324_v49 = vrot.slane %v6275_v24, 7  ;;  %v6272_v0 = vld [vmem:[#allocation5 + $0x48] sm:$0x8]  ;;  %v6320_v61 = vrot.slane %v6273_v54, 7  ;;  %v8962_v11 = vrot.slane %v6274_v50, 11  ;;  %v10922_v28 = vld [vmem:[%s13425_s14 + $0xa0] sm:$0xff]  }
 0x671   : > { %v7738_v32 = vrot.slane %v7737_v25, 2  ;;  %10188 = vmatpush3.bf16.msra.mxu0 %v13082_v41  ;;  %10183 = vmatprep.mubr.bf16.mxu0 %v5899_v48  ;;  %v10913_v41 = vld [vmem:[%s13425_s14 + $0x58] sm:$0xff]   ;;  %v8980_v48 = vcombine.low %v6305_v58, %v6309_v13  ;;  %v6518_v55 = vsel %vm13177_vm1, %v8991_v53, %v6517_v7  ;;  %v8961_v22 = vrot.slane %v6272_v0, 11  ;;  %v10926_v31 = vld [vmem:[%s13425_s14 + $0xc0] sm:$0xff]   ;;  %v6495_v58 = vld [vmem:[#allocation5 + $0x5c] sm:$0x3] }
 0x672   : > { %10189 = vmatprep.subr.bf16.mxu0 %v10910_v37  ;;  %v6325_v15 = vsel %vm13130_vm14, %v8962_v11, %v6324_v49  ;;  %v10921_v40 = vld [vmem:[%s13425_s14 + $0x98] sm:$0xff]   ;;  %v6537_v36 = vrot.slane %v6491_v2, 6  ;;  %v10927_v26 = vld [vmem:[%s13425_s14 + $0xc8] sm:$0xff]   ;;  %v6545_v45 = vrot.slane %v6495_v58, 6 }
 0x673   : > { %v7739_v1 = vadd.f32 %v7738_v32, %v7737_v25  ;;  %v6522_v25 = vsel %vm13177_vm1, %v8992_v6, %v6521_v4  ;;  %v6321_v32 = vsel %vm13130_vm14, %v8961_v22, %v6320_v61  ;;  %v10925_v47 = vld [vmem:[%s13425_s14 + $0xb8] sm:$0xff]   ;;  %v10970_v50 = vld [vmem:[#allocation13 + $0x8] sm:$0xff]   ;;  %v10931_v6 = vld [vmem:[%s13425_s14 + $0xe0] sm:$0xff]  }
 0x674   : > { %v6492_v17 = vld [vmem:[#allocation5 + $0x4c] sm:$0xc]  ;;  %v10929_v54 = vld [vmem:[#allocation5 + $0x48] ss:$12 sps:$4 sm:$0xff]   ;;  %v10932_v49 = vld [vmem:[%s13425_s14 + $0xe8] sm:$0xff]  }
 0x675   : > { %v7740_v20 = vrot.slane %v7739_v1, 1  ;;  %10190 = vmatpush3.bf16.msra.mxu0 %v10910_v37  ;;  %v8997_v60 = vrot.slane %v6492_v17, 10  ;;  %v10930_v7 = vld [vmem:[%s13425_s14 + $0xd8] sm:$0xff]   ;;  %v10933_v61 = vld [vmem:[%s13425_s14 + $0xf0] sm:$0xff]   ;;  %v10976_v11 = vld [vmem:[#allocation13 + $0x20] sm:$0xff]  }
 0x676   : > { %10191 = vmatprep.subr.bf16.mxu0 %v10912_v39  ;;  %v10972_v4 = vld [vmem:[#allocation13 + $0x10] sm:$0xff]   ;;  %v10974_v0 = vld [vmem:[#allocation13 + $0x18] sm:$0xff]   ;;  %v6873_v22 = vld [vmem:[#allocation5 + $0x58] sm:$0xc] }
 0x677   : > { %v7741_v30 = vadd.f32 %v7740_v20, %v7739_v1  ;;  %v8982_v1 = vcombine.low %v6321_v32, %v6325_v15  ;;  %v10923_v20 = vld [vmem:[%s13425_s14 + $0xa8] sm:$0xff]   ;;  %v10935_v32 = vld [vmem:[#allocation5 + $0x60] ss:$12 sps:$4 sm:$0xff]  }
 0x678   : > { %10184 = vmatmul.mubr.bf16.gmra.mrb[20].mxu0 %v5900_v8  ;;  %v10918_v8 = vld [vmem:[%s13425_s14 + $0x80] sm:$0xff]   ;;  %v6874_v15 = vld [vmem:[#allocation5 + $0x5c] sm:$0x3]  ;;  %v10980_v2 = vld [vmem:[#allocation13 + $0x30] sm:$0xff]  }
 0x679   : > { %v7743_v19 = vmul.f32 0.015625, %v7741_v30  ;;  %10192 = vmatpush3.bf16.msra.mxu0 %v10912_v39  ;;  %10203 = vmatprep.mubr.bf16.mxu0 %v8979_v5  ;;  %v9015_v39 = vcombine.low %v6518_v55, %v6522_v25  ;;  %v10924_v5 = vld [vmem:[%s13425_s14 + $0xb0] sm:$0xff]   ;;  %v6484_v30 = vld [vmem:[#allocation5 + $0x1c] sm:$0xc]  ;;  %v10936_v25 = vld [vmem:[%s13425_s14 + $0x100] sm:$0xff]  }
 0x67a   : > { %10193 = vmatprep.subr.bf16.mxu0 %v10913_v41  ;;  %v8993_v29 = vrot.slane %v6484_v30, 10  ;;  %v10978_v55 = vld [vmem:[#allocation13 + $0x28] sm:$0xff]  }
 0x67b   : > { %v7744_v10 = vpack.c.bf16 %v7743_v19, %v7743_v19  ;;  %v6486_v19 = vld [vmem:[#allocation5 + $0x28] sm:$0xc]  ;;  %v10940_v30 = vld [vmem:[%s13425_s14 + $0x110] sm:$0xff]  }
 0x67c   : > { %v8994_v44 = vrot.slane %v6486_v19, 10  ;;  %v10987_v37 = vld [vmem:[#allocation11 + $0x28] sm:$0xff]  }
 0x67d   : > { %10372 = vmatmul.mubr.bf16.vlgmr.msra.gmra.mrb[24].mxu1 %v7744_v10  ;;  %10194 = vmatpush3.bf16.msra.mxu0 %v10913_v41  ;;  %v6485_v41 = vld [vmem:[#allocation5 + $0x20] sm:$0x3]  ;;  %v6487_v10 = vld [vmem:[#allocation5 + $0x2c] sm:$0x3] }
 0x67e   : > { %10391 = vmatprep.mubr.msk.bf16.mxu1 %vm11194_vm12, %v13148_v56  ;;  %10195 = vmatprep.subr.bf16.mxu0 %v10914_v38  ;;  %v6525_v27 = vrot.slane %v6485_v41, 6  ;;  %v6529_v33 = vrot.slane %v6487_v10, 6 }
 0x680   : > { %v6526_v9 = vsel %vm13177_vm1, %v8993_v29, %v6525_v27  ;;  %v6530_v59 = vsel %vm13177_vm1, %v8994_v44, %v6529_v33  ;;  %v10981_v27 = vld [vmem:[#allocation13 + $0x38] sm:$0xff]   ;;  %v13265_v44 = vld [vmem:[#allocation11] sm:$0xff]  }
 0x681   : > { %10196 = vmatpush3.bf16.msra.mxu0 %v10914_v38  ;;  %v6488_v38 = vld [vmem:[#allocation5 + $0x34] sm:$0xc]  ;;  %v9016_v62 = vcombine.low %v6526_v9, %v6530_v59  ;;  %v10945_v9 = vld [vmem:[%s13425_s14 + $0x138] sm:$0xff]   ;;  %v6875_v59 = vld [vmem:[#allocation5 + $0x64] sm:$0xc] }
 0x682   : > { %10197 = vmatprep.subr.bf16.mxu0 %v10915_v57  ;;  %v8995_v34 = vrot.slane %v6488_v38, 10  ;;  %v10939_v38 = vld [vmem:[#allocation5 + $0x90] ss:$12 sps:$4 sm:$0xff]  }
 0x683   : > { %v10942_v33 = vld [vmem:[%s13425_s14 + $0x120] sm:$0xff]  }
 0x685   : > { %10198 = vmatpush3.bf16.msra.mxu0 %v10915_v57  ;;  %v6489_v57 = vld [vmem:[#allocation5 + $0x38] sm:$0x3] }
 0x686   : > { %10199 = vmatprep.subr.bf16.mxu0 %v10916_v43  ;;  %v6533_v23 = vrot.slane %v6489_v57, 6 }
 0x688   : > { %v6534_v18 = vsel %vm13177_vm1, %v8995_v34, %v6533_v23  ;;  %v10944_v34 = vld [vmem:[%s13425_s14 + $0x130] sm:$0xff]   ;;  %v6877_v23 = vld [vmem:[#allocation5 + $0x70] sm:$0xc] }
 0x689   : > { %10200 = vmatpush3.bf16.msra.mxu0 %v10916_v43  ;;  %v6490_v43 = vld [vmem:[#allocation5 + $0x40] sm:$0xc] }
 0x68a   : > { %10201 = vmatprep.subr.bf16.mxu0 %v10917_v35  ;;  %v8996_v42 = vrot.slane %v6490_v43, 10  ;;  %v10941_v43 = vld [vmem:[%s13425_s14 + $0x118] sm:$0xff]  }
 0x68c   : > { %v6538_v51 = vsel %vm13177_vm1, %v8996_v42, %v6537_v36  ;;  %v6878_v42 = vld [vmem:[#allocation5 + $0x74] sm:$0x3]  ;;  %v6881_v36 = vld [vmem:[#allocation5 + $0x88] sm:$0xc] }
 0x68d   : > { %10202 = vmatpush3.bf16.msra.mxu0 %v10917_v35  ;;  %v6494_v35 = vld [vmem:[#allocation5 + $0x58] sm:$0xc]  ;;  %v9017_v13 = vcombine.low %v6534_v18, %v6538_v51  ;;  %v9058_v18 = vrot.slane %v6877_v23, 10  ;;  %v6917_v51 = vrot.slane %v6878_v42, 6  ;;  %v9060_v58 = vrot.slane %v6881_v36, 10  ;;  %v10961_v23 = vld [vmem:[%s13425_s14 + $0x198] sm:$0xff]  }
 0x68e   : > { %10211 = vmatprep.subr.bf16.mxu0 %v10918_v8  ;;  %v8998_v12 = vrot.slane %v6494_v35, 10  ;;  %v6880_v35 = vld [vmem:[#allocation5 + $0x80] sm:$0x3]  ;;  %v10962_v36 = vld [vmem:[%s13425_s14 + $0x1a0] sm:$0xff]  }
 0x690   : > { %10204 = vmatmul.mubr.bf16.vlgmr.msra.gmra.mrb[16].mxu0 %v8980_v48  ;;  %v10928_v48 = vld [vmem:[%s13425_s14 + $0xd0] sm:$0xff]  }
 0x691   : > { %10212 = vmatpush3.bf16.msra.mxu0 %v10918_v8  ;;  %10207 = vmatprep.mubr.bf16.mxu0 %v8981_v3  ;;  %v6493_v8 = vld [vmem:[#allocation5 + $0x50] sm:$0x3]  ;;  %v6546_v3 = vsel %vm13177_vm1, %v8998_v12, %v6545_v45  ;;  %v6921_v45 = vrot.slane %v6880_v35, 6  ;;  %v7269_v35 = vld [vmem:[#allocation5 + $0xc4] sm:$0x7] }
 0x692   : > { %10213 = vmatprep.subr.bf16.mxu0 %v10919_v46  ;;  %v6541_v21 = vrot.slane %v6493_v8, 6  ;;  %v10946_v8 = vld [vmem:[%s13425_s14 + $0x140] sm:$0xff]  }
 0x694   : > { %v6542_v24 = vsel %vm13177_vm1, %v8997_v60, %v6541_v21  ;;  %v6918_v60 = vsel %vm13177_vm1, %v9058_v18, %v6917_v51  ;;  %v7266_v18 = vld [vmem:[#allocation5 + $0xb4] sm:$0x8]  ;;  %v7267_v51 = vld [vmem:[#allocation5 + $0xb8] sm:$0x7] }
 0x695   : > { %10214 = vmatpush3.bf16.msra.mxu0 %v10919_v46  ;;  %v10968_v46 = vld [vmem:[#allocation13] sm:$0xff]   ;;  %v9018_v53 = vcombine.low %v6542_v24, %v6546_v3  ;;  %v6886_v3 = vld [vmem:[#allocation5 + $0xa4] sm:$0x3] }
 0x696   : > { %10215 = vmatprep.subr.bf16.mxu0 %v10920_v52  ;;  %10376 = vmatpush3.bf16.msra.mxu1 %v10968_v46 }
 0x697   : > { %10377 = vmatprep.subr.bf16.mxu1 %v13148_v56 }
 0x698   : > { %10208 = vmatmul.mubr.bf16.gmra.mrb[20].mxu0 %v8982_v1  ;;  %v10937_v1 = vld [vmem:[#allocation5 + $0x78] ss:$12 sps:$4 sm:$0xff]  }
 0x699   : > { %10216 = vmatpush3.bf16.msra.mxu0 %v10920_v52  ;;  %10227 = vmatprep.mubr.bf16.mxu0 %v9015_v39  ;;  %v10934_v52 = vld [vmem:[%s13425_s14 + $0xf8] sm:$0xff]   ;;  %v10938_v39 = vld [vmem:[%s13425_s14 + $0x108] sm:$0xff]  }
 0x69a   : > { %10217 = vmatprep.subr.bf16.mxu0 %v10921_v40  ;;  %10378 = vmatpush3.bf16.msra.mxu1 %v10970_v50  ;;  %v6884_v50 = vld [vmem:[#allocation5 + $0x98] sm:$0x3] }
 0x69b   : > { %10379 = vmatprep.subr.bf16.mxu1 %v13148_v56 }
 0x69d   : > { %10218 = vmatpush3.bf16.msra.mxu0 %v10921_v40  ;;  %v6871_v40 = vld [vmem:[#allocation5 + $0x4c] sm:$0xc] }
 0x69e   : > { %10219 = vmatprep.subr.bf16.mxu0 %v10922_v28  ;;  %10380 = vmatpush3.bf16.msra.mxu1 %v10972_v4  ;;  %v9055_v41 = vrot.slane %v6871_v40, 10  ;;  %v10954_v40 = vld [vmem:[%s13425_s14 + $0x178] sm:$0xff]  }
 0x69f   : > { %10381 = vmatprep.subr.bf16.mxu1 %v13148_v56 }
 0x6a1   : > { %10220 = vmatpush3.bf16.msra.mxu0 %v10922_v28  ;;  %v6872_v28 = vld [vmem:[#allocation5 + $0x50] sm:$0x3] }
 0x6a2   : > { %10221 = vmatprep.subr.bf16.mxu0 %v10923_v20  ;;  %10382 = vmatpush3.bf16.msra.mxu1 %v10974_v0  ;;  %v6905_v19 = vrot.slane %v6872_v28, 6  ;;  %v10956_v28 = vld [vmem:[%s13425_s14 + $0x180] sm:$0xff]  }
 0x6a3   : > { %10383 = vmatprep.subr.bf16.mxu1 %v13148_v56 }
 0x6a4   : > { %v6906_v57 = vsel %vm13177_vm1, %v9055_v41, %v6905_v19  ;;  %v10957_v41 = vld [vmem:[%s13425_s14 + $0x188] sm:$0xff]   ;;  %v7261_v19 = vld [vmem:[#allocation5 + $0x94] sm:$0x7] }
 0x6a5   : > { %10222 = vmatpush3.bf16.msra.mxu0 %v10923_v20  ;;  %v9056_v20 = vrot.slane %v6873_v22, 10  ;;  %v10950_v22 = vld [vmem:[%s13425_s14 + $0x158] sm:$0xff]  }
 0x6a6   : > { %10223 = vmatprep.subr.bf16.mxu0 %v10924_v5  ;;  %10384 = vmatpush3.bf16.msra.mxu1 %v10976_v11  ;;  %v10948_v11 = vld [vmem:[%s13425_s14 + $0x150] sm:$0xff]  }
 0x6a7   : > { %10385 = vmatprep.subr.bf16.mxu1 %v13148_v56 }
 0x6a9   : > { %10224 = vmatpush3.bf16.msra.mxu0 %v10924_v5  ;;  %v6909_v5 = vrot.slane %v6874_v15, 6  ;;  %v10949_v15 = vld [vmem:[#allocation5 + $0x90] ss:$12 sps:$4 sm:$0xff]  }
 0x6aa   : > { %10225 = vmatprep.subr.bf16.mxu0 %v10925_v47  ;;  %10386 = vmatpush3.bf16.msra.mxu1 %v10978_v55 }
 0x6ab   : > { %10387 = vmatprep.subr.bf16.mxu1 %v13148_v56  ;;  %v6910_v10 = vsel %vm13177_vm1, %v9056_v20, %v6909_v5  ;;  %v10955_v20 = vld [vmem:[#allocation5 + $0xa8] ss:$12 sps:$4 sm:$0xff]   ;;  %v10958_v5 = vld [vmem:[#allocation5 + $0xc0] ss:$12 sps:$4 sm:$0xff]  }
 0x6ac   : > { %v9079_v29 = vcombine.low %v6906_v57, %v6910_v10  ;;  %v7262_v10 = vld [vmem:[#allocation5 + $0x9c] sm:$0x8]  ;;  %v7260_v57 = vld [vmem:[#allocation5 + $0x90] sm:$0x8] }
 0x6ad   : > { %10226 = vmatpush3.bf16.msra.mxu0 %v10925_v47  ;;  %v10943_v47 = vld [vmem:[%s13425_s14 + $0x128] sm:$0xff]  }
 0x6ae   : > { %10235 = vmatprep.subr.bf16.mxu0 %v10926_v31  ;;  %10388 = vmatpush3.bf16.msra.mxu1 %v10980_v2  ;;  %v7294_v2 = vrot.slane %v7261_v19, 7 }
 0x6af   : > { %10389 = vmatprep.subr.bf16.mxu1 %v13148_v56  ;;  %v6882_v56 = vld [vmem:[#allocation5 + $0x8c] sm:$0x3] }
 0x6b0   : > { %10228 = vmatmul.mubr.bf16.vlgmr.msra.gmra.mrb[16].mxu0 %v9016_v62  ;;  %v6879_v62 = vld [vmem:[#allocation5 + $0x7c] sm:$0xc] }
 0x6b1   : > { %10236 = vmatpush3.bf16.msra.mxu0 %v10926_v31  ;;  %10231 = vmatprep.mubr.bf16.mxu0 %v9017_v13  ;;  %v6876_v31 = vld [vmem:[#allocation5 + $0x68] sm:$0x3]  ;;  %v6925_v13 = vrot.slane %v6882_v56, 6  ;;  %v9059_v12 = vrot.slane %v6879_v62, 10  ;;  %v10963_v56 = vld [vmem:[%s13425_s14 + $0x1a8] sm:$0xff]  }
 0x6b2   : > { %10237 = vmatprep.subr.bf16.mxu0 %v10927_v26  ;;  %10390 = vmatpush3.bf16.msra.mxu1 %v10981_v27  ;;  %v6913_v17 = vrot.slane %v6876_v31, 6  ;;  %v10959_v27 = vld [vmem:[#allocation5 + $0xd8] ss:$12 sps:$4 sm:$0xff]   ;;  %v7265_v31 = vld [vmem:[#allocation5 + $0xac] sm:$0x7] }
 0x6b3   : > { %10395 = vmatprep.subr.bf16.mxu1 %v13265_v44  ;;  %v6926_v21 = vsel %vm13177_vm1, %v9060_v58, %v6925_v13  ;;  %v7268_v62 = vld [vmem:[#allocation5 + $0xc0] sm:$0x8]  ;;  %v7270_v58 = vld [vmem:[#allocation5 + $0xcc] sm:$0x8]  ;;  %v7271_v13 = vld [vmem:[#allocation5 + $0xd0] sm:$0x7] }
 0x6b5   : > { %10238 = vmatpush3.bf16.msra.mxu0 %v10927_v26  ;;  %v9057_v26 = vrot.slane %v6875_v59, 10  ;;  %v7264_v59 = vld [vmem:[#allocation5 + $0xa8] sm:$0x8] }
 0x6b6   : > { %10239 = vmatprep.subr.bf16.mxu0 %v10928_v48 }
 0x6b7   : > { %v6914_v24 = vsel %vm13177_vm1, %v9057_v26, %v6913_v17  ;;  %v9121_v26 = vrot.slane %v7264_v59, 11  ;;  %v7302_v17 = vrot.slane %v7265_v31, 7 }
 0x6b8   : > { %10232 = vmatmul.mubr.bf16.gmra.mrb[20].mxu0 %v9018_v53  ;;  %v9080_v46 = vcombine.low %v6914_v24, %v6918_v60  ;;  %v6922_v53 = vsel %vm13177_vm1, %v9059_v12, %v6921_v45  ;;  %v7306_v12 = vrot.slane %v7267_v51, 7  ;;  %v10965_v45 = vld [vmem:[%s13425_s14 + $0x1b8] sm:$0xff]   ;;  %v9123_v60 = vrot.slane %v7268_v62, 11 }
 0x6b9   : > { %10240 = vmatpush3.bf16.msra.mxu0 %v10928_v48  ;;  %10251 = vmatprep.mubr.bf16.mxu0 %v10929_v54  ;;  %v6885_v48 = vld [vmem:[#allocation5 + $0xa0] sm:$0xc]  ;;  %v6883_v54 = vld [vmem:[#allocation5 + $0x94] sm:$0xc]  ;;  %v7303_v24 = vsel %vm13130_vm14, %v9121_v26, %v7302_v17  ;;  %v10979_v62 = vld [vmem:[%s13425_s14 + $0x1f8] sm:$0xff]  }
 0x6ba   : > { %10241 = vmatprep.subr.bf16.mxu0 %v10930_v7  ;;  %v9062_v4 = vrot.slane %v6885_v48, 10  ;;  %v9061_v0 = vrot.slane %v6883_v54, 10  ;;  %v9124_v48 = vrot.slane %v7270_v58, 11 }
 0x6bd   : > { %10242 = vmatpush3.bf16.msra.mxu0 %v10930_v7  ;;  %v10947_v7 = vld [vmem:[%s13425_s14 + $0x148] sm:$0xff]  }
 0x6be   : > { %10243 = vmatprep.subr.bf16.mxu0 %v10931_v6 }
 0x6c1   : > { %10244 = vmatpush3.bf16.msra.mxu0 %v10931_v6  ;;  %v9081_v6 = vcombine.low %v6922_v53, %v6926_v21  ;;  %v7310_v21 = vrot.slane %v7269_v35, 7  ;;  %v10966_v53 = vld [vmem:[%s13425_s14 + $0x1c0] sm:$0xff]  }
 0x6c2   : > { %10245 = vmatprep.subr.bf16.mxu0 %v10932_v49 }
 0x6c3   : > { %v7311_v54 = vsel %vm13130_vm14, %v9123_v60, %v7310_v21  ;;  %v7491_v21 = vld [vmem:[#allocation5 + $0xe0] sm:$0x3] }
 0x6c5   : > { %10246 = vmatpush3.bf16.msra.mxu0 %v10932_v49  ;;  %v6933_v49 = vrot.slane %v6886_v3, 6  ;;  %v7314_v3 = vrot.slane %v7271_v13, 7 }
 0x6c6   : > { %10247 = vmatprep.subr.bf16.mxu0 %v10933_v61 }
 0x6c9   : > { %10248 = vmatpush3.bf16.msra.mxu0 %v10933_v61  ;;  %v6929_v61 = vrot.slane %v6884_v50, 6  ;;  %v7315_v50 = vsel %vm13130_vm14, %v9124_v48, %v7314_v3  ;;  %v7492_v48 = vld [vmem:[#allocation5 + $0xe8] sm:$0xc]  ;;  %v7493_v3 = vld [vmem:[#allocation5 + $0xec] sm:$0x3] }
 0x6ca   : > { %10249 = vmatprep.subr.bf16.mxu0 %v10934_v52 }
 0x6cb   : > { %v6930_v55 = vsel %vm13177_vm1, %v9061_v0, %v6929_v61 }
 0x6cd   : > { %10250 = vmatpush3.bf16.msra.mxu0 %v10934_v52  ;;  %v6934_v52 = vsel %vm13177_vm1, %v9062_v4, %v6933_v49  ;;  %v7274_v4 = vld [vmem:[#allocation5 + $0xe4] sm:$0x8]  ;;  %v7275_v49 = vld [vmem:[#allocation5 + $0xe8] sm:$0x7] }
 0x6ce   : > { %10259 = vmatprep.subr.bf16.mxu0 %v10936_v25 }
 0x6d0   : > { %10252 = vmatmul.mubr.bf16.vlgmr.msra.gmra.mrb[16].mxu0 %v10935_v32  ;;  %v10951_v32 = vld [vmem:[%s13425_s14 + $0x160] sm:$0xff]  }
 0x6d1   : > { %10255 = vmatprep.mubr.bf16.mxu0 %v10937_v1  ;;  %10260 = vmatpush3.bf16.msra.mxu0 %v10936_v25  ;;  %v9082_v25 = vcombine.low %v6930_v55, %v6934_v52  ;;  %v10953_v1 = vld [vmem:[%s13425_s14 + $0x170] sm:$0xff]   ;;  %v9145_v52 = vcombine.low %v7311_v54, %v7315_v50  ;;  %v7536_v54 = vrot.slane %v7491_v21, 6  ;;  %v9162_v50 = vrot.slane %v7492_v48, 10 }
 0x6d2   : > { %10261 = vmatprep.subr.bf16.mxu0 %v10938_v39 }
 0x6d5   : > { %10262 = vmatpush3.bf16.msra.mxu0 %v10938_v39  ;;  %v10952_v39 = vld [vmem:[%s13425_s14 + $0x168] sm:$0xff]  }
 0x6d6   : > { %10263 = vmatprep.subr.bf16.mxu0 %v10940_v30 }
 0x6d8   : > { %10256 = vmatmul.mubr.bf16.gmra.mrb[20].mxu0 %v10939_v38 }
 0x6d9   : > { %10264 = vmatpush3.bf16.msra.mxu0 %v10940_v30  ;;  %10275 = vmatprep.mubr.bf16.mxu0 %v9079_v29  ;;  %v7263_v30 = vld [vmem:[#allocation5 + $0xa0] sm:$0x7]  ;;  %v9120_v29 = vrot.slane %v7262_v10, 11 }
 0x6da   : > { %10265 = vmatprep.subr.bf16.mxu0 %v10941_v43  ;;  %v7298_v38 = vrot.slane %v7263_v30, 7  ;;  %v10969_v30 = vld [vmem:[%s13425_s14 + $0x1d0] sm:$0xff]  }
 0x6dd   : > { %10266 = vmatpush3.bf16.msra.mxu0 %v10941_v43  ;;  %v10960_v43 = vld [vmem:[%s13425_s14 + $0x190] sm:$0xff]  }
 0x6de   : > { %10267 = vmatprep.subr.bf16.mxu0 %v10942_v33 }
 0x6e1   : > { %10268 = vmatpush3.bf16.msra.mxu0 %v10942_v33  ;;  %v9119_v33 = vrot.slane %v7260_v57, 11 }
 0x6e2   : > { %10269 = vmatprep.subr.bf16.mxu0 %v10943_v47 }
 0x6e5   : > { %10270 = vmatpush3.bf16.msra.mxu0 %v10943_v47  ;;  %v7299_v47 = vsel %vm13130_vm14, %v9120_v29, %v7298_v38  ;;  %v10975_v29 = vld [vmem:[%s13425_s14 + $0x1e8] sm:$0xff]  }
 0x6e6   : > { %10271 = vmatprep.subr.bf16.mxu0 %v10944_v34 }
 0x6e9   : > { %10272 = vmatpush3.bf16.msra.mxu0 %v10944_v34  ;;  %v7295_v34 = vsel %vm13130_vm14, %v9119_v33, %v7294_v2  ;;  %v10973_v2 = vld [vmem:[%s13425_s14 + $0x1e0] sm:$0xff]   ;;  %v7482_v33 = vld [vmem:[#allocation5 + $0xac] sm:$0xc] }
 0x6ea   : > { %10273 = vmatprep.subr.bf16.mxu0 %v10945_v9  ;;  %v9143_v42 = vcombine.low %v7295_v34, %v7299_v47  ;;  %v7483_v47 = vld [vmem:[#allocation5 + $0xb0] sm:$0x3]  ;;  %v7484_v34 = vld [vmem:[#allocation5 + $0xb8] sm:$0xc]  ;;  %v9157_v59 = vrot.slane %v7482_v33, 10 }
 0x6eb   : > { %v7520_v31 = vrot.slane %v7483_v47, 6 }
 0x6ed   : > { %10274 = vmatpush3.bf16.msra.mxu0 %v10945_v9  ;;  %v10964_v9 = vld [vmem:[%s13425_s14 + $0x1b0] sm:$0xff]   ;;  %v7521_v17 = vsel %vm13177_vm1, %v9157_v59, %v7520_v31 }
 0x6ee   : > { %10283 = vmatprep.subr.bf16.mxu0 %v10946_v8 }
 0x6f0   : > { %10276 = vmatmul.mubr.bf16.vlgmr.msra.gmra.mrb[16].mxu0 %v9080_v46 }
 0x6f1   : > { %10279 = vmatprep.mubr.bf16.mxu0 %v9081_v6  ;;  %10284 = vmatpush3.bf16.msra.mxu0 %v10946_v8  ;;  %v9122_v8 = vrot.slane %v7266_v18, 11  ;;  %v7273_v6 = vld [vmem:[#allocation5 + $0xdc] sm:$0x7]  ;;  %v9158_v18 = vrot.slane %v7484_v34, 10 }
 0x6f2   : > { %10285 = vmatprep.subr.bf16.mxu0 %v10947_v7  ;;  %v7318_v55 = vrot.slane %v7273_v6, 7  ;;  %v7540_v6 = vrot.slane %v7493_v3, 6 }
 0x6f3   : > { %v7307_v46 = vsel %vm13130_vm14, %v9122_v8, %v7306_v12  ;;  %v7490_v12 = vld [vmem:[#allocation5 + $0xdc] sm:$0xc] }
 0x6f4   : > { %v9144_v0 = vcombine.low %v7303_v24, %v7307_v46  ;;  %v7849_v24 = vld [vmem:[#allocation10] sm:$0x3] }
 0x6f5   : > { %10286 = vmatpush3.bf16.msra.mxu0 %v10947_v7  ;;  %v7272_v7 = vld [vmem:[#allocation5 + $0xd8] sm:$0x8] }
 0x6f6   : > { %10287 = vmatprep.subr.bf16.mxu0 %v10948_v11  ;;  %v9125_v61 = vrot.slane %v7272_v7, 11 }
 0x6f8   : > { %10280 = vmatmul.mubr.bf16.gmra.mrb[20].mxu0 %v9082_v25  ;;  %v9126_v25 = vrot.slane %v7274_v4, 11  ;;  %v7852_v4 = vrot.slane %v7849_v24, 1 }
 0x6f9   : > { %10288 = vmatpush3.bf16.msra.mxu0 %v10948_v11  ;;  %10299 = vmatprep.mubr.bf16.mxu0 %v10949_v15  ;;  %v7481_v11 = vld [vmem:[#allocation5 + $0xa4] sm:$0x3]  ;;  %v7480_v15 = vld [vmem:[#allocation5 + $0xa0] sm:$0xc] }
 0x6fa   : > { %10289 = vmatprep.subr.bf16.mxu0 %v10950_v22 }
 0x6fd   : > { %10290 = vmatpush3.bf16.msra.mxu0 %v10950_v22  ;;  %v7322_v22 = vrot.slane %v7275_v49, 7 }
 0x6fe   : > { %10291 = vmatprep.subr.bf16.mxu0 %v10951_v32 }
 0x701   : > { %10292 = vmatpush3.bf16.msra.mxu0 %v10951_v32  ;;  %v10967_v32 = vld [vmem:[%s13425_s14 + $0x1c8] sm:$0xff]  }
 0x702   : > { %10293 = vmatprep.subr.bf16.mxu0 %v10952_v39 }
 0x705   : > { %10294 = vmatpush3.bf16.msra.mxu0 %v10952_v39  ;;  %v7478_v39 = vld [vmem:[#allocation5 + $0x94] sm:$0xc] }
 0x706   : > { %10295 = vmatprep.subr.bf16.mxu0 %v10953_v1 }
 0x709   : > { %10296 = vmatpush3.bf16.msra.mxu0 %v10953_v1  ;;  %v7479_v1 = vld [vmem:[#allocation5 + $0x98] sm:$0x3] }
 0x70a   : > { %10297 = vmatprep.subr.bf16.mxu0 %v10954_v40  ;;  %v7512_v19 = vrot.slane %v7479_v1, 6  ;;  %v10983_v1 = vld [vmem:[#allocation11 + $0x8] sm:$0xff]  }
 0x70d   : > { %10298 = vmatpush3.bf16.msra.mxu0 %v10954_v40  ;;  %v9156_v40 = vrot.slane %v7480_v15, 10 }
 0x70e   : > { %10307 = vmatprep.subr.bf16.mxu0 %v10956_v28 }
 0x710   : > { %10300 = vmatmul.mubr.bf16.vlgmr.msra.gmra.mrb[16].mxu0 %v10955_v20  ;;  %v7319_v20 = vsel %vm13130_vm14, %v9125_v61, %v7318_v55  ;;  %v7541_v55 = vsel %vm13177_vm1, %v9162_v50, %v7540_v6 }
 0x711   : > { %10308 = vmatpush3.bf16.msra.mxu0 %v10956_v28  ;;  %10303 = vmatprep.mubr.bf16.mxu0 %v10958_v5  ;;  %v7516_v28 = vrot.slane %v7481_v11, 6  ;;  %v7323_v5 = vsel %vm13130_vm14, %v9126_v25, %v7322_v22 }
 0x712   : > { %10309 = vmatprep.subr.bf16.mxu0 %v10957_v41  ;;  %v9146_v10 = vcombine.low %v7319_v20, %v7323_v5  ;;  %v10986_v20 = vld [vmem:[#allocation11 + $0x20] sm:$0xff]   ;;  %v10988_v5 = vld [vmem:[#allocation11 + $0x30] sm:$0xff]  }
 0x713   : > { %v7517_v38 = vsel %vm13177_vm1, %v9156_v40, %v7516_v28  ;;  %v10984_v40 = vld [vmem:[#allocation11 + $0x10] sm:$0xff]   ;;  %v10985_v28 = vld [vmem:[#allocation11 + $0x18] sm:$0xff]  }
 0x715   : > { %10310 = vmatpush3.bf16.msra.mxu0 %v10957_v41  ;;  %v9155_v41 = vrot.slane %v7478_v39, 10 }
 0x716   : > { %10311 = vmatprep.subr.bf16.mxu0 %v10960_v43 }
 0x717   : > { %v7513_v57 = vsel %vm13177_vm1, %v9155_v41, %v7512_v19 }
 0x718   : > { %10304 = vmatmul.mubr.bf16.gmra.mrb[20].mxu0 %v10959_v27  ;;  %v10977_v27 = vld [vmem:[%s13425_s14 + $0x1f0] sm:$0xff]  }
 0x719   : > { %10312 = vmatpush3.bf16.msra.mxu0 %v10960_v43  ;;  %10323 = vmatprep.mubr.bf16.mxu0 %v9143_v42  ;;  %v9179_v43 = vcombine.low %v7513_v57, %v7517_v38  ;;  %v7486_v42 = vld [vmem:[#allocation5 + $0xc4] sm:$0xc] }
 0x71a   : > { %10313 = vmatprep.subr.bf16.mxu0 %v10961_v23  ;;  %v9159_v35 = vrot.slane %v7486_v42, 10 }
 0x71d   : > { %10314 = vmatpush3.bf16.msra.mxu0 %v10961_v23  ;;  %v7485_v23 = vld [vmem:[#allocation5 + $0xbc] sm:$0x3] }
 0x71e   : > { %10315 = vmatprep.subr.bf16.mxu0 %v10962_v36  ;;  %v7524_v51 = vrot.slane %v7485_v23, 6 }
 0x720   : > { %v7525_v8 = vsel %vm13177_vm1, %v9158_v18, %v7524_v51 }
 0x721   : > { %10316 = vmatpush3.bf16.msra.mxu0 %v10962_v36  ;;  %v7487_v36 = vld [vmem:[#allocation5 + $0xc8] sm:$0x3]  ;;  %v9180_v46 = vcombine.low %v7521_v17, %v7525_v8 }
 0x722   : > { %10317 = vmatprep.subr.bf16.mxu0 %v10963_v56  ;;  %v7528_v58 = vrot.slane %v7487_v36, 6 }
 0x725   : > { %10318 = vmatpush3.bf16.msra.mxu0 %v10963_v56  ;;  %v7488_v56 = vld [vmem:[#allocation5 + $0xd0] sm:$0xc] }
 0x726   : > { %10319 = vmatprep.subr.bf16.mxu0 %v10964_v9  ;;  %v9160_v13 = vrot.slane %v7488_v56, 10 }
 0x729   : > { %10320 = vmatpush3.bf16.msra.mxu0 %v10964_v9  ;;  %v7489_v9 = vld [vmem:[#allocation5 + $0xd4] sm:$0x3] }
 0x72a   : > { %10321 = vmatprep.subr.bf16.mxu0 %v10965_v45  ;;  %v7532_v26 = vrot.slane %v7489_v9, 6 }
 0x72c   : > { %v7533_v60 = vsel %vm13177_vm1, %v9160_v13, %v7532_v26 }
 0x72d   : > { %10322 = vmatpush3.bf16.msra.mxu0 %v10965_v45  ;;  %v7529_v45 = vsel %vm13177_vm1, %v9159_v35, %v7528_v58 }
 0x72e   : > { %10331 = vmatprep.subr.bf16.mxu0 %v10966_v53  ;;  %v9181_v7 = vcombine.low %v7529_v45, %v7533_v60 }
 0x730   : > { %10324 = vmatmul.mubr.bf16.vlgmr.msra.gmra.mrb[16].mxu0 %v9144_v0 }
 0x731   : > { %10332 = vmatpush3.bf16.msra.mxu0 %v10966_v53  ;;  %10327 = vmatprep.mubr.bf16.mxu0 %v9145_v52  ;;  %v9161_v53 = vrot.slane %v7490_v12, 10 }
 0x732   : > { %10333 = vmatprep.subr.bf16.mxu0 %v10967_v32 }
 0x733   : > { %v7537_v52 = vsel %vm13177_vm1, %v9161_v53, %v7536_v54 }
 0x735   : > { %10334 = vmatpush3.bf16.msra.mxu0 %v10967_v32  ;;  %v9182_v32 = vcombine.low %v7537_v52, %v7541_v55 }
 0x736   : > { %10335 = vmatprep.subr.bf16.mxu0 %v10969_v30 }
 0x738   : > { %10328 = vmatmul.mubr.bf16.gmra.mrb[20].mxu0 %v9146_v10 }
 0x739   : > { %10336 = vmatpush3.bf16.msra.mxu0 %v10969_v30  ;;  %10347 = vmatprep.mubr.bf16.mxu0 %v9179_v43  ;;  %v10989_v30 = vld [vmem:[#allocation11 + $0x38] sm:$0xff]  }
 0x73a   : > { %10337 = vmatprep.subr.bf16.mxu0 %v10971_v63 }
 0x73d   : > { %10338 = vmatpush3.bf16.msra.mxu0 %v10971_v63 }
 0x73e   : > { %10339 = vmatprep.subr.bf16.mxu0 %v10973_v2 }
 0x741   : > { %10340 = vmatpush3.bf16.msra.mxu0 %v10973_v2 }
 0x742   : > { %10341 = vmatprep.subr.bf16.mxu0 %v10975_v29 }
 0x745   : > { %10342 = vmatpush3.bf16.msra.mxu0 %v10975_v29 }
 0x746   : > { %10343 = vmatprep.subr.bf16.mxu0 %v10977_v27 }
 0x749   : > { %10344 = vmatpush3.bf16.msra.mxu0 %v10977_v27 }
 0x74a   : > { %10345 = vmatprep.subr.bf16.mxu0 %v10979_v62 }
 0x74d   : > { %10346 = vmatpush3.bf16.msra.mxu0 %v10979_v62 }
 0x750   : > { %v7843_v49 = vpop.f32.mrb[24].mxu1  ;;  %10348 = vmatmul.mubr.bf16.vlgmr.msra.gmra.mrb[16].mxu0 %v9180_v46 }
 0x751   : > { %v7850_v0 = vmul.f32 %v7849_v24, %v7843_v49  ;;  %v10373_v61 = vpop.f32.mrb[25].mxu1  ;;  %10351 = vmatprep.mubr.bf16.mxu0 %v9181_v7 }
 0x752   : > { %v7846_v11 = vpop.f32.mrb[26].mxu1 }
 0x753   : > { %v7854_v25 = vadd.f32 %v7852_v4, %v7850_v0  ;;  %v10374_v22 = vpop.f32.mrb[27].mxu1  ;;  %v8098_v4 = vld [vmem:[#allocation14] sm:$0x3] }
 0x754   : > { %v8102_v0 = vrot.slane %v8098_v4, %v12023_v14  ;;  %v8114_v52 = vrot.slane %v8098_v4, %v12028_v16 }
 0x755   : > { %v7855_v15 = vmax.f32 %v7854_v25, 0.0 }
 0x757   : > { %v7876_v39 = vpack.c.bf16 %v7855_v15, %v7855_v15 }
 0x758   : > { %10352 = vmatmul.mubr.bf16.gmra.mrb[20].mxu0 %v9182_v32 }
 0x759   : > { %10392 = vmatmul.mubr.bf16.vlgmr.msra.gmra.mrb[28].mxu1 %v7876_v39 }
 0x75a   : > { %10396 = vmatpush3.bf16.msra.mxu1 %v13265_v44  ;;  %v7696_v44 = vld [vmem:[#allocation8] sm:$0x3] }
 0x75b   : > { %10397 = vmatprep.subr.bf16.mxu1 %v10983_v1  ;;  %v7700_v41 = vrot.slane %v7696_v44, %v12023_v14  ;;  %v7712_v19 = vrot.slane %v7696_v44, %v12028_v16 }
 0x75e   : > { %10398 = vmatpush3.bf16.msra.mxu1 %v10983_v1 }
 0x75f   : > { %10399 = vmatprep.subr.bf16.mxu1 %v10984_v40 }
 0x762   : > { %10400 = vmatpush3.bf16.msra.mxu1 %v10984_v40 }
 0x763   : > { %10401 = vmatprep.subr.bf16.mxu1 %v10985_v28 }
 0x766   : > { %10402 = vmatpush3.bf16.msra.mxu1 %v10985_v28 }
 0x767   : > { %10403 = vmatprep.subr.bf16.mxu1 %v10986_v20 }
 0x76a   : > { %10404 = vmatpush3.bf16.msra.mxu1 %v10986_v20 }
 0x76b   : > { %10405 = vmatprep.subr.bf16.mxu1 %v10987_v37 }
 0x76e   : > { %10406 = vmatpush3.bf16.msra.mxu1 %v10987_v37 }
 0x76f   : > { %10407 = vmatprep.subr.bf16.mxu1 %v10988_v5 }
 0x772   : > { %10408 = vmatpush3.bf16.msra.mxu1 %v10988_v5 }
 0x773   : > { %10409 = vmatprep.subr.bf16.mxu1 %v10989_v30 }
 0x776   : > { %10410 = vmatpush3.bf16.msra.mxu1 %v10989_v30 }
 0x823   : > { %v10349_v10 = vpop.f32.mrb[16].mxu0 }
 0x824   : > { %v7703_v38 = vmul.f32 %v10349_v10, %v7700_v41  ;;  %v7657_v57 = vpop.f32.mrb[17].mxu0 }
 0x825   : > { %v7701_v63 = vmul.f32 %v7700_v41, %v7657_v57  ;;  %v10350_v43 = vpop.f32.mrb[18].mxu0 }
 0x826   : > { %v7715_v2 = vadd.f32 %v7712_v19, %v7703_v38  ;;  %v7704_v29 = vmul.f32 %v10350_v43, %v7700_v41  ;;  %v7660_v27 = vpop.f32.mrb[19].mxu0 }
 0x827   : > { %v7713_v33 = vadd.f32 %v7712_v19, %v7701_v63  ;;  %v7702_v47 = vmul.f32 %v7700_v41, %v7660_v27 }
 0x828   : > { %v7716_v34 = vadd.f32 %v7712_v19, %v7704_v29  ;;  %v7723_v42 = vmax.f32 %v7715_v2, 0.0 }
 0x829   : > { %v7714_v23 = vadd.f32 %v7712_v19, %v7702_v47  ;;  %v7721_v56 = vmax.f32 %v7713_v33, 0.0 }
 0x82a   : > { %v7724_v36 = vmax.f32 %v7716_v34, 0.0 }
 0x82b   : > { %v7722_v9 = vmax.f32 %v7714_v23, 0.0  ;;  %v10353_v31 = vpop.f32.mrb[20].mxu0 }
 0x82c   : > { %v7975_v59 = vpop.f32.mrb[28].mxu1  ;;  %v7857_v18 = vpack.c.bf16 %v7724_v36, %v7723_v42  ;;  %v7707_v62 = vmul.f32 %v10353_v31, %v7700_v41  ;;  %v7673_v35 = vpop.f32.mrb[21].mxu0 }
 0x82d   : > { %v10393_v51 = vpop.f32.mrb[29].mxu1  ;;  %v7705_v13 = vmul.f32 %v7700_v41, %v7673_v35  ;;  %v10354_v26 = vpop.f32.mrb[22].mxu0  ;;  %v7856_v17 = vpack.c.bf16 %v7722_v9, %v7721_v56  ;;  %v7984_v49 = vrot.slane %v7975_v59, %v12023_v14 }
 0x82e   : > { %v7978_v58 = vpop.f32.mrb[30].mxu1  ;;  %v7719_v8 = vadd.f32 %v7712_v19, %v7707_v62  ;;  %v7708_v45 = vmul.f32 %v10354_v26, %v7700_v41  ;;  %v7676_v60 = vpop.f32.mrb[23].mxu0 }
 0x82f   : > { %v10394_v12 = vpop.f32.mrb[31].mxu1  ;;  %v7717_v21 = vadd.f32 %v7712_v19, %v7705_v13  ;;  %v7706_v48 = vmul.f32 %v7700_v41, %v7676_v60  ;;  %10411 = vmatprep.mubr.bf16.mxu1 %v7856_v17 }
 0x830   : > { %v7720_v3 = vadd.f32 %v7712_v19, %v7708_v45  ;;  %10412 = vmatmul.mubr.bf16.vlgmr.msra.gmra.mrb[32].mxu1 %v7857_v18  ;;  %v7727_v46 = vmax.f32 %v7719_v8, 0.0 }
 0x831   : > { %v7718_v24 = vadd.f32 %v7712_v19, %v7706_v48  ;;  %v7725_v7 = vmax.f32 %v7717_v21, 0.0 }
 0x832   : > { %v7728_v53 = vmax.f32 %v7720_v3, 0.0 }
 0x833   : > { %v7726_v54 = vmax.f32 %v7718_v24, 0.0 }
 0x834   : > { %v7859_v50 = vpack.c.bf16 %v7728_v53, %v7727_v46 }
 0x835   : > { %v7858_v6 = vpack.c.bf16 %v7726_v54, %v7725_v7 }
 0x837   : > { %10415 = vmatprep.mubr.bf16.mxu1 %v7858_v6 }
 0x838   : > { %10416 = vmatmul.mubr.bf16.gmra.mrb[36].mxu1 %v7859_v50 }
 0x903   : > { %v10413_v61 = vpop.f32.mrb[32].mxu1 }
 0x904   : > { %v8076_v11 = vadd.f32 %v10413_v61, %v7984_v49  ;;  %v8067_v55 = vpop.f32.mrb[33].mxu1 }
 0x905   : > { %v8068_v25 = vadd.f32 %v8067_v55, %v7984_v49  ;;  %v10414_v22 = vpop.f32.mrb[34].mxu1 }
 0x906   : > { %v8105_v15 = vmul.f32 %v8102_v0, %v8076_v11  ;;  %v8079_v32 = vadd.f32 %v10414_v22, %v7984_v49  ;;  %v8070_v39 = vpop.f32.mrb[35].mxu1 }
 0x907   : > { %v8103_v1 = vmul.f32 %v8102_v0, %v8068_v25  ;;  %v8071_v40 = vadd.f32 %v8070_v39, %v7984_v49 }
 0x908   : > { %v8117_v28 = vadd.f32 %v8114_v52, %v8105_v15  ;;  %v8106_v20 = vmul.f32 %v8102_v0, %v8079_v32 }
 0x909   : > { %v8115_v37 = vadd.f32 %v8114_v52, %v8103_v1  ;;  %v8104_v5 = vmul.f32 %v8102_v0, %v8071_v40 }
 0x90a   : > { %v8118_v30 = vadd.f32 %v8114_v52, %v8106_v20  ;;  %v8125_v41 = vmax.f32 %v8117_v28, 0.0 }
 0x90b   : > { %v8116_v44 = vadd.f32 %v8114_v52, %v8104_v5  ;;  %v10417_v14 = vpop.f32.mrb[36].mxu1  ;;  %v8123_v38 = vmax.f32 %v8115_v37, 0.0 }
 0x90c   : > { %v8126_v19 = vmax.f32 %v8118_v30, 0.0  ;;  %v8092_v10 = vadd.f32 %v10417_v14, %v7984_v49  ;;  %v8083_v16 = vpop.f32.mrb[37].mxu1 }
 0x90d   : > { %v8124_v57 = vmax.f32 %v8116_v44, 0.0  ;;  %v8084_v63 = vadd.f32 %v8083_v16, %v7984_v49  ;;  %v10418_v43 = vpop.f32.mrb[38].mxu1 }
 0x90e   : > { %v9263_v2 = vpack.c.bf16 %v8126_v19, %v8125_v41  ;;  %v8109_v29 = vmul.f32 %v8102_v0, %v8092_v10  ;;  %v8095_v27 = vadd.f32 %v10418_v43, %v7984_v49  ;;  %v8086_v33 = vpop.f32.mrb[39].mxu1 }
 0x90f   : > { %v9258_v47 = vpack.c.bf16 %v8124_v57, %v8123_v38  ;;  %v8107_v34 = vmul.f32 %v8102_v0, %v8084_v63  ;;  %v8087_v23 = vadd.f32 %v8086_v33, %v7984_v49 }
 0x910   : > { %9278 = vst [vmem:[%s776_s0 + $0x8] sm:$0xff] %v9263_v2   ;;  %v8121_v42 = vadd.f32 %v8114_v52, %v8109_v29  ;;  %v8110_v36 = vmul.f32 %v8102_v0, %v8095_v27 }
 0x911   : > { %9259 = vst [vmem:[%s776_s0] sm:$0xff] %v9258_v47   ;;  %v8119_v56 = vadd.f32 %v8114_v52, %v8107_v34  ;;  %v8108_v9 = vmul.f32 %v8102_v0, %v8087_v23 }
 0x912   : > { %v8122_v59 = vadd.f32 %v8114_v52, %v8110_v36  ;;  %v8129_v18 = vmax.f32 %v8121_v42, 0.0 }
 0x913   : > { %v8120_v31 = vadd.f32 %v8114_v52, %v8108_v9  ;;  %v8127_v62 = vmax.f32 %v8119_v56, 0.0 }
 0x914   : > { %v8130_v51 = vmax.f32 %v8122_v59, 0.0 }
 0x915   : > { %v8128_v35 = vmax.f32 %v8120_v31, 0.0 }
 0x916   : > { %v9273_v58 = vpack.c.bf16 %v8130_v51, %v8129_v18 }
 0x917   : > { %v9268_v13 = vpack.c.bf16 %v8128_v35, %v8127_v62 }
 0x918   : > { %9280 = vst [vmem:[%s776_s0 + $0x18] sm:$0xff] %v9273_v58  }
 0x919   : > { %9279 = vst [vmem:[%s776_s0 + $0x10] sm:$0xff] %v9268_v13  }
 0x91a PF: > { %s13487_s30 = sld [smem:[#allocation20_spill]] }
 0x920   : > { %s37_s3 = sadd.s32 1, %s13487_s30  }
 0x921   : > { %p34_p9 = scmp.ge.s32.totalorder %s37_s3, 4  }
 0x923   :  { %36 = sbr.rel (!%p34_p9) target bundleno = 15 (0xf), region = 207 }
 0x92a   :  { %8184 = vsyncpa [#allocation7], 1 }
 0x92b   :  { %8186 = vsyncpa [#allocation7 + $0x1], 1 }
 0x92c   :  { %8187 = vsyncpa [#allocation9], 1 }
 0x92d   :  { %8188 = vsyncpa [#allocation12], 1 }
 0x92e   :  { %8189 = vsyncpa [#allocation15], 1 }

</bundles_post_ra>
